<compile_context>
chip_gen: v6e
topology: v6e:2x2x1
jax: 0.10.0
libtpu: 0.0.40
codegen_flags: <defaults>
</compile_context>

<pallas_src>
import functools
import math

import jax
import jax.numpy as jnp
from jax.experimental import pallas as pl
from jax.experimental.pallas import tpu as pltpu


_VMEM_LIMIT = 32 * 1024 * 1024   # explicit, safe on v5e/v6e/v7x scoped budgets


def _round_up(x, m):
    return (x + m - 1) // m * m


# --------------------------- tiled matmul kernel -----------------------------

def _matmul_kernel(a_ref, b_ref, bias_ref, o_ref, acc_ref):
    @pl.when(pl.program_id(2) == 0)
    def _():
        acc_ref[...] = jnp.zeros_like(acc_ref)

    acc_ref[...] += jnp.dot(a_ref[...], b_ref[...],
                            preferred_element_type=jnp.float32)

    @pl.when(pl.program_id(2) == pl.num_programs(2) - 1)
    def _():
        o_ref[...] = (acc_ref[...] + bias_ref[...]).astype(o_ref.dtype)


def matmul(a, b, bias=None):
    """a: (M, K), b: (K, N), bias: (N,) or None -> (M, N) float32.

    bf16 MXU inputs, f32 accumulation. Operands are zero-padded to tile
    multiples (N padded to >=128 so stores are lane-dense); result is sliced.
    """
    M, K = a.shape
    K2, N = b.shape
    assert K == K2

    tm = min(256, _round_up(M, 8))
    tn = min(256, _round_up(N, 128))
    tk = min(512, _round_up(K, 128))
    Mp, Np, Kp = _round_up(M, tm), _round_up(N, tn), _round_up(K, tk)

    a_p = jnp.pad(a.astype(jnp.bfloat16), ((0, Mp - M), (0, Kp - K)))
    b_p = jnp.pad(b.astype(jnp.bfloat16), ((0, Kp - K), (0, Np - N)))
    if bias is None:
        bias_p = jnp.zeros((1, Np), jnp.float32)
    else:
        bias_p = jnp.pad(bias.astype(jnp.float32), (0, Np - N)).reshape(1, Np)

    grid = (Mp // tm, Np // tn, Kp // tk)
    out = pl.pallas_call(
        _matmul_kernel,
        out_shape=jax.ShapeDtypeStruct((Mp, Np), jnp.float32),
        grid_spec=pltpu.PrefetchScalarGridSpec(
            num_scalar_prefetch=0,
            grid=grid,
            in_specs=[
                pl.BlockSpec((tm, tk), lambda i, j, k: (i, k)),
                pl.BlockSpec((tk, tn), lambda i, j, k: (k, j)),
                pl.BlockSpec((1, tn), lambda i, j, k: (0, j)),
            ],
            out_specs=pl.BlockSpec((tm, tn), lambda i, j, k: (i, j)),
            scratch_shapes=[pltpu.VMEM((tm, tn), jnp.float32)],
        ),
        compiler_params=pltpu.CompilerParams(
            dimension_semantics=("parallel", "parallel", "arbitrary"),
            vmem_limit_bytes=_VMEM_LIMIT),
    )(a_p, b_p, bias_p)
    return out[:M, :N]


# ----------------------------- LayerNorm kernel -------------------------------

def _layernorm_kernel(eps, x_ref, g_ref, b_ref, o_ref):
    x = x_ref[...]                                   # f32
    mu = jnp.mean(x, axis=-1, keepdims=True)
    var = jnp.mean(jnp.square(x - mu), axis=-1, keepdims=True)
    y = (x - mu) * jax.lax.rsqrt(var + eps)
    o_ref[...] = y * g_ref[...] + b_ref[...]


def layernorm(x2d, gamma, beta, eps=1e-5):
    """Channel-last LayerNorm, row-tiled. Statistics stay in f32 (v5e-safe)."""
    M, C = x2d.shape
    tm = min(512, _round_up(M, 8))
    Mp = _round_up(M, tm)
    xp = jnp.pad(x2d.astype(jnp.float32), ((0, Mp - M), (0, 0)))
    out = pl.pallas_call(
        functools.partial(_layernorm_kernel, eps),
        out_shape=jax.ShapeDtypeStruct((Mp, C), jnp.float32),
        grid_spec=pltpu.PrefetchScalarGridSpec(
            num_scalar_prefetch=0,
            grid=(Mp // tm,),
            in_specs=[
                pl.BlockSpec((tm, C), lambda i: (i, 0)),
                pl.BlockSpec((1, C), lambda i: (0, 0)),
                pl.BlockSpec((1, C), lambda i: (0, 0)),
            ],
            out_specs=pl.BlockSpec((tm, C), lambda i: (i, 0)),
        ),
        compiler_params=pltpu.CompilerParams(
            dimension_semantics=("parallel",),
            vmem_limit_bytes=_VMEM_LIMIT),
    )(xp, gamma.reshape(1, C).astype(jnp.float32),
      beta.reshape(1, C).astype(jnp.float32))
    return out[:M]


# -------------------------- flash attention kernel ----------------------------

def _flash_attn_kernel(scale, Lk, tk, needs_mask,
                       q_ref, k_ref, v_ref, o_ref, m_sc, l_sc, acc_sc):
    kv = pl.program_id(2)

    @pl.when(kv == 0)
    def _():
        m_sc[...] = jnp.full_like(m_sc, -jnp.inf)
        l_sc[...] = jnp.zeros_like(l_sc)
        acc_sc[...] = jnp.zeros_like(acc_sc)

    q = q_ref[...]                                   # (tq, dh) bf16
    k = k_ref[...]                                   # (tk, dh) bf16
    v = v_ref[...]                                   # (tk, dh) bf16

    # QK^T on the MXU, f32 logits.
    s = jax.lax.dot_general(q, k, (((1,), (1,)), ((), ())),
                            preferred_element_type=jnp.float32) * scale
    if needs_mask:                                   # static Python bool
        col = jax.lax.broadcasted_iota(jnp.int32, s.shape, 1) + kv * tk
        s = jnp.where(col < Lk, s, -jnp.inf)

    m_prev = m_sc[...]
    m_new = jnp.maximum(m_prev, jnp.max(s, axis=-1, keepdims=True))
    alpha = jnp.exp(m_prev - m_new)
    p = jnp.exp(s - m_new)                           # f32 softmax numerators
    l_sc[...] = alpha * l_sc[...] + jnp.sum(p, axis=-1, keepdims=True)
    acc_sc[...] = alpha * acc_sc[...] + jnp.dot(
        p.astype(v.dtype), v, preferred_element_type=jnp.float32)
    m_sc[...] = m_new

    @pl.when(kv == pl.num_programs(2) - 1)
    def _():
        inv_l = pl.reciprocal(l_sc[...], approx=True)    # EUP slot, ~free
        o_ref[...] = (acc_sc[...] * inv_l).astype(o_ref.dtype)


def flash_attention(q, k, v, scale):
    """q: (BH, Lq, dh), k/v: (BH, Lk, dh) -> (BH, Lq, dh) float32.

    Streams KV tiles with online softmax; the (Lq, Lk) score matrix never
    exists outside a (tq, tk) VMEM tile.
    """
    BH, Lq, dh = q.shape
    _, Lk, _ = k.shape

    tq = min(256, _round_up(Lq, 8))
    tk = min(512, _round_up(Lk, 8))
    Lqp = _round_up(Lq, tq)
    Lkp = _round_up(Lk, tk)

    qp = jnp.pad(q.astype(jnp.bfloat16), ((0, 0), (0, Lqp - Lq), (0, 0)))
    kp = jnp.pad(k.astype(jnp.bfloat16), ((0, 0), (0, Lkp - Lk), (0, 0)))
    vp = jnp.pad(v.astype(jnp.bfloat16), ((0, 0), (0, Lkp - Lk), (0, 0)))
    needs_mask = (Lkp != Lk)

    grid = (BH, Lqp // tq, Lkp // tk)
    # NOTE: dh (= C / num_heads) is below the 128/256-wide MXU contraction;
    # heads are batched on the leading 'parallel' grid axis instead of being
    # padded in HBM (padding dh would only add HBM traffic, not MXU work).
    out = pl.pallas_call(
        functools.partial(_flash_attn_kernel, scale, Lk, tk, needs_mask),
        out_shape=jax.ShapeDtypeStruct((BH, Lqp, dh), jnp.float32),
        grid_spec=pltpu.PrefetchScalarGridSpec(
            num_scalar_prefetch=0,
            grid=grid,
            in_specs=[
                pl.BlockSpec((None, tq, dh), lambda b, i, j: (b, i, 0)),
                pl.BlockSpec((None, tk, dh), lambda b, i, j: (b, j, 0)),
                pl.BlockSpec((None, tk, dh), lambda b, i, j: (b, j, 0)),
            ],
            out_specs=pl.BlockSpec((None, tq, dh), lambda b, i, j: (b, i, 0)),
            scratch_shapes=[
                pltpu.VMEM((tq, 1), jnp.float32),    # running max m
                pltpu.VMEM((tq, 1), jnp.float32),    # running sum l
                pltpu.VMEM((tq, dh), jnp.float32),   # accumulator
            ],
        ),
        compiler_params=pltpu.CompilerParams(
            dimension_semantics=("parallel", "parallel", "arbitrary"),
            vmem_limit_bytes=_VMEM_LIMIT),
    )(qp, kp, vp)
    return out[:, :Lq, :]


# ------------------------ EfficientMultiHeadAttention ------------------------

def efficient_mha_forward(params, x_nchw, num_heads, reduction_ratio):
    """Matches torch EfficientMultiHeadAttention.forward (NCHW in / NCHW out)."""
    B, C, H, W = x_nchw.shape
    r = reduction_ratio
    assert H % r == 0 and W % r == 0 and C % num_heads == 0
    dh = C // num_heads
    Hr, Wr = H // r, W // r
    Lq, Lk = H * W, Hr * Wr

    x = jnp.transpose(x_nchw, (0, 2, 3, 1)).astype(jnp.float32)   # NHWC

    # ---- reducer: Conv2d(C, C, kernel=r, stride=r) + LayerNorm2d -----------
    # stride == kernel -> non-overlapping patches -> pure reshape + matmul,
    # no im2col blow-up (patch bytes == input bytes).
    patches = (x.reshape(B, Hr, r, Wr, r, C)
                .transpose(0, 1, 3, 2, 4, 5)
                .reshape(B * Lk, r * r * C))
    w_red = jnp.transpose(params["red_w"], (2, 3, 1, 0)).reshape(r * r * C, C)
    red = matmul(patches, w_red, params["red_b"])
    red = layernorm(red, params["red_ln_g"], params["red_ln_b"])

    # ---- projections (torch nn.MultiheadAttention in_proj / out_proj) ------
    wq = params["in_proj_w"][:C]
    wkv = params["in_proj_w"][C:]            # (2C, C) -- K and V fused
    bq = params["in_proj_b"][:C]
    bkv = params["in_proj_b"][C:]

    xq = x.reshape(B * Lq, C)
    q = matmul(xq, wq.T, bq)                 # (B*Lq, C)
    kv = matmul(red, wkv.T, bkv)             # (B*Lk, 2C) fused K/V projection
    k_, v_ = kv[:, :C], kv[:, C:]

    def split_heads(t, L):
        return (t.reshape(B, L, num_heads, dh)
                 .transpose(0, 2, 1, 3)
                 .reshape(B * num_heads, L, dh))

    o = flash_attention(split_heads(q, Lq),
                        split_heads(k_, Lk),
                        split_heads(v_, Lk),
                        1.0 / math.sqrt(dh))
    o = (o.reshape(B, num_heads, Lq, dh)
           .transpose(0, 2, 1, 3)
           .reshape(B * Lq, C))
    out = matmul(o, params["out_w"].T, params["out_b"])
    out = out.reshape(B, H, W, C)
    return jnp.transpose(out, (0, 3, 1, 2))                       # NCHW


# ------------------------------ pure-JAX reference ----------------------------

def _reference_forward(params, x_nchw, num_heads, reduction_ratio):
    B, C, H, W = x_nchw.shape
    r = reduction_ratio
    dh = C // num_heads
    x = jnp.transpose(x_nchw, (0, 2, 3, 1)).astype(jnp.float32)
    red = jax.lax.conv_general_dilated(
        x, jnp.transpose(params["red_w"], (2, 3, 1, 0)),
        window_strides=(r, r), padding="VALID",
        dimension_numbers=("NHWC", "HWIO", "NHWC")) + params["red_b"]
    mu = red.mean(-1, keepdims=True)
    var = ((red - mu) ** 2).mean(-1, keepdims=True)
    red = ((red - mu) / jnp.sqrt(var + 1e-5)
           * params["red_ln_g"] + params["red_ln_b"])
    Lq, Lk = H * W, (H // r) * (W // r)
    xq = x.reshape(B, Lq, C)
    xkv = red.reshape(B, Lk, C)
    wq, wk, wv = (params["in_proj_w"][:C], params["in_proj_w"][C:2 * C],
                  params["in_proj_w"][2 * C:])
    bq, bk, bv = (params["in_proj_b"][:C], params["in_proj_b"][C:2 * C],
                  params["in_proj_b"][2 * C:])
    q = (xq @ wq.T + bq).reshape(B, Lq, num_heads, dh).transpose(0, 2, 1, 3)
    k = (xkv @ wk.T + bk).reshape(B, Lk, num_heads, dh).transpose(0, 2, 1, 3)
    v = (xkv @ wv.T + bv).reshape(B, Lk, num_heads, dh).transpose(0, 2, 1, 3)
    s = jnp.einsum("bhqd,bhkd->bhqk", q, k) / math.sqrt(dh)
    p = jax.nn.softmax(s, axis=-1)
    o = jnp.einsum("bhqk,bhkd->bhqd", p, v)
    o = o.transpose(0, 2, 1, 3).reshape(B, Lq, C)
    o = o @ params["out_w"].T + params["out_b"]
    return jnp.transpose(o.reshape(B, H, W, C), (0, 3, 1, 2))


# --------------------------------- params ------------------------------------

def init_params(key, channels, reduction_ratio):
    C, r = channels, reduction_ratio
    ks = jax.random.split(key, 8)

    def rnd(k, shape, scale=0.05):
        return jax.random.normal(k, shape, dtype=jnp.float32) * scale

    return {
        "red_w": rnd(ks[0], (C, C, r, r)),
        "red_b": rnd(ks[1], (C,)),
        "red_ln_g": 1.0 + rnd(ks[2], (C,), 0.02),
        "red_ln_b": rnd(ks[3], (C,)),
        "in_proj_w": rnd(ks[4], (3 * C, C)),
        "in_proj_b": rnd(ks[5], (3 * C,)),
        "out_w": rnd(ks[6], (C, C)),
        "out_b": rnd(ks[7], (C,)),
    }


# ----------------------------------- main -------------------------------------

if __name__ == "__main__":
    B, C, H, W = 2, 64, 16, 16
    num_heads = 8
    reduction_ratio = 2

    key = jax.random.PRNGKey(0)
    pkey, xkey = jax.random.split(key)
    params = init_params(pkey, C, reduction_ratio)
    x = jax.random.normal(xkey, (B, C, H, W), dtype=jnp.float32)   # NCHW

    fwd = jax.jit(functools.partial(efficient_mha_forward,
                                    num_heads=num_heads,
                                    reduction_ratio=reduction_ratio))
    out = jax.block_until_ready(fwd(params, x))

    assert out.shape == (B, C, H, W), out.shape
    assert out.dtype == jnp.float32
    assert bool(jnp.all(jnp.isfinite(out)))

    ref = _reference_forward(params, x, num_heads, reduction_ratio)
    max_err = float(jnp.max(jnp.abs(out - ref)))
    assert max_err < 5e-2, f"max abs err {max_err}"

    print("KERNEL_OK")
</pallas_src>

<mosaic_0001>
module attributes {stable_mosaic.version = 11 : i64} {
  func.func @_layernorm_kernel(%arg0: i32, %arg1: memref<128x64xf32, #tpu.memory_space<vmem>>, %arg2: memref<1x64xf32, #tpu.memory_space<vmem>>, %arg3: memref<1x64xf32, #tpu.memory_space<vmem>>, %arg4: memref<128x64xf32, #tpu.memory_space<vmem>>) attributes {dimension_semantics = [#tpu.dimension_semantics<parallel>], iteration_bounds = array<i64: 1>, scalar_prefetch = 0 : i64, scratch_operands = 0 : i64, tpu.core_type = #tpu.core_type<tc>, window_params = [{transform_indices = @transform_0, window_bounds = array<i64: 128, 64>}, {pipeline_mode = #tpu.pipeline_mode<synchronous>, transform_indices = @transform_1, window_bounds = array<i64: 1, 64>}, {pipeline_mode = #tpu.pipeline_mode<synchronous>, transform_indices = @transform_2, window_bounds = array<i64: 1, 64>}, {transform_indices = @transform_3, window_bounds = array<i64: 128, 64>}]} {
    %c0 = arith.constant 0 : index
    %c0_0 = arith.constant 0 : index
    %0 = vector.load %arg1[%c0, %c0_0] : memref<128x64xf32, #tpu.memory_space<vmem>>, vector<128x64xf32>
    %cst = arith.constant dense<0.000000e+00> : vector<128xf32>
    %1 = vector.multi_reduction <add>, %0, %cst [1] : vector<128x64xf32> to vector<128xf32>
    %2 = vector.shape_cast %1 : vector<128xf32> to vector<128x1xf32>
    %cst_1 = arith.constant 6.400000e+01 : f32
    %3 = vector.broadcast %cst_1 : f32 to vector<128x1xf32>
    %4 = arith.divf %2, %3 : vector<128x1xf32>
    %5 = vector.broadcast %4 : vector<128x1xf32> to vector<128x64xf32>
    %6 = arith.subf %0, %5 : vector<128x64xf32>
    %7 = arith.mulf %6, %6 : vector<128x64xf32>
    %cst_2 = arith.constant dense<0.000000e+00> : vector<128xf32>
    %8 = vector.multi_reduction <add>, %7, %cst_2 [1] : vector<128x64xf32> to vector<128xf32>
    %9 = vector.shape_cast %8 : vector<128xf32> to vector<128x1xf32>
    %cst_3 = arith.constant 6.400000e+01 : f32
    %10 = vector.broadcast %cst_3 : f32 to vector<128x1xf32>
    %11 = arith.divf %9, %10 : vector<128x1xf32>
    %12 = vector.broadcast %4 : vector<128x1xf32> to vector<128x64xf32>
    %13 = arith.subf %0, %12 : vector<128x64xf32>
    %cst_4 = arith.constant 9.99999974E-6 : f32
    %14 = vector.broadcast %cst_4 : f32 to vector<128x1xf32>
    %15 = arith.addf %11, %14 : vector<128x1xf32>
    %16 = math.rsqrt %15 : vector<128x1xf32>
    %17 = vector.broadcast %16 : vector<128x1xf32> to vector<128x64xf32>
    %18 = arith.mulf %13, %17 : vector<128x64xf32>
    %c0_5 = arith.constant 0 : index
    %c0_6 = arith.constant 0 : index
    %19 = vector.load %arg2[%c0_5, %c0_6] : memref<1x64xf32, #tpu.memory_space<vmem>>, vector<1x64xf32>
    %20 = vector.broadcast %19 : vector<1x64xf32> to vector<128x64xf32>
    %21 = arith.mulf %18, %20 : vector<128x64xf32>
    %c0_7 = arith.constant 0 : index
    %c0_8 = arith.constant 0 : index
    %22 = vector.load %arg3[%c0_7, %c0_8] : memref<1x64xf32, #tpu.memory_space<vmem>>, vector<1x64xf32>
    %23 = vector.broadcast %22 : vector<1x64xf32> to vector<128x64xf32>
    %24 = arith.addf %21, %23 : vector<128x64xf32>
    %c0_9 = arith.constant 0 : index
    %c0_10 = arith.constant 0 : index
    %25 = vector.load %arg4[%c0_9, %c0_10] : memref<128x64xf32, #tpu.memory_space<vmem>>, vector<128x64xf32>
    tpu.vector_store %arg4[%c0_9, %c0_10], %24 {strides = array<i32>} : memref<128x64xf32, #tpu.memory_space<vmem>>, vector<128x64xf32>,
    return
  }
  func.func @transform_0(%arg0: i32) -> (i32, i32) {
    %c0_i32 = arith.constant 0 : i32
    %c0_i32_0 = arith.constant 0 : i32
    return %arg0, %c0_i32 : i32, i32
  }
  func.func @transform_1(%arg0: i32) -> (i32, i32) {
    %c0_i32 = arith.constant 0 : i32
    %c0_i32_0 = arith.constant 0 : i32
    %c0_i32_1 = arith.constant 0 : i32
    return %c0_i32, %c0_i32_0 : i32, i32
  }
  func.func @transform_2(%arg0: i32) -> (i32, i32) {
    %c0_i32 = arith.constant 0 : i32
    %c0_i32_0 = arith.constant 0 : i32
    %c0_i32_1 = arith.constant 0 : i32
    return %c0_i32, %c0_i32_0 : i32, i32
  }
  func.func @transform_3(%arg0: i32) -> (i32, i32) {
    %c0_i32 = arith.constant 0 : i32
    %c0_i32_0 = arith.constant 0 : i32
    return %arg0, %c0_i32 : i32, i32
  }
}

module attributes {stable_mosaic.version = 11 : i64} {
  func.func @_matmul_kernel(%arg0: i32, %arg1: i32, %arg2: i32, %arg3: memref<128x256xbf16, #tpu.memory_space<vmem>>, %arg4: memref<256x128xbf16, #tpu.memory_space<vmem>>, %arg5: memref<1x128xf32, #tpu.memory_space<vmem>>, %arg6: memref<128x128xf32, #tpu.memory_space<vmem>>, %arg7: memref<128x128xf32, #tpu.memory_space<vmem>>) attributes {dimension_semantics = [#tpu.dimension_semantics<parallel>, #tpu.dimension_semantics<parallel>, #tpu.dimension_semantics<arbitrary>], iteration_bounds = array<i64: 1, 1, 1>, scalar_prefetch = 0 : i64, scratch_operands = 1 : i64, tpu.core_type = #tpu.core_type<tc>, window_params = [{transform_indices = @transform_0, window_bounds = array<i64: 128, 256>}, {transform_indices = @transform_1, window_bounds = array<i64: 256, 128>}, {transform_indices = @transform_2, window_bounds = array<i64: 1, 128>}, {transform_indices = @transform_3, window_bounds = array<i64: 128, 128>}]} {
    %c0_i32 = arith.constant 0 : i32
    %0 = arith.cmpi eq, %arg2, %c0_i32 : i32
    %1 = arith.extui %0 : i1 to i32
    %c0_i32_0 = arith.constant 0 : i32
    %2 = arith.cmpi ne, %1, %c0_i32_0 : i32
    scf.if %2 {
      %cst_10 = arith.constant 0.000000e+00 : f32
      %12 = vector.broadcast %cst_10 : f32 to vector<128x128xf32>
      %c0_11 = arith.constant 0 : index
      %c0_12 = arith.constant 0 : index
      %13 = vector.load %arg7[%c0_11, %c0_12] : memref<128x128xf32, #tpu.memory_space<vmem>>, vector<128x128xf32>
      tpu.vector_store %arg7[%c0_11, %c0_12], %12 {strides = array<i32>} : memref<128x128xf32, #tpu.memory_space<vmem>>, vector<128x128xf32>,
    } else {
    }
    %c0 = arith.constant 0 : index
    %c0_1 = arith.constant 0 : index
    %3 = vector.load %arg7[%c0, %c0_1] : memref<128x128xf32, #tpu.memory_space<vmem>>, vector<128x128xf32>
    %c0_2 = arith.constant 0 : index
    %c0_3 = arith.constant 0 : index
    %4 = vector.load %arg3[%c0_2, %c0_3] : memref<128x256xbf16, #tpu.memory_space<vmem>>, vector<128x256xbf16>
    %c0_4 = arith.constant 0 : index
    %c0_5 = arith.constant 0 : index
    %5 = vector.load %arg4[%c0_4, %c0_5] : memref<256x128xbf16, #tpu.memory_space<vmem>>, vector<256x128xbf16>
    %cst = arith.constant dense<0.000000e+00> : vector<128x128xf32>
    %6 = tpu.matmul %4, %5, %cst {dimension_numbers = #tpu.dot_dimension_numbers<[1], [0], [0], [1], [0, 0, 1, 1], [], []>} : vector<128x256xbf16>, vector<256x128xbf16>, vector<128x128xf32> -> vector<128x128xf32>
    %7 = arith.addf %3, %6 : vector<128x128xf32>
    %c0_6 = arith.constant 0 : index
    %c0_7 = arith.constant 0 : index
    %8 = vector.load %arg7[%c0_6, %c0_7] : memref<128x128xf32, #tpu.memory_space<vmem>>, vector<128x128xf32>
    tpu.vector_store %arg7[%c0_6, %c0_7], %7 {strides = array<i32>} : memref<128x128xf32, #tpu.memory_space<vmem>>, vector<128x128xf32>,
    %c0_i32_8 = arith.constant 0 : i32
    %9 = arith.cmpi eq, %arg2, %c0_i32_8 : i32
    %10 = arith.extui %9 : i1 to i32
    %c0_i32_9 = arith.constant 0 : i32
    %11 = arith.cmpi ne, %10, %c0_i32_9 : i32
    scf.if %11 {
      %c0_10 = arith.constant 0 : index
      %c0_11 = arith.constant 0 : index
      %12 = vector.load %arg7[%c0_10, %c0_11] : memref<128x128xf32, #tpu.memory_space<vmem>>, vector<128x128xf32>
      %c0_12 = arith.constant 0 : index
      %c0_13 = arith.constant 0 : index
      %13 = vector.load %arg5[%c0_12, %c0_13] : memref<1x128xf32, #tpu.memory_space<vmem>>, vector<1x128xf32>
      %14 = vector.broadcast %13 : vector<1x128xf32> to vector<128x128xf32>
      %15 = arith.addf %12, %14 : vector<128x128xf32>
      %c0_14 = arith.constant 0 : index
      %c0_15 = arith.constant 0 : index
      %16 = vector.load %arg6[%c0_14, %c0_15] : memref<128x128xf32, #tpu.memory_space<vmem>>, vector<128x128xf32>
      tpu.vector_store %arg6[%c0_14, %c0_15], %15 {strides = array<i32>} : memref<128x128xf32, #tpu.memory_space<vmem>>, vector<128x128xf32>,
    } else {
    }
    return
  }
  func.func @transform_0(%arg0: i32, %arg1: i32, %arg2: i32) -> (i32, i32) {
    %c0_i32 = arith.constant 0 : i32
    return %arg0, %arg2 : i32, i32
  }
  func.func @transform_1(%arg0: i32, %arg1: i32, %arg2: i32) -> (i32, i32) {
    %c0_i32 = arith.constant 0 : i32
    return %arg2, %arg1 : i32, i32
  }
  func.func @transform_2(%arg0: i32, %arg1: i32, %arg2: i32) -> (i32, i32) {
    %c0_i32 = arith.constant 0 : i32
    %c0_i32_0 = arith.constant 0 : i32
    return %c0_i32, %arg1 : i32, i32
  }
  func.func @transform_3(%arg0: i32, %arg1: i32, %arg2: i32) -> (i32, i32) {
    %c0_i32 = arith.constant 0 : i32
    return %arg0, %arg1 : i32, i32
  }
}

module attributes {stable_mosaic.version = 11 : i64} {
  func.func @_matmul_kernel(%arg0: i32, %arg1: i32, %arg2: i32, %arg3: memref<128x128xbf16, #tpu.memory_space<vmem>>, %arg4: memref<128x128xbf16, #tpu.memory_space<vmem>>, %arg5: memref<1x128xf32, #tpu.memory_space<vmem>>, %arg6: memref<128x128xf32, #tpu.memory_space<vmem>>, %arg7: memref<128x128xf32, #tpu.memory_space<vmem>>) attributes {dimension_semantics = [#tpu.dimension_semantics<parallel>, #tpu.dimension_semantics<parallel>, #tpu.dimension_semantics<arbitrary>], iteration_bounds = array<i64: 1, 1, 1>, scalar_prefetch = 0 : i64, scratch_operands = 1 : i64, tpu.core_type = #tpu.core_type<tc>, window_params = [{transform_indices = @transform_0, window_bounds = array<i64: 128, 128>}, {transform_indices = @transform_1, window_bounds = array<i64: 128, 128>}, {transform_indices = @transform_2, window_bounds = array<i64: 1, 128>}, {transform_indices = @transform_3, window_bounds = array<i64: 128, 128>}]} {
    %c0_i32 = arith.constant 0 : i32
    %0 = arith.cmpi eq, %arg2, %c0_i32 : i32
    %1 = arith.extui %0 : i1 to i32
    %c0_i32_0 = arith.constant 0 : i32
    %2 = arith.cmpi ne, %1, %c0_i32_0 : i32
    scf.if %2 {
      %cst_10 = arith.constant 0.000000e+00 : f32
      %12 = vector.broadcast %cst_10 : f32 to vector<128x128xf32>
      %c0_11 = arith.constant 0 : index
      %c0_12 = arith.constant 0 : index
      %13 = vector.load %arg7[%c0_11, %c0_12] : memref<128x128xf32, #tpu.memory_space<vmem>>, vector<128x128xf32>
      tpu.vector_store %arg7[%c0_11, %c0_12], %12 {strides = array<i32>} : memref<128x128xf32, #tpu.memory_space<vmem>>, vector<128x128xf32>,
    } else {
    }
    %c0 = arith.constant 0 : index
    %c0_1 = arith.constant 0 : index
    %3 = vector.load %arg7[%c0, %c0_1] : memref<128x128xf32, #tpu.memory_space<vmem>>, vector<128x128xf32>
    %c0_2 = arith.constant 0 : index
    %c0_3 = arith.constant 0 : index
    %4 = vector.load %arg3[%c0_2, %c0_3] : memref<128x128xbf16, #tpu.memory_space<vmem>>, vector<128x128xbf16>
    %c0_4 = arith.constant 0 : index
    %c0_5 = arith.constant 0 : index
    %5 = vector.load %arg4[%c0_4, %c0_5] : memref<128x128xbf16, #tpu.memory_space<vmem>>, vector<128x128xbf16>
    %cst = arith.constant dense<0.000000e+00> : vector<128x128xf32>
    %6 = tpu.matmul %4, %5, %cst {dimension_numbers = #tpu.dot_dimension_numbers<[1], [0], [0], [1], [0, 0, 1, 1], [], []>} : vector<128x128xbf16>, vector<128x128xbf16>, vector<128x128xf32> -> vector<128x128xf32>
    %7 = arith.addf %3, %6 : vector<128x128xf32>
    %c0_6 = arith.constant 0 : index
    %c0_7 = arith.constant 0 : index
    %8 = vector.load %arg7[%c0_6, %c0_7] : memref<128x128xf32, #tpu.memory_space<vmem>>, vector<128x128xf32>
    tpu.vector_store %arg7[%c0_6, %c0_7], %7 {strides = array<i32>} : memref<128x128xf32, #tpu.memory_space<vmem>>, vector<128x128xf32>,
    %c0_i32_8 = arith.constant 0 : i32
    %9 = arith.cmpi eq, %arg2, %c0_i32_8 : i32
    %10 = arith.extui %9 : i1 to i32
    %c0_i32_9 = arith.constant 0 : i32
    %11 = arith.cmpi ne, %10, %c0_i32_9 : i32
    scf.if %11 {
      %c0_10 = arith.constant 0 : index
      %c0_11 = arith.constant 0 : index
      %12 = vector.load %arg7[%c0_10, %c0_11] : memref<128x128xf32, #tpu.memory_space<vmem>>, vector<128x128xf32>
      %c0_12 = arith.constant 0 : index
      %c0_13 = arith.constant 0 : index
      %13 = vector.load %arg5[%c0_12, %c0_13] : memref<1x128xf32, #tpu.memory_space<vmem>>, vector<1x128xf32>
      %14 = vector.broadcast %13 : vector<1x128xf32> to vector<128x128xf32>
      %15 = arith.addf %12, %14 : vector<128x128xf32>
      %c0_14 = arith.constant 0 : index
      %c0_15 = arith.constant 0 : index
      %16 = vector.load %arg6[%c0_14, %c0_15] : memref<128x128xf32, #tpu.memory_space<vmem>>, vector<128x128xf32>
      tpu.vector_store %arg6[%c0_14, %c0_15], %15 {strides = array<i32>} : memref<128x128xf32, #tpu.memory_space<vmem>>, vector<128x128xf32>,
    } else {
    }
    return
  }
  func.func @transform_0(%arg0: i32, %arg1: i32, %arg2: i32) -> (i32, i32) {
    %c0_i32 = arith.constant 0 : i32
    return %arg0, %arg2 : i32, i32
  }
  func.func @transform_1(%arg0: i32, %arg1: i32, %arg2: i32) -> (i32, i32) {
    %c0_i32 = arith.constant 0 : i32
    return %arg2, %arg1 : i32, i32
  }
  func.func @transform_2(%arg0: i32, %arg1: i32, %arg2: i32) -> (i32, i32) {
    %c0_i32 = arith.constant 0 : i32
    %c0_i32_0 = arith.constant 0 : i32
    return %c0_i32, %arg1 : i32, i32
  }
  func.func @transform_3(%arg0: i32, %arg1: i32, %arg2: i32) -> (i32, i32) {
    %c0_i32 = arith.constant 0 : i32
    return %arg0, %arg1 : i32, i32
  }
}

module attributes {stable_mosaic.version = 11 : i64} {
  func.func @_matmul_kernel(%arg0: i32, %arg1: i32, %arg2: i32, %arg3: memref<256x128xbf16, #tpu.memory_space<vmem>>, %arg4: memref<128x128xbf16, #tpu.memory_space<vmem>>, %arg5: memref<1x128xf32, #tpu.memory_space<vmem>>, %arg6: memref<256x128xf32, #tpu.memory_space<vmem>>, %arg7: memref<256x128xf32, #tpu.memory_space<vmem>>) attributes {dimension_semantics = [#tpu.dimension_semantics<parallel>, #tpu.dimension_semantics<parallel>, #tpu.dimension_semantics<arbitrary>], iteration_bounds = array<i64: 2, 1, 1>, scalar_prefetch = 0 : i64, scratch_operands = 1 : i64, tpu.core_type = #tpu.core_type<tc>, window_params = [{transform_indices = @transform_0, window_bounds = array<i64: 256, 128>}, {transform_indices = @transform_1, window_bounds = array<i64: 128, 128>}, {transform_indices = @transform_2, window_bounds = array<i64: 1, 128>}, {transform_indices = @transform_3, window_bounds = array<i64: 256, 128>}]} {
    %c0_i32 = arith.constant 0 : i32
    %0 = arith.cmpi eq, %arg2, %c0_i32 : i32
    %1 = arith.extui %0 : i1 to i32
    %c0_i32_0 = arith.constant 0 : i32
    %2 = arith.cmpi ne, %1, %c0_i32_0 : i32
    scf.if %2 {
      %cst_10 = arith.constant 0.000000e+00 : f32
      %12 = vector.broadcast %cst_10 : f32 to vector<256x128xf32>
      %c0_11 = arith.constant 0 : index
      %c0_12 = arith.constant 0 : index
      %13 = vector.load %arg7[%c0_11, %c0_12] : memref<256x128xf32, #tpu.memory_space<vmem>>, vector<256x128xf32>
      tpu.vector_store %arg7[%c0_11, %c0_12], %12 {strides = array<i32>} : memref<256x128xf32, #tpu.memory_space<vmem>>, vector<256x128xf32>,
    } else {
    }
    %c0 = arith.constant 0 : index
    %c0_1 = arith.constant 0 : index
    %3 = vector.load %arg7[%c0, %c0_1] : memref<256x128xf32, #tpu.memory_space<vmem>>, vector<256x128xf32>
    %c0_2 = arith.constant 0 : index
    %c0_3 = arith.constant 0 : index
    %4 = vector.load %arg3[%c0_2, %c0_3] : memref<256x128xbf16, #tpu.memory_space<vmem>>, vector<256x128xbf16>
    %c0_4 = arith.constant 0 : index
    %c0_5 = arith.constant 0 : index
    %5 = vector.load %arg4[%c0_4, %c0_5] : memref<128x128xbf16, #tpu.memory_space<vmem>>, vector<128x128xbf16>
    %cst = arith.constant dense<0.000000e+00> : vector<256x128xf32>
    %6 = tpu.matmul %4, %5, %cst {dimension_numbers = #tpu.dot_dimension_numbers<[1], [0], [0], [1], [0, 0, 1, 1], [], []>} : vector<256x128xbf16>, vector<128x128xbf16>, vector<256x128xf32> -> vector<256x128xf32>
    %7 = arith.addf %3, %6 : vector<256x128xf32>
    %c0_6 = arith.constant 0 : index
    %c0_7 = arith.constant 0 : index
    %8 = vector.load %arg7[%c0_6, %c0_7] : memref<256x128xf32, #tpu.memory_space<vmem>>, vector<256x128xf32>
    tpu.vector_store %arg7[%c0_6, %c0_7], %7 {strides = array<i32>} : memref<256x128xf32, #tpu.memory_space<vmem>>, vector<256x128xf32>,
    %c0_i32_8 = arith.constant 0 : i32
    %9 = arith.cmpi eq, %arg2, %c0_i32_8 : i32
    %10 = arith.extui %9 : i1 to i32
    %c0_i32_9 = arith.constant 0 : i32
    %11 = arith.cmpi ne, %10, %c0_i32_9 : i32
    scf.if %11 {
      %c0_10 = arith.constant 0 : index
      %c0_11 = arith.constant 0 : index
      %12 = vector.load %arg7[%c0_10, %c0_11] : memref<256x128xf32, #tpu.memory_space<vmem>>, vector<256x128xf32>
      %c0_12 = arith.constant 0 : index
      %c0_13 = arith.constant 0 : index
      %13 = vector.load %arg5[%c0_12, %c0_13] : memref<1x128xf32, #tpu.memory_space<vmem>>, vector<1x128xf32>
      %14 = vector.broadcast %13 : vector<1x128xf32> to vector<256x128xf32>
      %15 = arith.addf %12, %14 : vector<256x128xf32>
      %c0_14 = arith.constant 0 : index
      %c0_15 = arith.constant 0 : index
      %16 = vector.load %arg6[%c0_14, %c0_15] : memref<256x128xf32, #tpu.memory_space<vmem>>, vector<256x128xf32>
      tpu.vector_store %arg6[%c0_14, %c0_15], %15 {strides = array<i32>} : memref<256x128xf32, #tpu.memory_space<vmem>>, vector<256x128xf32>,
    } else {
    }
    return
  }
  func.func @transform_0(%arg0: i32, %arg1: i32, %arg2: i32) -> (i32, i32) {
    %c0_i32 = arith.constant 0 : i32
    return %arg0, %arg2 : i32, i32
  }
  func.func @transform_1(%arg0: i32, %arg1: i32, %arg2: i32) -> (i32, i32) {
    %c0_i32 = arith.constant 0 : i32
    return %arg2, %arg1 : i32, i32
  }
  func.func @transform_2(%arg0: i32, %arg1: i32, %arg2: i32) -> (i32, i32) {
    %c0_i32 = arith.constant 0 : i32
    %c0_i32_0 = arith.constant 0 : i32
    return %c0_i32, %arg1 : i32, i32
  }
  func.func @transform_3(%arg0: i32, %arg1: i32, %arg2: i32) -> (i32, i32) {
    %c0_i32 = arith.constant 0 : i32
    return %arg0, %arg1 : i32, i32
  }
}

module attributes {stable_mosaic.version = 11 : i64} {
  func.func @_flash_attn_kernel(%arg0: i32, %arg1: i32, %arg2: i32, %arg3: memref<1x256x8xbf16, #tpu.memory_space<vmem>>, %arg4: memref<1x64x8xbf16, #tpu.memory_space<vmem>>, %arg5: memref<1x64x8xbf16, #tpu.memory_space<vmem>>, %arg6: memref<1x256x8xf32, #tpu.memory_space<vmem>>, %arg7: memref<256x1xf32, #tpu.memory_space<vmem>>, %arg8: memref<256x1xf32, #tpu.memory_space<vmem>>, %arg9: memref<256x8xf32, #tpu.memory_space<vmem>>) attributes {dimension_semantics = [#tpu.dimension_semantics<parallel>, #tpu.dimension_semantics<parallel>, #tpu.dimension_semantics<arbitrary>], iteration_bounds = array<i64: 16, 1, 1>, scalar_prefetch = 0 : i64, scratch_operands = 3 : i64, tpu.core_type = #tpu.core_type<tc>, window_params = [{transform_indices = @transform_0, window_bounds = array<i64: 1, 256, 8>}, {transform_indices = @transform_1, window_bounds = array<i64: 1, 64, 8>}, {transform_indices = @transform_2, window_bounds = array<i64: 1, 64, 8>}, {transform_indices = @transform_3, window_bounds = array<i64: 1, 256, 8>}]} {
    %c0_i32 = arith.constant 0 : i32
    %0 = arith.cmpi eq, %arg2, %c0_i32 : i32
    %1 = arith.extui %0 : i1 to i32
    %c0_i32_0 = arith.constant 0 : i32
    %2 = arith.cmpi ne, %1, %c0_i32_0 : i32
    scf.if %2 {
      %cst_27 = arith.constant 0xFF800000 : f32
      %38 = vector.broadcast %cst_27 : f32 to vector<256x1xf32>
      %c0_28 = arith.constant 0 : index
      %c0_29 = arith.constant 0 : index
      %39 = vector.load %arg7[%c0_28, %c0_29] : memref<256x1xf32, #tpu.memory_space<vmem>>, vector<256x1xf32>
      tpu.vector_store %arg7[%c0_28, %c0_29], %38 {strides = array<i32>} : memref<256x1xf32, #tpu.memory_space<vmem>>, vector<256x1xf32>,
      %cst_30 = arith.constant 0.000000e+00 : f32
      %40 = vector.broadcast %cst_30 : f32 to vector<256x1xf32>
      %c0_31 = arith.constant 0 : index
      %c0_32 = arith.constant 0 : index
      %41 = vector.load %arg8[%c0_31, %c0_32] : memref<256x1xf32, #tpu.memory_space<vmem>>, vector<256x1xf32>
      tpu.vector_store %arg8[%c0_31, %c0_32], %40 {strides = array<i32>} : memref<256x1xf32, #tpu.memory_space<vmem>>, vector<256x1xf32>,
      %cst_33 = arith.constant 0.000000e+00 : f32
      %42 = vector.broadcast %cst_33 : f32 to vector<256x8xf32>
      %c0_34 = arith.constant 0 : index
      %c0_35 = arith.constant 0 : index
      %43 = vector.load %arg9[%c0_34, %c0_35] : memref<256x8xf32, #tpu.memory_space<vmem>>, vector<256x8xf32>
      tpu.vector_store %arg9[%c0_34, %c0_35], %42 {strides = array<i32>} : memref<256x8xf32, #tpu.memory_space<vmem>>, vector<256x8xf32>,
    } else {
    }
    %c0 = arith.constant 0 : index
    %c0_1 = arith.constant 0 : index
    %c0_2 = arith.constant 0 : index
    %3 = vector.load %arg3[%c0, %c0_1, %c0_2] : memref<1x256x8xbf16, #tpu.memory_space<vmem>>, vector<1x256x8xbf16>
    %4 = vector.shape_cast %3 : vector<1x256x8xbf16> to vector<256x8xbf16>
    %c0_3 = arith.constant 0 : index
    %c0_4 = arith.constant 0 : index
    %c0_5 = arith.constant 0 : index
    %5 = vector.load %arg4[%c0_3, %c0_4, %c0_5] : memref<1x64x8xbf16, #tpu.memory_space<vmem>>, vector<1x64x8xbf16>
    %6 = vector.shape_cast %5 : vector<1x64x8xbf16> to vector<64x8xbf16>
    %c0_6 = arith.constant 0 : index
    %c0_7 = arith.constant 0 : index
    %c0_8 = arith.constant 0 : index
    %7 = vector.load %arg5[%c0_6, %c0_7, %c0_8] : memref<1x64x8xbf16, #tpu.memory_space<vmem>>, vector<1x64x8xbf16>
    %8 = vector.shape_cast %7 : vector<1x64x8xbf16> to vector<64x8xbf16>
    %cst = arith.constant dense<0.000000e+00> : vector<256x64xf32>
    %9 = tpu.matmul %4, %6, %cst {dimension_numbers = #tpu.dot_dimension_numbers<[1], [1], [0], [0], [0, 0, 1, 0], [], []>} : vector<256x8xbf16>, vector<64x8xbf16>, vector<256x64xf32> -> vector<256x64xf32>
    %cst_9 = arith.constant 0.353553385 : f32
    %10 = vector.broadcast %cst_9 : f32 to vector<256x64xf32>
    %11 = arith.mulf %9, %10 : vector<256x64xf32>
    %c0_10 = arith.constant 0 : index
    %c0_11 = arith.constant 0 : index
    %12 = vector.load %arg7[%c0_10, %c0_11] : memref<256x1xf32, #tpu.memory_space<vmem>>, vector<256x1xf32>
    %cst_12 = arith.constant dense<0xFF800000> : vector<256xf32>
    %13 = vector.multi_reduction <maximumf>, %11, %cst_12 [1] : vector<256x64xf32> to vector<256xf32>
    %14 = vector.shape_cast %13 : vector<256xf32> to vector<256x1xf32>
    %15 = arith.maximumf %12, %14 : vector<256x1xf32>
    %16 = arith.subf %12, %15 : vector<256x1xf32>
    %17 = math.exp %16 : vector<256x1xf32>
    %18 = vector.broadcast %15 : vector<256x1xf32> to vector<256x64xf32>
    %19 = arith.subf %11, %18 : vector<256x64xf32>
    %20 = math.exp %19 : vector<256x64xf32>
    %c0_13 = arith.constant 0 : index
    %c0_14 = arith.constant 0 : index
    %21 = vector.load %arg8[%c0_13, %c0_14] : memref<256x1xf32, #tpu.memory_space<vmem>>, vector<256x1xf32>
    %22 = arith.mulf %17, %21 : vector<256x1xf32>
    %cst_15 = arith.constant dense<0.000000e+00> : vector<256xf32>
    %23 = vector.multi_reduction <add>, %20, %cst_15 [1] : vector<256x64xf32> to vector<256xf32>
    %24 = vector.shape_cast %23 : vector<256xf32> to vector<256x1xf32>
    %25 = arith.addf %22, %24 : vector<256x1xf32>
    %c0_16 = arith.constant 0 : index
    %c0_17 = arith.constant 0 : index
    %26 = vector.load %arg8[%c0_16, %c0_17] : memref<256x1xf32, #tpu.memory_space<vmem>>, vector<256x1xf32>
    tpu.vector_store %arg8[%c0_16, %c0_17], %25 {strides = array<i32>} : memref<256x1xf32, #tpu.memory_space<vmem>>, vector<256x1xf32>,
    %c0_18 = arith.constant 0 : index
    %c0_19 = arith.constant 0 : index
    %27 = vector.load %arg9[%c0_18, %c0_19] : memref<256x8xf32, #tpu.memory_space<vmem>>, vector<256x8xf32>
    %28 = vector.broadcast %17 : vector<256x1xf32> to vector<256x8xf32>
    %29 = arith.mulf %28, %27 : vector<256x8xf32>
    %30 = arith.truncf %20 : vector<256x64xf32> to vector<256x64xbf16>
    %cst_20 = arith.constant dense<0.000000e+00> : vector<256x8xf32>
    %31 = tpu.matmul %30, %8, %cst_20 {dimension_numbers = #tpu.dot_dimension_numbers<[1], [0], [0], [1], [0, 0, 1, 1], [], []>} : vector<256x64xbf16>, vector<64x8xbf16>, vector<256x8xf32> -> vector<256x8xf32>
    %32 = arith.addf %29, %31 : vector<256x8xf32>
    %c0_21 = arith.constant 0 : index
    %c0_22 = arith.constant 0 : index
    %33 = vector.load %arg9[%c0_21, %c0_22] : memref<256x8xf32, #tpu.memory_space<vmem>>, vector<256x8xf32>
    tpu.vector_store %arg9[%c0_21, %c0_22], %32 {strides = array<i32>} : memref<256x8xf32, #tpu.memory_space<vmem>>, vector<256x8xf32>,
    %c0_23 = arith.constant 0 : index
    %c0_24 = arith.constant 0 : index
    %34 = vector.load %arg7[%c0_23, %c0_24] : memref<256x1xf32, #tpu.memory_space<vmem>>, vector<256x1xf32>
    tpu.vector_store %arg7[%c0_23, %c0_24], %15 {strides = array<i32>} : memref<256x1xf32, #tpu.memory_space<vmem>>, vector<256x1xf32>,
    %c0_i32_25 = arith.constant 0 : i32
    %35 = arith.cmpi eq, %arg2, %c0_i32_25 : i32
    %36 = arith.extui %35 : i1 to i32
    %c0_i32_26 = arith.constant 0 : i32
    %37 = arith.cmpi ne, %36, %c0_i32_26 : i32
    scf.if %37 {
      %c0_27 = arith.constant 0 : index
      %c0_28 = arith.constant 0 : index
      %38 = vector.load %arg8[%c0_27, %c0_28] : memref<256x1xf32, #tpu.memory_space<vmem>>, vector<256x1xf32>
      %39 = tpu.reciprocal %38 {approx = true} : vector<256x1xf32> -> vector<256x1xf32>
      %c0_29 = arith.constant 0 : index
      %c0_30 = arith.constant 0 : index
      %40 = vector.load %arg9[%c0_29, %c0_30] : memref<256x8xf32, #tpu.memory_space<vmem>>, vector<256x8xf32>
      %41 = vector.broadcast %39 : vector<256x1xf32> to vector<256x8xf32>
      %42 = arith.mulf %40, %41 : vector<256x8xf32>
      %c0_31 = arith.constant 0 : index
      %c0_32 = arith.constant 0 : index
      %c0_33 = arith.constant 0 : index
      %43 = vector.load %arg6[%c0_31, %c0_32, %c0_33] : memref<1x256x8xf32, #tpu.memory_space<vmem>>, vector<1x256x8xf32>
      %44 = vector.shape_cast %43 : vector<1x256x8xf32> to vector<256x8xf32>
      %45 = vector.shape_cast %42 : vector<256x8xf32> to vector<1x256x8xf32>
      tpu.vector_store %arg6[%c0_31, %c0_32, %c0_33], %45 {strides = array<i32>} : memref<1x256x8xf32, #tpu.memory_space<vmem>>, vector<1x256x8xf32>,
    } else {
    }
    return
  }
  func.func @transform_0(%arg0: i32, %arg1: i32, %arg2: i32) -> (i32, i32, i32) {
    %c0_i32 = arith.constant 0 : i32
    %c0_i32_0 = arith.constant 0 : i32
    return %arg0, %arg1, %c0_i32 : i32, i32, i32
  }
  func.func @transform_1(%arg0: i32, %arg1: i32, %arg2: i32) -> (i32, i32, i32) {
    %c0_i32 = arith.constant 0 : i32
    %c0_i32_0 = arith.constant 0 : i32
    return %arg0, %arg2, %c0_i32 : i32, i32, i32
  }
  func.func @transform_2(%arg0: i32, %arg1: i32, %arg2: i32) -> (i32, i32, i32) {
    %c0_i32 = arith.constant 0 : i32
    %c0_i32_0 = arith.constant 0 : i32
    return %arg0, %arg2, %c0_i32 : i32, i32, i32
  }
  func.func @transform_3(%arg0: i32, %arg1: i32, %arg2: i32) -> (i32, i32, i32) {
    %c0_i32 = arith.constant 0 : i32
    %c0_i32_0 = arith.constant 0 : i32
    return %arg0, %arg1, %c0_i32 : i32, i32, i32
  }
}

module attributes {stable_mosaic.version = 11 : i64} {
  func.func @_matmul_kernel(%arg0: i32, %arg1: i32, %arg2: i32, %arg3: memref<256x128xbf16, #tpu.memory_space<vmem>>, %arg4: memref<128x128xbf16, #tpu.memory_space<vmem>>, %arg5: memref<1x128xf32, #tpu.memory_space<vmem>>, %arg6: memref<256x128xf32, #tpu.memory_space<vmem>>, %arg7: memref<256x128xf32, #tpu.memory_space<vmem>>) attributes {dimension_semantics = [#tpu.dimension_semantics<parallel>, #tpu.dimension_semantics<parallel>, #tpu.dimension_semantics<arbitrary>], iteration_bounds = array<i64: 2, 1, 1>, scalar_prefetch = 0 : i64, scratch_operands = 1 : i64, tpu.core_type = #tpu.core_type<tc>, window_params = [{transform_indices = @transform_0, window_bounds = array<i64: 256, 128>}, {transform_indices = @transform_1, window_bounds = array<i64: 128, 128>}, {transform_indices = @transform_2, window_bounds = array<i64: 1, 128>}, {transform_indices = @transform_3, window_bounds = array<i64: 256, 128>}]} {
    %c0_i32 = arith.constant 0 : i32
    %0 = arith.cmpi eq, %arg2, %c0_i32 : i32
    %1 = arith.extui %0 : i1 to i32
    %c0_i32_0 = arith.constant 0 : i32
    %2 = arith.cmpi ne, %1, %c0_i32_0 : i32
    scf.if %2 {
      %cst_10 = arith.constant 0.000000e+00 : f32
      %12 = vector.broadcast %cst_10 : f32 to vector<256x128xf32>
      %c0_11 = arith.constant 0 : index
      %c0_12 = arith.constant 0 : index
      %13 = vector.load %arg7[%c0_11, %c0_12] : memref<256x128xf32, #tpu.memory_space<vmem>>, vector<256x128xf32>
      tpu.vector_store %arg7[%c0_11, %c0_12], %12 {strides = array<i32>} : memref<256x128xf32, #tpu.memory_space<vmem>>, vector<256x128xf32>,
    } else {
    }
    %c0 = arith.constant 0 : index
    %c0_1 = arith.constant 0 : index
    %3 = vector.load %arg7[%c0, %c0_1] : memref<256x128xf32, #tpu.memory_space<vmem>>, vector<256x128xf32>
    %c0_2 = arith.constant 0 : index
    %c0_3 = arith.constant 0 : index
    %4 = vector.load %arg3[%c0_2, %c0_3] : memref<256x128xbf16, #tpu.memory_space<vmem>>, vector<256x128xbf16>
    %c0_4 = arith.constant 0 : index
    %c0_5 = arith.constant 0 : index
    %5 = vector.load %arg4[%c0_4, %c0_5] : memref<128x128xbf16, #tpu.memory_space<vmem>>, vector<128x128xbf16>
    %cst = arith.constant dense<0.000000e+00> : vector<256x128xf32>
    %6 = tpu.matmul %4, %5, %cst {dimension_numbers = #tpu.dot_dimension_numbers<[1], [0], [0], [1], [0, 0, 1, 1], [], []>} : vector<256x128xbf16>, vector<128x128xbf16>, vector<256x128xf32> -> vector<256x128xf32>
    %7 = arith.addf %3, %6 : vector<256x128xf32>
    %c0_6 = arith.constant 0 : index
    %c0_7 = arith.constant 0 : index
    %8 = vector.load %arg7[%c0_6, %c0_7] : memref<256x128xf32, #tpu.memory_space<vmem>>, vector<256x128xf32>
    tpu.vector_store %arg7[%c0_6, %c0_7], %7 {strides = array<i32>} : memref<256x128xf32, #tpu.memory_space<vmem>>, vector<256x128xf32>,
    %c0_i32_8 = arith.constant 0 : i32
    %9 = arith.cmpi eq, %arg2, %c0_i32_8 : i32
    %10 = arith.extui %9 : i1 to i32
    %c0_i32_9 = arith.constant 0 : i32
    %11 = arith.cmpi ne, %10, %c0_i32_9 : i32
    scf.if %11 {
      %c0_10 = arith.constant 0 : index
      %c0_11 = arith.constant 0 : index
      %12 = vector.load %arg7[%c0_10, %c0_11] : memref<256x128xf32, #tpu.memory_space<vmem>>, vector<256x128xf32>
      %c0_12 = arith.constant 0 : index
      %c0_13 = arith.constant 0 : index
      %13 = vector.load %arg5[%c0_12, %c0_13] : memref<1x128xf32, #tpu.memory_space<vmem>>, vector<1x128xf32>
      %14 = vector.broadcast %13 : vector<1x128xf32> to vector<256x128xf32>
      %15 = arith.addf %12, %14 : vector<256x128xf32>
      %c0_14 = arith.constant 0 : index
      %c0_15 = arith.constant 0 : index
      %16 = vector.load %arg6[%c0_14, %c0_15] : memref<256x128xf32, #tpu.memory_space<vmem>>, vector<256x128xf32>
      tpu.vector_store %arg6[%c0_14, %c0_15], %15 {strides = array<i32>} : memref<256x128xf32, #tpu.memory_space<vmem>>, vector<256x128xf32>,
    } else {
    }
    return
  }
  func.func @transform_0(%arg0: i32, %arg1: i32, %arg2: i32) -> (i32, i32) {
    %c0_i32 = arith.constant 0 : i32
    return %arg0, %arg2 : i32, i32
  }
  func.func @transform_1(%arg0: i32, %arg1: i32, %arg2: i32) -> (i32, i32) {
    %c0_i32 = arith.constant 0 : i32
    return %arg2, %arg1 : i32, i32
  }
  func.func @transform_2(%arg0: i32, %arg1: i32, %arg2: i32) -> (i32, i32) {
    %c0_i32 = arith.constant 0 : i32
    %c0_i32_0 = arith.constant 0 : i32
    return %c0_i32, %arg1 : i32, i32
  }
  func.func @transform_3(%arg0: i32, %arg1: i32, %arg2: i32) -> (i32, i32) {
    %c0_i32 = arith.constant 0 : i32
    return %arg0, %arg1 : i32, i32
  }
}

</mosaic_0001>

<bundles_post_ra>
// kernel: efficient_mha_forward.7
= control target key start
LH: loop header
LB: loop body
LE: loop exit
PB: predicated region body
PF: predicated region fallthrough
CT: control target
= control target key end

     0   :  { %8 = vsyncpa [#allocation3], 0  ;;  %s740_s0 = inlined_call_operand.vmem [shape: f32[128,64], index: 0, kind: input, shape index: {}]   ;;  %s741_s1 = inlined_call_operand.hbm [shape: f32[1,64], index: 1, kind: input, shape index: {}]   ;;  %s742_s2 = inlined_call_operand.hbm [shape: f32[1,64], index: 2, kind: input, shape index: {}]   ;;  %s743_s3 = inlined_call_operand.vmem [shape: f32[128,64], index: 3, kind: output, shape index: {}]  }
   0x1   :  { %9 = vsyncpa [#allocation5], 0  ;;  %s412_s12 = smov [#allocation2]   ;;  %s413_s14 = smov [#allocation4]  }
   0x2   :  { %s18_s13 = sshll.u32 %s412_s12, 4  ;;  %s28_s15 = sshll.u32 %s413_s14, 4  ;;  %s19_s13 = int_to_ptr.vmem [resolvable:$true] %s18_s13  ;;  %s29_s15 = int_to_ptr.vmem [resolvable:$true] %s28_s15 }
   0x3   :  { %s376_s16 = scalar_lea.vmem %s19_s13, 16  ;;  %s380_s17 = scalar_lea.vmem %s19_s13, 32 }
   0x4   :  { %p377_p0 = scmp.ne.s32.totalorder %s19_s13, %s376_s16  ;;  %p381_p1 = scmp.lt.s32.totalorder %s19_s13, %s19_s13 }
   0x5   :  { %p382_p2 = scmp.lt.s32.totalorder %s380_s17, %s376_s16 }
   0x7   :  { %p383_p3 = por %p382_p2, %p381_p1 }
   0x9   :  { %p384_p4 = pnand %p383_p3, %p377_p0 }
   0xb   :  { %387 = shalt.err (!%p384_p4)
}
   0xc   :  { %21 = dma.hbm_to_vmem [thread:$0]  %s741_s1, 16, %s19_s13, [#allocation3]  }
   0xd   :  { %s396_s20 = scalar_lea.vmem %s29_s15, 16  ;;  %s400_s21 = scalar_lea.vmem %s29_s15, 32 }
   0xe   :  { %p397_p5 = scmp.ne.s32.totalorder %s29_s15, %s396_s20  ;;  %p401_p6 = scmp.lt.s32.totalorder %s29_s15, %s29_s15 }
   0xf   :  { %p402_p7 = scmp.lt.s32.totalorder %s400_s21, %s396_s20 }
  0x11   :  { %p403_p8 = por %p402_p7, %p401_p6 }
  0x13   :  { %p404_p9 = pnand %p403_p8, %p397_p5 }
  0x15   :  { %407 = shalt.err (!%p404_p9)
}
  0x16   :  { %31 = dma.hbm_to_vmem [thread:$0]  %s742_s2, 16, %s29_s15, [#allocation5]  }
  0x17   :  { %408 = dma.done.wait [#allocation3], 16  }
  0x18   :  { %409 = vsyncadd [#allocation3], 4294967280 }
  0x19   :  { %410 = dma.done.wait [#allocation5], 16  }
  0x1a   :  { %411 = vsyncadd [#allocation5], 4294967280  ;;  %vm54_vm0 = vcmask 523264   ;;  %v38_v0 = vld [vmem:[%s740_s0] sm:$0xff]  ;;  %v40_v1 = vld [vmem:[%s740_s0 + $0x10] sm:$0xff] }
  0x1b   :  { %v39_v2 = vld [vmem:[%s740_s0 + $0x8] sm:$0xff]  ;;  %v55_v3 = vsel %vm54_vm0, %v38_v0, 0.0  ;;  %v61_v4 = vsel %vm54_vm0, %v40_v1, 0.0  ;;  %v41_v5 = vld [vmem:[%s740_s0 + $0x18] sm:$0xff]  ;;  %v42_v8 = vld [vmem:[%s740_s0 + $0x20] sm:$0xff] }
  0x1c   :  { %56 = vadd.xlane.f32.xlu0 %v55_v3  ;;  %62 = vadd.xlane.f32.xlu1 %v61_v4  ;;  %v58_v6 = vsel %vm54_vm0, %v39_v2, 0.0  ;;  %v64_v7 = vsel %vm54_vm0, %v41_v5, 0.0  ;;  %v43_v9 = vld [vmem:[%s740_s0 + $0x28] sm:$0xff]  ;;  %v67_v10 = vsel %vm54_vm0, %v42_v8, 0.0  ;;  %v467_v12 = vld [vmem:[%s740_s0 + $0x30] sm:$0xff]  ;;  %v472_v13 = vld [vmem:[%s740_s0 + $0x38] sm:$0xff] }
  0x1d   :  { %v70_v11 = vsel %vm54_vm0, %v43_v9, 0.0  ;;  %v73_v14 = vsel %vm54_vm0, %v467_v12, 0.0  ;;  %v76_v15 = vsel %vm54_vm0, %v472_v13, 0.0  ;;  %v481_v16 = vld [vmem:[%s740_s0 + $0x40] sm:$0xff]  ;;  %v486_v17 = vld [vmem:[%s740_s0 + $0x48] sm:$0xff]  ;;  %v495_v20 = vld [vmem:[%s740_s0 + $0x50] sm:$0xff] }
  0x1e   :  { %v79_v18 = vsel %vm54_vm0, %v481_v16, 0.0  ;;  %v82_v19 = vsel %vm54_vm0, %v486_v17, 0.0  ;;  %v500_v21 = vld [vmem:[%s740_s0 + $0x58] sm:$0xff]  ;;  %v85_v22 = vsel %vm54_vm0, %v495_v20, 0.0  ;;  %v509_v24 = vld [vmem:[%s740_s0 + $0x60] sm:$0xff]  ;;  %v514_v25 = vld [vmem:[%s740_s0 + $0x68] sm:$0xff] }
  0x1f   :  { %v88_v23 = vsel %vm54_vm0, %v500_v21, 0.0  ;;  %v91_v26 = vsel %vm54_vm0, %v509_v24, 0.0  ;;  %v94_v27 = vsel %vm54_vm0, %v514_v25, 0.0  ;;  %v523_v28 = vld [vmem:[%s740_s0 + $0x70] sm:$0xff]  ;;  %v528_v29 = vld [vmem:[%s740_s0 + $0x78] sm:$0xff] }
  0x20   :  { %59 = vadd.xlane.f32.xlu0 %v58_v6  ;;  %65 = vadd.xlane.f32.xlu1 %v64_v7  ;;  %v97_v30 = vsel %vm54_vm0, %v523_v28, 0.0  ;;  %v100_v31 = vsel %vm54_vm0, %v528_v29, 0.0 }
  0x24   :  { %68 = vadd.xlane.f32.xlu0 %v67_v10  ;;  %71 = vadd.xlane.f32.xlu1 %v70_v11 }
  0x28   :  { %74 = vadd.xlane.f32.xlu0 %v73_v14  ;;  %77 = vadd.xlane.f32.xlu1 %v76_v15 }
  0x2c   :  { %80 = vadd.xlane.f32.xlu0 %v79_v18  ;;  %83 = vadd.xlane.f32.xlu1 %v82_v19 }
  0x30   :  { %86 = vadd.xlane.f32.xlu0 %v85_v22  ;;  %89 = vadd.xlane.f32.xlu1 %v88_v23 }
  0x34   :  { %92 = vadd.xlane.f32.xlu0 %v91_v26  ;;  %95 = vadd.xlane.f32.xlu1 %v94_v27 }
  0x38   :  { %98 = vadd.xlane.f32.xlu0 %v97_v30  ;;  %101 = vadd.xlane.f32.xlu1 %v100_v31 }
  0xa5   :  { %v57_v32 = vpop.xlane.xlu0 %56  ;;  %v63_v33 = vpop.xlane.xlu1 %62 }
  0xa6   :  { %v104_v34 = vmul.f32 0.015625, %v57_v32  ;;  %v106_v35 = vmul.f32 0.015625, %v63_v33 }
  0xa8   :  { %v534_v36 = vsub.f32 %v38_v0, %v104_v34  ;;  %v536_v37 = vsub.f32 %v40_v1, %v106_v35 }
  0xa9   :  { %v60_v38 = vpop.xlane.xlu0 %59  ;;  %v66_v39 = vpop.xlane.xlu1 %65 }
  0xaa   :  { %v105_v40 = vmul.f32 0.015625, %v60_v38  ;;  %v107_v41 = vmul.f32 0.015625, %v66_v39  ;;  %v136_v42 = vmul.f32 %v534_v36, %v534_v36  ;;  %v138_v43 = vmul.f32 %v536_v37, %v536_v37 }
  0xac   :  { %v542_v44 = vsub.f32 %v39_v2, %v105_v40  ;;  %v544_v45 = vsub.f32 %v41_v5, %v107_v41  ;;  %v152_v46 = vsel %vm54_vm0, %v136_v42, 0.0  ;;  %v158_v49 = vsel %vm54_vm0, %v138_v43, 0.0 }
  0xad   :  { %153 = vadd.xlane.f32.xlu0 %v152_v46  ;;  %v69_v47 = vpop.xlane.xlu0 %68  ;;  %v72_v48 = vpop.xlane.xlu1 %71 }
  0xae   :  { %v108_v50 = vmul.f32 0.015625, %v69_v47  ;;  %v109_v51 = vmul.f32 0.015625, %v72_v48  ;;  %v137_v52 = vmul.f32 %v542_v44, %v542_v44  ;;  %v139_v53 = vmul.f32 %v544_v45, %v544_v45 }
  0xb0   :  { %v552_v54 = vsub.f32 %v42_v8, %v108_v50  ;;  %v554_v55 = vsub.f32 %v43_v9, %v109_v51  ;;  %v155_v56 = vsel %vm54_vm0, %v137_v52, 0.0  ;;  %v161_v59 = vsel %vm54_vm0, %v139_v53, 0.0 }
  0xb1   :  { %159 = vadd.xlane.f32.xlu0 %v158_v49  ;;  %156 = vadd.xlane.f32.xlu1 %v155_v56  ;;  %v75_v57 = vpop.xlane.xlu0 %74  ;;  %v78_v58 = vpop.xlane.xlu1 %77 }
  0xb2   :  { %v110_v60 = vmul.f32 0.015625, %v75_v57  ;;  %v111_v61 = vmul.f32 0.015625, %v78_v58  ;;  %v140_v62 = vmul.f32 %v552_v54, %v552_v54  ;;  %v141_v63 = vmul.f32 %v554_v55, %v554_v55 }
  0xb4   :  { %v563_v0 = vsub.f32 %v467_v12, %v110_v60  ;;  %v566_v1 = vsub.f32 %v472_v13, %v111_v61  ;;  %v164_v2 = vsel %vm54_vm0, %v140_v62, 0.0  ;;  %v167_v5 = vsel %vm54_vm0, %v141_v63, 0.0 }
  0xb5   :  { %162 = vadd.xlane.f32.xlu1 %v161_v59  ;;  %165 = vadd.xlane.f32.xlu0 %v164_v2  ;;  %v81_v3 = vpop.xlane.xlu0 %80  ;;  %v84_v4 = vpop.xlane.xlu1 %83 }
  0xb6   :  { %v112_v6 = vmul.f32 0.015625, %v81_v3  ;;  %v113_v7 = vmul.f32 0.015625, %v84_v4  ;;  %v142_v8 = vmul.f32 %v563_v0, %v563_v0  ;;  %v143_v9 = vmul.f32 %v566_v1, %v566_v1 }
  0xb8   :  { %v575_v10 = vsub.f32 %v481_v16, %v112_v6  ;;  %v578_v11 = vsub.f32 %v486_v17, %v113_v7  ;;  %v170_v12 = vsel %vm54_vm0, %v142_v8, 0.0  ;;  %v173_v15 = vsel %vm54_vm0, %v143_v9, 0.0 }
  0xb9   :  { %168 = vadd.xlane.f32.xlu1 %v167_v5  ;;  %171 = vadd.xlane.f32.xlu0 %v170_v12  ;;  %v87_v13 = vpop.xlane.xlu0 %86  ;;  %v90_v14 = vpop.xlane.xlu1 %89 }
  0xba   :  { %v114_v18 = vmul.f32 0.015625, %v87_v13  ;;  %v115_v19 = vmul.f32 0.015625, %v90_v14  ;;  %v144_v22 = vmul.f32 %v575_v10, %v575_v10  ;;  %v145_v16 = vmul.f32 %v578_v11, %v578_v11 }
  0xbc   :  { %v587_v23 = vsub.f32 %v495_v20, %v114_v18  ;;  %v590_v17 = vsub.f32 %v500_v21, %v115_v19  ;;  %v176_v26 = vsel %vm54_vm0, %v144_v22, 0.0  ;;  %v179_v31 = vsel %vm54_vm0, %v145_v16, 0.0 }
  0xbd   :  { %174 = vadd.xlane.f32.xlu1 %v173_v15  ;;  %177 = vadd.xlane.f32.xlu0 %v176_v26  ;;  %v93_v27 = vpop.xlane.xlu0 %92  ;;  %v96_v30 = vpop.xlane.xlu1 %95  ;;  %v624_v26 = vld [vmem:[#allocation2] ss:$0 sm:$0xff] }
  0xbe   :  { %v116_v32 = vmul.f32 0.015625, %v93_v27  ;;  %v117_v33 = vmul.f32 0.015625, %v96_v30  ;;  %v146_v34 = vmul.f32 %v587_v23, %v587_v23  ;;  %v147_v20 = vmul.f32 %v590_v17, %v590_v17 }
  0xc0   :  { %v599_v35 = vsub.f32 %v509_v24, %v116_v32  ;;  %v602_v21 = vsub.f32 %v514_v25, %v117_v33  ;;  %v182_v38 = vsel %vm54_vm0, %v146_v34, 0.0  ;;  %v185_v41 = vsel %vm54_vm0, %v147_v20, 0.0  ;;  %v627_v32 = vld [vmem:[#allocation4] ss:$0 sm:$0xff] }
  0xc1   :  { %180 = vadd.xlane.f32.xlu1 %v179_v31  ;;  %183 = vadd.xlane.f32.xlu0 %v182_v38  ;;  %v99_v39 = vpop.xlane.xlu0 %98  ;;  %v102_v40 = vpop.xlane.xlu1 %101 }
  0xc2   :  { %v118_v42 = vmul.f32 0.015625, %v99_v39  ;;  %v119_v43 = vmul.f32 0.015625, %v102_v40  ;;  %v148_v46 = vmul.f32 %v599_v35, %v599_v35  ;;  %v149_v24 = vmul.f32 %v602_v21, %v602_v21 }
  0xc4   :  { %v611_v47 = vsub.f32 %v523_v28, %v118_v42  ;;  %v614_v25 = vsub.f32 %v528_v29, %v119_v43  ;;  %v188_v48 = vsel %vm54_vm0, %v148_v46, 0.0  ;;  %v191_v49 = vsel %vm54_vm0, %v149_v24, 0.0 }
  0xc5   :  { %186 = vadd.xlane.f32.xlu1 %v185_v41  ;;  %189 = vadd.xlane.f32.xlu0 %v188_v48 }
  0xc6   :  { %v150_v50 = vmul.f32 %v611_v47, %v611_v47  ;;  %v151_v51 = vmul.f32 %v614_v25, %v614_v25 }
  0xc8   :  { %v194_v52 = vsel %vm54_vm0, %v150_v50, 0.0  ;;  %v197_v28 = vsel %vm54_vm0, %v151_v51, 0.0 }
  0xc9   :  { %192 = vadd.xlane.f32.xlu1 %v191_v49  ;;  %195 = vadd.xlane.f32.xlu0 %v194_v52 }
  0xcd   :  { %198 = vadd.xlane.f32.xlu1 %v197_v28 }
 0x136   :  { %v154_v29 = vpop.xlane.xlu0 %153 }
 0x137   :  { %v200_v53 = vmul.f32 0.015625, %v154_v29 }
 0x139   :  { %v216_v56 = vadd.f32 1e-05, %v200_v53 }
 0x13a   :  { %v157_v57 = vpop.xlane.xlu1 %156  ;;  %v160_v58 = vpop.xlane.xlu0 %159 }
 0x13b   :  { %336 = vrsqrt.f32 %v216_v56  ;;  %v201_v59 = vmul.f32 0.015625, %v157_v57  ;;  %v202_v60 = vmul.f32 0.015625, %v160_v58 }
 0x13d   :  { %v217_v61 = vadd.f32 1e-05, %v201_v59  ;;  %v218_v62 = vadd.f32 1e-05, %v202_v60 }
 0x13e   :  { %v163_v63 = vpop.xlane.xlu1 %162  ;;  %v166_v2 = vpop.xlane.xlu0 %165 }
 0x13f   :  { %338 = vrsqrt.f32 %v217_v61  ;;  %v203_v3 = vmul.f32 0.015625, %v163_v63  ;;  %v204_v4 = vmul.f32 0.015625, %v166_v2 }
 0x140   :  { %340 = vrsqrt.f32 %v218_v62 }
 0x141   :  { %v219_v5 = vadd.f32 1e-05, %v203_v3  ;;  %v220_v6 = vadd.f32 1e-05, %v204_v4 }
 0x142   :  { %v169_v7 = vpop.xlane.xlu1 %168  ;;  %v172_v8 = vpop.xlane.xlu0 %171 }
 0x143   :  { %342 = vrsqrt.f32 %v219_v5  ;;  %v205_v9 = vmul.f32 0.015625, %v169_v7  ;;  %v206_v12 = vmul.f32 0.015625, %v172_v8 }
 0x144   :  { %344 = vrsqrt.f32 %v220_v6 }
 0x145   :  { %v221_v13 = vadd.f32 1e-05, %v205_v9  ;;  %v222_v14 = vadd.f32 1e-05, %v206_v12 }
 0x146   :  { %v175_v15 = vpop.xlane.xlu1 %174  ;;  %v178_v18 = vpop.xlane.xlu0 %177 }
 0x147   :  { %346 = vrsqrt.f32 %v221_v13  ;;  %v207_v19 = vmul.f32 0.015625, %v175_v15  ;;  %v208_v22 = vmul.f32 0.015625, %v178_v18 }
 0x148   :  { %v337_v16 = vpop.eup %336  ;;  %348 = vrsqrt.f32 %v222_v14 }
 0x149   :  { %v248_v27 = vmul.f32 %v337_v16, %v534_v36  ;;  %v223_v30 = vadd.f32 1e-05, %v207_v19  ;;  %v224_v31 = vadd.f32 1e-05, %v208_v22 }
 0x14a   :  { %v181_v33 = vpop.xlane.xlu1 %180  ;;  %v184_v34 = vpop.xlane.xlu0 %183 }
 0x14b   :  { %v271_v20 = vmul.f32 %v624_v26, %v248_v27  ;;  %350 = vrsqrt.f32 %v223_v30  ;;  %v209_v38 = vmul.f32 0.015625, %v181_v33  ;;  %v210_v39 = vmul.f32 0.015625, %v184_v34 }
 0x14c   :  { %v339_v40 = vpop.eup %338  ;;  %352 = vrsqrt.f32 %v224_v31 }
 0x14d   :  { %v341_v41 = vpop.eup %340  ;;  %v294_v42 = vadd.f32 %v627_v32, %v271_v20  ;;  %v249_v43 = vmul.f32 %v339_v40, %v542_v44  ;;  %v225_v46 = vadd.f32 1e-05, %v209_v38  ;;  %v226_v36 = vadd.f32 1e-05, %v210_v39 }
 0x14e   :  { %v250_v24 = vmul.f32 %v341_v41, %v536_v37  ;;  %v187_v48 = vpop.xlane.xlu1 %186  ;;  %v190_v49 = vpop.xlane.xlu0 %189 }
 0x14f   :  { %310 = vst.msk [vmem:[%s743_s3] sm:$0xff] %vm54_vm0, %v294_v42  ;;  %v272_v50 = vmul.f32 %v624_v26, %v249_v43  ;;  %354 = vrsqrt.f32 %v225_v46  ;;  %v211_v51 = vmul.f32 0.015625, %v187_v48  ;;  %v212_v52 = vmul.f32 0.015625, %v190_v49 }
 0x150   :  { %v343_v28 = vpop.eup %342  ;;  %v273_v29 = vmul.f32 %v624_v26, %v250_v24  ;;  %356 = vrsqrt.f32 %v226_v36 }
 0x151   :  { %v345_v44 = vpop.eup %344  ;;  %v295_v53 = vadd.f32 %v627_v32, %v272_v50  ;;  %v251_v37 = vmul.f32 %v343_v28, %v544_v45  ;;  %v227_v56 = vadd.f32 1e-05, %v211_v51  ;;  %v228_v57 = vadd.f32 1e-05, %v212_v52 }
 0x152   :  { %v296_v58 = vadd.f32 %v627_v32, %v273_v29  ;;  %v252_v59 = vmul.f32 %v345_v44, %v552_v54  ;;  %v193_v60 = vpop.xlane.xlu1 %192  ;;  %v196_v61 = vpop.xlane.xlu0 %195 }
 0x153   :  { %311 = vst.msk [vmem:[%s743_s3 + $0x8] sm:$0xff] %vm54_vm0, %v295_v53  ;;  %v274_v62 = vmul.f32 %v624_v26, %v251_v37  ;;  %358 = vrsqrt.f32 %v227_v56  ;;  %v213_v63 = vmul.f32 0.015625, %v193_v60  ;;  %v214_v2 = vmul.f32 0.015625, %v196_v61 }
 0x154   :  { %v347_v3 = vpop.eup %346  ;;  %312 = vst.msk [vmem:[%s743_s3 + $0x10] sm:$0xff] %vm54_vm0, %v296_v58  ;;  %v275_v45 = vmul.f32 %v624_v26, %v252_v59  ;;  %360 = vrsqrt.f32 %v228_v57 }
 0x155   :  { %v349_v54 = vpop.eup %348  ;;  %v297_v4 = vadd.f32 %v627_v32, %v274_v62  ;;  %v253_v5 = vmul.f32 %v347_v3, %v554_v55  ;;  %v229_v6 = vadd.f32 1e-05, %v213_v63  ;;  %v230_v7 = vadd.f32 1e-05, %v214_v2 }
 0x156   :  { %v298_v8 = vadd.f32 %v627_v32, %v275_v45  ;;  %v254_v9 = vmul.f32 %v349_v54, %v563_v0  ;;  %v199_v12 = vpop.xlane.xlu1 %198 }
 0x157   :  { %313 = vst.msk [vmem:[%s743_s3 + $0x18] sm:$0xff] %vm54_vm0, %v297_v4  ;;  %v276_v13 = vmul.f32 %v624_v26, %v253_v5  ;;  %362 = vrsqrt.f32 %v229_v6  ;;  %v215_v14 = vmul.f32 0.015625, %v199_v12 }
 0x158   :  { %v351_v15 = vpop.eup %350  ;;  %314 = vst.msk [vmem:[%s743_s3 + $0x20] sm:$0xff] %vm54_vm0, %v298_v8  ;;  %v277_v55 = vmul.f32 %v624_v26, %v254_v9  ;;  %364 = vrsqrt.f32 %v230_v7 }
 0x159   :  { %v353_v0 = vpop.eup %352  ;;  %v299_v18 = vadd.f32 %v627_v32, %v276_v13  ;;  %v255_v19 = vmul.f32 %v351_v15, %v566_v1  ;;  %v231_v22 = vadd.f32 1e-05, %v215_v14 }
 0x15a   :  { %v300_v16 = vadd.f32 %v627_v32, %v277_v55  ;;  %v256_v27 = vmul.f32 %v353_v0, %v575_v10 }
 0x15b   :  { %315 = vst.msk [vmem:[%s743_s3 + $0x28] sm:$0xff] %vm54_vm0, %v299_v18  ;;  %v278_v30 = vmul.f32 %v624_v26, %v255_v19  ;;  %366 = vrsqrt.f32 %v231_v22 }
 0x15c   :  { %v355_v31 = vpop.eup %354  ;;  %316 = vst.msk [vmem:[%s743_s3 + $0x30] sm:$0xff] %vm54_vm0, %v300_v16  ;;  %v279_v1 = vmul.f32 %v624_v26, %v256_v27 }
 0x15d   :  { %v357_v33 = vpop.eup %356  ;;  %v301_v34 = vadd.f32 %v627_v32, %v278_v30  ;;  %v257_v10 = vmul.f32 %v355_v31, %v578_v11 }
 0x15e   :  { %v302_v20 = vadd.f32 %v627_v32, %v279_v1  ;;  %v258_v38 = vmul.f32 %v357_v33, %v587_v23 }
 0x15f   :  { %317 = vst.msk [vmem:[%s743_s3 + $0x38] sm:$0xff] %vm54_vm0, %v301_v34  ;;  %v280_v39 = vmul.f32 %v624_v26, %v257_v10 }
 0x160   :  { %v359_v40 = vpop.eup %358  ;;  %318 = vst.msk [vmem:[%s743_s3 + $0x40] sm:$0xff] %vm54_vm0, %v302_v20  ;;  %v281_v41 = vmul.f32 %v624_v26, %v258_v38 }
 0x161   :  { %v361_v11 = vpop.eup %360  ;;  %v303_v42 = vadd.f32 %v627_v32, %v280_v39  ;;  %v259_v23 = vmul.f32 %v359_v40, %v590_v17 }
 0x162   :  { %v304_v43 = vadd.f32 %v627_v32, %v281_v41  ;;  %v260_v46 = vmul.f32 %v361_v11, %v599_v35 }
 0x163   :  { %319 = vst.msk [vmem:[%s743_s3 + $0x48] sm:$0xff] %vm54_vm0, %v303_v42  ;;  %v282_v36 = vmul.f32 %v624_v26, %v259_v23 }
 0x164   :  { %v363_v24 = vpop.eup %362  ;;  %320 = vst.msk [vmem:[%s743_s3 + $0x50] sm:$0xff] %vm54_vm0, %v304_v43  ;;  %v283_v48 = vmul.f32 %v624_v26, %v260_v46 }
 0x165   :  { %v365_v17 = vpop.eup %364  ;;  %v305_v49 = vadd.f32 %v627_v32, %v282_v36  ;;  %v261_v35 = vmul.f32 %v363_v24, %v602_v21 }
 0x166   :  { %v306_v50 = vadd.f32 %v627_v32, %v283_v48  ;;  %v262_v51 = vmul.f32 %v365_v17, %v611_v47 }
 0x167   :  { %321 = vst.msk [vmem:[%s743_s3 + $0x58] sm:$0xff] %vm54_vm0, %v305_v49  ;;  %v284_v52 = vmul.f32 %v624_v26, %v261_v35 }
 0x168   :  { %v367_v28 = vpop.eup %366  ;;  %322 = vst.msk [vmem:[%s743_s3 + $0x60] sm:$0xff] %vm54_vm0, %v306_v50  ;;  %v285_v29 = vmul.f32 %v624_v26, %v262_v51 }
 0x169   :  { %v307_v21 = vadd.f32 %v627_v32, %v284_v52  ;;  %v263_v44 = vmul.f32 %v367_v28, %v614_v25 }
 0x16a   :  { %v308_v47 = vadd.f32 %v627_v32, %v285_v29 }
 0x16b   :  { %323 = vst.msk [vmem:[%s743_s3 + $0x68] sm:$0xff] %vm54_vm0, %v307_v21  ;;  %v286_v53 = vmul.f32 %v624_v26, %v263_v44 }
 0x16c   :  { %324 = vst.msk [vmem:[%s743_s3 + $0x70] sm:$0xff] %vm54_vm0, %v308_v47 }
 0x16d   :  { %v309_v37 = vadd.f32 %v627_v32, %v286_v53 }
 0x16f   :  { %325 = vst.msk [vmem:[%s743_s3 + $0x78] sm:$0xff] %vm54_vm0, %v309_v37 }
 0x170   :  { %330 = vsyncpa [#allocation3], 1 }
 0x171   :  { %331 = vsyncpa [#allocation5], 1 }

// kernel: efficient_mha_forward.6
= control target key start
LH: loop header
LB: loop body
LE: loop exit
PB: predicated region body
PF: predicated region fallthrough
CT: control target
= control target key end

     0   :  { %s804_s1 = inlined_call_operand.vmem [shape: bf16[256,128], index: 1, kind: input, shape index: {}]   ;;  %s805_s0 = inlined_call_operand.vmem [shape: bf16[128,256], index: 0, kind: input, shape index: {}]   ;;  %s806_s2 = inlined_call_operand.vmem [shape: f32[1,128], index: 2, kind: input, shape index: {}]   ;;  %s807_s3 = inlined_call_operand.vmem [shape: f32[128,128], index: 3, kind: output, shape index: {}]  }
   0x1   :  { %v579_v0 = vld [vmem:[%s804_s1 + $0x78] sm:$0xff]   ;;  %v581_v2 = vld [vmem:[%s804_s1 + $0x70] sm:$0xff]   ;;  %v583_v4 = vld [vmem:[%s804_s1 + $0x68] sm:$0xff]  }
   0x2   :  { %v580_v1 = vld [vmem:[%s804_s1 + $0x38] sm:$0xff]   ;;  %499 = vmatprep.subr.bf16.mxu0 %v579_v0  ;;  %563 = vmatprep.subr.bf16.mxu1 %v579_v0  ;;  %v582_v3 = vld [vmem:[%s804_s1 + $0x30] sm:$0xff]   ;;  %v584_v5 = vld [vmem:[%s804_s1 + $0x28] sm:$0xff]  }
   0x3   :  { %500 = vmatpush3.bf16.msra.mxu0 %v580_v1  ;;  %571 = vmatpush3.bf16.msra.mxu1 %v580_v1  ;;  %v585_v6 = vld [vmem:[%s804_s1 + $0x60] sm:$0xff]   ;;  %v587_v8 = vld [vmem:[%s804_s1 + $0x58] sm:$0xff]   ;;  %v589_v10 = vld [vmem:[%s804_s1 + $0x50] sm:$0xff]  }
   0x4   :  { %501 = vmatprep.subr.bf16.mxu0 %v581_v2  ;;  %564 = vmatprep.subr.bf16.mxu1 %v581_v2  ;;  %v586_v7 = vld [vmem:[%s804_s1 + $0x20] sm:$0xff]   ;;  %v588_v9 = vld [vmem:[%s804_s1 + $0x18] sm:$0xff]   ;;  %v590_v13 = vld [vmem:[%s804_s1 + $0x10] sm:$0xff]  }
   0x5   :  { %v597_v11 = vld [vmem:[%s805_s0 + $0x4] ss:$8 sps:$4 sm:$0xff]   ;;  %v595_v18 = vld [vmem:[%s805_s0] ss:$8 sps:$4 sm:$0xff]   ;;  %v601_v20 = vld [vmem:[%s805_s0 + $0x14] ss:$8 sps:$4 sm:$0xff]  }
   0x6   :  { %v600_v12 = vld [vmem:[%s805_s0 + $0x44] ss:$8 sps:$4 sm:$0xff]   ;;  %307 = vmatprep.mubr.bf16.mxu0 %v597_v11  ;;  %v598_v19 = vld [vmem:[%s805_s0 + $0x40] ss:$8 sps:$4 sm:$0xff]   ;;  %v603_v21 = vld [vmem:[%s805_s0 + $0x54] ss:$8 sps:$4 sm:$0xff]  }
   0x7   :  { %502 = vmatpush3.bf16.msra.mxu0 %v582_v3  ;;  %572 = vmatpush3.bf16.msra.mxu1 %v582_v3  ;;  %v591_v14 = vld [vmem:[%s804_s1 + $0x48] sm:$0xff]   ;;  %v593_v16 = vld [vmem:[%s804_s1 + $0x40] sm:$0xff]   ;;  %v605_v22 = vld [vmem:[%s805_s0 + $0x10] ss:$8 sps:$4 sm:$0xff]  }
   0x8   :  { %503 = vmatprep.subr.bf16.mxu0 %v583_v4  ;;  %565 = vmatprep.subr.bf16.mxu1 %v583_v4  ;;  %v592_v15 = vld [vmem:[%s804_s1 + $0x8] sm:$0xff]   ;;  %v594_v17 = vld [vmem:[%s804_s1] sm:$0xff]   ;;  %v606_v23 = vld [vmem:[%s805_s0 + $0x50] ss:$8 sps:$4 sm:$0xff]  }
   0x9   :  { %339 = vmatprep.mubr.bf16.mxu1 %v600_v12  ;;  %v607_v24 = vld [vmem:[%s805_s0 + $0x24] ss:$8 sps:$4 sm:$0xff]   ;;  %v611_v26 = vld [vmem:[%s805_s0 + $0x20] ss:$8 sps:$4 sm:$0xff]   ;;  %v613_v28 = vld [vmem:[%s805_s0 + $0x34] ss:$8 sps:$4 sm:$0xff]  }
   0xa   :  { %v609_v25 = vld [vmem:[%s805_s0 + $0x64] ss:$8 sps:$4 sm:$0xff]   ;;  %v612_v27 = vld [vmem:[%s805_s0 + $0x60] ss:$8 sps:$4 sm:$0xff]   ;;  %v615_v29 = vld [vmem:[%s805_s0 + $0x74] ss:$8 sps:$4 sm:$0xff]  }
   0xb   :  { %504 = vmatpush3.bf16.msra.mxu0 %v584_v5  ;;  %573 = vmatpush3.bf16.msra.mxu1 %v584_v5  ;;  %v617_v30 = vld [vmem:[%s805_s0 + $0x30] ss:$8 sps:$4 sm:$0xff]   ;;  %v738_v35 = vld [vmem:[%s806_s2] ss:$0 sm:$0xff] }
   0xc   :  { %505 = vmatprep.subr.bf16.mxu0 %v585_v6  ;;  %566 = vmatprep.subr.bf16.mxu1 %v585_v6  ;;  %v618_v31 = vld [vmem:[%s805_s0 + $0x70] ss:$8 sps:$4 sm:$0xff]  }
   0xf   :  { %506 = vmatpush3.bf16.msra.mxu0 %v586_v7  ;;  %574 = vmatpush3.bf16.msra.mxu1 %v586_v7 }
  0x10   :  { %507 = vmatprep.subr.bf16.mxu0 %v587_v8  ;;  %567 = vmatprep.subr.bf16.mxu1 %v587_v8 }
  0x13   :  { %508 = vmatpush3.bf16.msra.mxu0 %v588_v9  ;;  %575 = vmatpush3.bf16.msra.mxu1 %v588_v9 }
  0x14   :  { %509 = vmatprep.subr.bf16.mxu0 %v589_v10  ;;  %568 = vmatprep.subr.bf16.mxu1 %v589_v10 }
  0x17   :  { %510 = vmatpush3.bf16.msra.mxu0 %v590_v13  ;;  %576 = vmatpush3.bf16.msra.mxu1 %v590_v13 }
  0x18   :  { %511 = vmatprep.subr.bf16.mxu0 %v591_v14  ;;  %569 = vmatprep.subr.bf16.mxu1 %v591_v14 }
  0x1b   :  { %512 = vmatpush3.bf16.msra.mxu0 %v592_v15  ;;  %577 = vmatpush3.bf16.msra.mxu1 %v592_v15 }
  0x1c   :  { %513 = vmatprep.subr.bf16.mxu0 %v593_v16  ;;  %570 = vmatprep.subr.bf16.mxu1 %v593_v16 }
  0x1f   :  { %514 = vmatpush3.bf16.msra.mxu0 %v594_v17  ;;  %578 = vmatpush3.bf16.msra.mxu1 %v594_v17 }
  0x22   :  { %308 = vmatmul.mubr.bf16.vlgmr.msra.gmra.mxu0 %v595_v18  ;;  %340 = vmatmul.mubr.bf16.vlgmr.msra.gmra.mxu1 %v598_v19 }
  0x23   :  { %315 = vmatprep.mubr.bf16.mxu0 %v601_v20  ;;  %347 = vmatprep.mubr.bf16.mxu1 %v603_v21 }
  0x2a   :  { %316 = vmatmul.mubr.bf16.gmra.mxu0 %v605_v22  ;;  %348 = vmatmul.mubr.bf16.gmra.mxu1 %v606_v23 }
  0x2b   :  { %323 = vmatprep.mubr.bf16.mxu0 %v607_v24  ;;  %355 = vmatprep.mubr.bf16.mxu1 %v609_v25 }
  0x32   :  { %324 = vmatmul.mubr.bf16.gmra.mxu0 %v611_v26  ;;  %356 = vmatmul.mubr.bf16.gmra.mxu1 %v612_v27 }
  0x33   :  { %331 = vmatprep.mubr.bf16.mxu0 %v613_v28  ;;  %363 = vmatprep.mubr.bf16.mxu1 %v615_v29 }
  0x3a   :  { %332 = vmatmul.mubr.bf16.gmra.mxu0 %v617_v30  ;;  %364 = vmatmul.mubr.bf16.gmra.mxu1 %v618_v31 }
  0xe2   :  { %v515_v32 = vpop.f32.mrf.mxu0  ;;  %v539_v33 = vpop.f32.mrf.mxu1 }
  0xe4   :  { %v516_v34 = vpop.f32.mrf.mxu0  ;;  %v540_v36 = vpop.f32.mrf.mxu1 }
  0xe5   :  { %v517_v37 = vadd.f32 %v516_v34, %v515_v32  ;;  %v541_v38 = vadd.f32 %v540_v36, %v539_v33 }
  0xe6   :  { %v518_v39 = vpop.f32.mrf.mxu0  ;;  %v542_v40 = vpop.f32.mrf.mxu1 }
  0xe7   :  { %v430_v41 = vadd.f32 %v517_v37, %v738_v35  ;;  %v438_v42 = vadd.f32 %v541_v38, %v738_v35 }
  0xe8   :  { %v519_v43 = vpop.f32.mrf.mxu0  ;;  %v543_v44 = vpop.f32.mrf.mxu1 }
  0xe9   :  { %446 = vst [vmem:[%s807_s3] sm:$0xff] %v430_v41  ;;  %454 = vst [vmem:[%s807_s3 + $0x40] sm:$0xff] %v438_v42  ;;  %v520_v45 = vadd.f32 %v519_v43, %v518_v39  ;;  %v544_v46 = vadd.f32 %v543_v44, %v542_v40 }
  0xea   :  { %v521_v47 = vpop.f32.mrf.mxu0  ;;  %v545_v48 = vpop.f32.mrf.mxu1 }
  0xeb   :  { %v431_v49 = vadd.f32 %v520_v45, %v738_v35  ;;  %v439_v50 = vadd.f32 %v544_v46, %v738_v35 }
  0xec   :  { %v522_v51 = vpop.f32.mrf.mxu0  ;;  %v546_v52 = vpop.f32.mrf.mxu1 }
  0xed   :  { %447 = vst [vmem:[%s807_s3 + $0x8] sm:$0xff] %v431_v49  ;;  %455 = vst [vmem:[%s807_s3 + $0x48] sm:$0xff] %v439_v50  ;;  %v523_v53 = vadd.f32 %v522_v51, %v521_v47  ;;  %v547_v54 = vadd.f32 %v546_v52, %v545_v48 }
  0xee   :  { %v524_v55 = vpop.f32.mrf.mxu0  ;;  %v548_v56 = vpop.f32.mrf.mxu1 }
  0xef   :  { %v432_v57 = vadd.f32 %v523_v53, %v738_v35  ;;  %v440_v58 = vadd.f32 %v547_v54, %v738_v35 }
  0xf0   :  { %v525_v59 = vpop.f32.mrf.mxu0  ;;  %v549_v60 = vpop.f32.mrf.mxu1 }
  0xf1   :  { %448 = vst [vmem:[%s807_s3 + $0x10] sm:$0xff] %v432_v57  ;;  %456 = vst [vmem:[%s807_s3 + $0x50] sm:$0xff] %v440_v58  ;;  %v526_v61 = vadd.f32 %v525_v59, %v524_v55  ;;  %v550_v62 = vadd.f32 %v549_v60, %v548_v56 }
  0xf2   :  { %v527_v63 = vpop.f32.mrf.mxu0  ;;  %v551_v0 = vpop.f32.mrf.mxu1 }
  0xf3   :  { %v433_v1 = vadd.f32 %v526_v61, %v738_v35  ;;  %v441_v2 = vadd.f32 %v550_v62, %v738_v35 }
  0xf4   :  { %v528_v3 = vpop.f32.mrf.mxu0  ;;  %v552_v4 = vpop.f32.mrf.mxu1 }
  0xf5   :  { %449 = vst [vmem:[%s807_s3 + $0x18] sm:$0xff] %v433_v1  ;;  %457 = vst [vmem:[%s807_s3 + $0x58] sm:$0xff] %v441_v2  ;;  %v529_v5 = vadd.f32 %v528_v3, %v527_v63  ;;  %v553_v6 = vadd.f32 %v552_v4, %v551_v0 }
  0xf6   :  { %v530_v7 = vpop.f32.mrf.mxu0  ;;  %v554_v8 = vpop.f32.mrf.mxu1 }
  0xf7   :  { %v434_v9 = vadd.f32 %v529_v5, %v738_v35  ;;  %v442_v10 = vadd.f32 %v553_v6, %v738_v35 }
  0xf8   :  { %v531_v11 = vpop.f32.mrf.mxu0  ;;  %v555_v12 = vpop.f32.mrf.mxu1 }
  0xf9   :  { %450 = vst [vmem:[%s807_s3 + $0x20] sm:$0xff] %v434_v9  ;;  %458 = vst [vmem:[%s807_s3 + $0x60] sm:$0xff] %v442_v10  ;;  %v532_v13 = vadd.f32 %v531_v11, %v530_v7  ;;  %v556_v14 = vadd.f32 %v555_v12, %v554_v8 }
  0xfa   :  { %v533_v15 = vpop.f32.mrf.mxu0  ;;  %v557_v16 = vpop.f32.mrf.mxu1 }
  0xfb   :  { %v435_v17 = vadd.f32 %v532_v13, %v738_v35  ;;  %v443_v18 = vadd.f32 %v556_v14, %v738_v35 }
  0xfc   :  { %v534_v19 = vpop.f32.mrf.mxu0  ;;  %v558_v20 = vpop.f32.mrf.mxu1 }
  0xfd   :  { %451 = vst [vmem:[%s807_s3 + $0x28] sm:$0xff] %v435_v17  ;;  %459 = vst [vmem:[%s807_s3 + $0x68] sm:$0xff] %v443_v18  ;;  %v535_v21 = vadd.f32 %v534_v19, %v533_v15  ;;  %v559_v22 = vadd.f32 %v558_v20, %v557_v16 }
  0xfe   :  { %v536_v23 = vpop.f32.mrf.mxu0  ;;  %v560_v24 = vpop.f32.mrf.mxu1 }
  0xff   :  { %v436_v25 = vadd.f32 %v535_v21, %v738_v35  ;;  %v444_v26 = vadd.f32 %v559_v22, %v738_v35 }
 0x100   :  { %v537_v27 = vpop.f32.mrf.mxu0  ;;  %v561_v28 = vpop.f32.mrf.mxu1 }
 0x101   :  { %452 = vst [vmem:[%s807_s3 + $0x30] sm:$0xff] %v436_v25  ;;  %460 = vst [vmem:[%s807_s3 + $0x70] sm:$0xff] %v444_v26  ;;  %v538_v29 = vadd.f32 %v537_v27, %v536_v23  ;;  %v562_v30 = vadd.f32 %v561_v28, %v560_v24 }
 0x103   :  { %v437_v31 = vadd.f32 %v538_v29, %v738_v35  ;;  %v445_v32 = vadd.f32 %v562_v30, %v738_v35 }
 0x105   :  { %453 = vst [vmem:[%s807_s3 + $0x38] sm:$0xff] %v437_v31  ;;  %461 = vst [vmem:[%s807_s3 + $0x78] sm:$0xff] %v445_v32 }

// kernel: efficient_mha_forward.9
= control target key start
LH: loop header
LB: loop body
LE: loop exit
PB: predicated region body
PF: predicated region fallthrough
CT: control target
= control target key end

     0   :  { %s586_s1 = inlined_call_operand.vmem [shape: bf16[128,128], index: 1, kind: input, shape index: {}]   ;;  %s587_s0 = inlined_call_operand.vmem [shape: bf16[128,128], index: 0, kind: input, shape index: {}]   ;;  %s588_s2 = inlined_call_operand.vmem [shape: f32[1,128], index: 2, kind: input, shape index: {}]   ;;  %s589_s3 = inlined_call_operand.vmem [shape: f32[128,128], index: 3, kind: output, shape index: {}]  }
   0x1   :  { %v451_v0 = vld [vmem:[%s586_s1 + $0x38] sm:$0xff]   ;;  %v452_v1 = vld [vmem:[%s586_s1 + $0x30] sm:$0xff]   ;;  %v453_v2 = vld [vmem:[%s586_s1 + $0x28] sm:$0xff]  }
   0x2   :  { %403 = vmatprep.subr.bf16.mxu0 %v451_v0  ;;  %435 = vmatprep.subr.bf16.mxu1 %v451_v0  ;;  %v454_v3 = vld [vmem:[%s586_s1 + $0x20] sm:$0xff]   ;;  %v455_v6 = vld [vmem:[%s586_s1 + $0x18] sm:$0xff]   ;;  %v456_v7 = vld [vmem:[%s586_s1 + $0x10] sm:$0xff]  }
   0x3   :  { %404 = vmatpush3.bf16.msra.mxu0 %v451_v0  ;;  %443 = vmatpush3.bf16.msra.mxu1 %v451_v0  ;;  %v459_v4 = vld [vmem:[%s587_s0] sm:$0xff]   ;;  %v457_v8 = vld [vmem:[%s586_s1 + $0x8] sm:$0xff]   ;;  %v463_v12 = vld [vmem:[%s587_s0 + $0x10] sm:$0xff]  }
   0x4   :  { %405 = vmatprep.subr.bf16.mxu0 %v452_v1  ;;  %436 = vmatprep.subr.bf16.mxu1 %v452_v1  ;;  %v460_v5 = vld [vmem:[%s587_s0 + $0x20] sm:$0xff]   ;;  %v461_v10 = vld [vmem:[%s587_s0 + $0x8] sm:$0xff]   ;;  %v464_v13 = vld [vmem:[%s587_s0 + $0x30] sm:$0xff]  }
   0x5   :  { %419 = vmatprep.mubr.bf16.mxu0 %v459_v4  ;;  %427 = vmatprep.mubr.bf16.mxu1 %v460_v5  ;;  %v458_v9 = vld [vmem:[%s586_s1] sm:$0xff]   ;;  %v462_v11 = vld [vmem:[%s587_s0 + $0x28] sm:$0xff]   ;;  %v465_v14 = vld [vmem:[%s587_s0 + $0x18] sm:$0xff]  }
   0x6   :  { %v466_v15 = vld [vmem:[%s587_s0 + $0x38] sm:$0xff]   ;;  %v386_v16 = vld [vmem:[%s588_s2] ss:$0 sm:$0xff] }
   0x7   :  { %406 = vmatpush3.bf16.msra.mxu0 %v452_v1  ;;  %444 = vmatpush3.bf16.msra.mxu1 %v452_v1 }
   0x8   :  { %407 = vmatprep.subr.bf16.mxu0 %v453_v2  ;;  %437 = vmatprep.subr.bf16.mxu1 %v453_v2 }
   0xb   :  { %408 = vmatpush3.bf16.msra.mxu0 %v453_v2  ;;  %445 = vmatpush3.bf16.msra.mxu1 %v453_v2 }
   0xc   :  { %409 = vmatprep.subr.bf16.mxu0 %v454_v3  ;;  %438 = vmatprep.subr.bf16.mxu1 %v454_v3 }
   0xf   :  { %410 = vmatpush3.bf16.msra.mxu0 %v454_v3  ;;  %446 = vmatpush3.bf16.msra.mxu1 %v454_v3 }
  0x10   :  { %411 = vmatprep.subr.bf16.mxu0 %v455_v6  ;;  %439 = vmatprep.subr.bf16.mxu1 %v455_v6 }
  0x13   :  { %412 = vmatpush3.bf16.msra.mxu0 %v455_v6  ;;  %447 = vmatpush3.bf16.msra.mxu1 %v455_v6 }
  0x14   :  { %413 = vmatprep.subr.bf16.mxu0 %v456_v7  ;;  %440 = vmatprep.subr.bf16.mxu1 %v456_v7 }
  0x17   :  { %414 = vmatpush3.bf16.msra.mxu0 %v456_v7  ;;  %448 = vmatpush3.bf16.msra.mxu1 %v456_v7 }
  0x18   :  { %415 = vmatprep.subr.bf16.mxu0 %v457_v8  ;;  %441 = vmatprep.subr.bf16.mxu1 %v457_v8 }
  0x1b   :  { %416 = vmatpush3.bf16.msra.mxu0 %v457_v8  ;;  %449 = vmatpush3.bf16.msra.mxu1 %v457_v8 }
  0x1c   :  { %417 = vmatprep.subr.bf16.mxu0 %v458_v9  ;;  %442 = vmatprep.subr.bf16.mxu1 %v458_v9 }
  0x1f   :  { %418 = vmatpush3.bf16.msra.mxu0 %v458_v9  ;;  %450 = vmatpush3.bf16.msra.mxu1 %v458_v9 }
  0x22   :  { %420 = vmatmul.mubr.bf16.vlgmr.msra.gmra.mxu0 %v461_v10  ;;  %428 = vmatmul.mubr.bf16.vlgmr.msra.gmra.mxu1 %v462_v11 }
  0x23   :  { %423 = vmatprep.mubr.bf16.mxu0 %v463_v12  ;;  %431 = vmatprep.mubr.bf16.mxu1 %v464_v13 }
  0x2a   :  { %424 = vmatmul.mubr.bf16.gmra.mxu0 %v465_v14  ;;  %432 = vmatmul.mubr.bf16.gmra.mxu1 %v466_v15 }
  0xe2   :  { %v421_v17 = vpop.f32.mrf.mxu0  ;;  %v429_v18 = vpop.f32.mrf.mxu1 }
  0xe3   :  { %v336_v19 = vadd.f32 %v421_v17, %v386_v16  ;;  %v344_v20 = vadd.f32 %v429_v18, %v386_v16 }
  0xe4   :  { %v213_v21 = vpop.f32.mrf.mxu0  ;;  %v245_v22 = vpop.f32.mrf.mxu1 }
  0xe5   :  { %352 = vst [vmem:[%s589_s3 + $0x10] sm:$0xff] %v336_v19  ;;  %360 = vst [vmem:[%s589_s3 + $0x50] sm:$0xff] %v344_v20  ;;  %v334_v23 = vadd.f32 %v386_v16, %v213_v21  ;;  %v342_v24 = vadd.f32 %v386_v16, %v245_v22 }
  0xe6   :  { %v422_v25 = vpop.f32.mrf.mxu0  ;;  %v430_v26 = vpop.f32.mrf.mxu1 }
  0xe7   :  { %350 = vst [vmem:[%s589_s3] sm:$0xff] %v334_v23  ;;  %358 = vst [vmem:[%s589_s3 + $0x40] sm:$0xff] %v342_v24  ;;  %v337_v27 = vadd.f32 %v422_v25, %v386_v16  ;;  %v345_v28 = vadd.f32 %v430_v26, %v386_v16 }
  0xe8   :  { %v216_v29 = vpop.f32.mrf.mxu0  ;;  %v248_v30 = vpop.f32.mrf.mxu1 }
  0xe9   :  { %353 = vst [vmem:[%s589_s3 + $0x18] sm:$0xff] %v337_v27  ;;  %361 = vst [vmem:[%s589_s3 + $0x58] sm:$0xff] %v345_v28  ;;  %v335_v31 = vadd.f32 %v386_v16, %v216_v29  ;;  %v343_v32 = vadd.f32 %v386_v16, %v248_v30 }
  0xea   :  { %v425_v33 = vpop.f32.mrf.mxu0  ;;  %v433_v34 = vpop.f32.mrf.mxu1 }
  0xeb   :  { %351 = vst [vmem:[%s589_s3 + $0x8] sm:$0xff] %v335_v31  ;;  %359 = vst [vmem:[%s589_s3 + $0x48] sm:$0xff] %v343_v32  ;;  %v340_v35 = vadd.f32 %v425_v33, %v386_v16  ;;  %v348_v36 = vadd.f32 %v433_v34, %v386_v16 }
  0xec   :  { %v229_v37 = vpop.f32.mrf.mxu0  ;;  %v261_v38 = vpop.f32.mrf.mxu1 }
  0xed   :  { %356 = vst [vmem:[%s589_s3 + $0x30] sm:$0xff] %v340_v35  ;;  %364 = vst [vmem:[%s589_s3 + $0x70] sm:$0xff] %v348_v36  ;;  %v338_v39 = vadd.f32 %v386_v16, %v229_v37  ;;  %v346_v40 = vadd.f32 %v386_v16, %v261_v38 }
  0xee   :  { %v426_v41 = vpop.f32.mrf.mxu0  ;;  %v434_v42 = vpop.f32.mrf.mxu1 }
  0xef   :  { %354 = vst [vmem:[%s589_s3 + $0x20] sm:$0xff] %v338_v39  ;;  %362 = vst [vmem:[%s589_s3 + $0x60] sm:$0xff] %v346_v40  ;;  %v341_v43 = vadd.f32 %v426_v41, %v386_v16  ;;  %v349_v44 = vadd.f32 %v434_v42, %v386_v16 }
  0xf0   :  { %v232_v45 = vpop.f32.mrf.mxu0  ;;  %v264_v46 = vpop.f32.mrf.mxu1 }
  0xf1   :  { %357 = vst [vmem:[%s589_s3 + $0x38] sm:$0xff] %v341_v43  ;;  %365 = vst [vmem:[%s589_s3 + $0x78] sm:$0xff] %v349_v44  ;;  %v339_v47 = vadd.f32 %v386_v16, %v232_v45  ;;  %v347_v48 = vadd.f32 %v386_v16, %v264_v46 }
  0xf3   :  { %355 = vst [vmem:[%s589_s3 + $0x28] sm:$0xff] %v339_v47  ;;  %363 = vst [vmem:[%s589_s3 + $0x68] sm:$0xff] %v347_v48 }

// kernel: efficient_mha_forward.8
= control target key start
LH: loop header
LB: loop body
LE: loop exit
PB: predicated region body
PF: predicated region fallthrough
CT: control target
= control target key end

     0   :  { %s1180_s12 = smov 0   ;;  %s1182_s13 = smov 0   ;;  %s1330_s0 = inlined_call_operand.vmem [shape: bf16[512,128], index: 0, kind: input, shape index: {}]   ;;  %s1331_s1 = inlined_call_operand.vmem [shape: bf16[128,128], index: 1, kind: input, shape index: {}]   ;;  %s1332_s2 = inlined_call_operand.vmem [shape: f32[1,128], index: 2, kind: input, shape index: {}]   ;;  %s1333_s3 = inlined_call_operand.vmem [shape: f32[512,128], index: 3, kind: output, shape index: {}]  }
   0x1   :  { %s1184_s14 = smov 0  }
   0x2 LB: > { %s32_s15 = sadd.s32 1, %s1154_s13  ;;  %p968_p0 = scmp.ge.s32.totalorder %s1158_s14, 1  ;;  %s1158_s14 = sphi %s1184_s14, %s13_s14   ;;  %s1154_s13 = sphi %s1182_s13, %s1335_s13   ;;  %s1150_s12 = sphi %s1180_s12, %s1334_s12  }
   0x3   : > { %p34_p1 = scmp.ge.s32.totalorder %s32_s15, 2  ;;  %p188_p2 = scmp.lt.s32.totalorder %s1158_s14, 3 }
   0x5   : > { %s1337_s15 = smov (%p34_p1, %s32_s15), 0  ;;  %p189_p3 = pnand %p968_p0, %p188_p2 }
   0x6   : > { %s969_s18 = sshll.u32 (!%p189_p3), %s1150_s12, 5 }
   0x7   : > { %192 = sbr.rel (%p189_p3) target bundleno = 271 (0x10f), region = 32  ;;  %p230_p4 = scmp.lt.s32.totalorder (!%p189_p3), %s969_s18, 63 }
   0xc   : > { %v1112_v0 = vld [vmem:[%s1331_s1 + $0x38] sm:$0xff]   ;;  %v1113_v1 = vld [vmem:[%s1331_s1 + $0x30] sm:$0xff]   ;;  %s1339_s18 = smov (!%p230_p4, %s969_s18), 63  ;;  %v1114_v2 = vld [vmem:[%s1331_s1 + $0x28] sm:$0xff]  }
   0xd   : > { %1024 = vmatprep.subr.bf16.mxu0 %v1112_v0  ;;  %1072 = vmatprep.subr.bf16.mxu1 %v1112_v0  ;;  %s970_s23 = sshll.u32 %s1339_s18, 2  ;;  %v1115_v3 = vld [vmem:[%s1331_s1 + $0x20] sm:$0xff]   ;;  %v1116_v6 = vld [vmem:[%s1331_s1 + $0x18] sm:$0xff]   ;;  %v1117_v7 = vld [vmem:[%s1331_s1 + $0x10] sm:$0xff]   ;;  %s972_s10 = sshll.u32 %s1339_s18, 3 }
   0xe   : > { %1025 = vmatpush3.bf16.msra.mxu0 %v1112_v0  ;;  %1080 = vmatpush3.bf16.msra.mxu1 %v1112_v0  ;;  %s1213_s26 = scalar_lea.vmem %s1330_s0, %s970_s23  ;;  %v1118_v8 = vld [vmem:[%s1331_s1 + $0x8] sm:$0xff]   ;;  %v1119_v9 = vld [vmem:[%s1331_s1] sm:$0xff]   ;;  %s1255_s19 = scalar_lea.vmem %s1333_s3, %s972_s10 }
   0xf   : > { %1026 = vmatprep.subr.bf16.mxu0 %v1113_v1  ;;  %1073 = vmatprep.subr.bf16.mxu1 %v1113_v1  ;;  %v1120_v4 = vld [vmem:[%s1213_s26] sm:$0xff]   ;;  %v1122_v10 = vld [vmem:[%s1213_s26 + $0x8] sm:$0xff]   ;;  %v1124_v12 = vld [vmem:[%s1213_s26 + $0x10] sm:$0xff]  }
  0x10   : > { %v1121_v5 = vld [vmem:[%s1213_s26 + $0x40] sm:$0xff]   ;;  %1040 = vmatprep.mubr.bf16.mxu0 %v1120_v4  ;;  %v1123_v11 = vld [vmem:[%s1213_s26 + $0x48] sm:$0xff]   ;;  %v1125_v13 = vld [vmem:[%s1213_s26 + $0x50] sm:$0xff]  }
  0x11   : > { %1056 = vmatprep.mubr.bf16.mxu1 %v1121_v5  ;;  %v1126_v14 = vld [vmem:[%s1213_s26 + $0x18] sm:$0xff]   ;;  %v1128_v16 = vld [vmem:[%s1213_s26 + $0x20] sm:$0xff]   ;;  %v1130_v18 = vld [vmem:[%s1213_s26 + $0x28] sm:$0xff]  }
  0x12   : > { %1027 = vmatpush3.bf16.msra.mxu0 %v1113_v1  ;;  %1081 = vmatpush3.bf16.msra.mxu1 %v1113_v1  ;;  %v1127_v15 = vld [vmem:[%s1213_s26 + $0x58] sm:$0xff]   ;;  %v1129_v17 = vld [vmem:[%s1213_s26 + $0x60] sm:$0xff]   ;;  %v1131_v19 = vld [vmem:[%s1213_s26 + $0x68] sm:$0xff]  }
  0x13   : > { %1028 = vmatprep.subr.bf16.mxu0 %v1114_v2  ;;  %1074 = vmatprep.subr.bf16.mxu1 %v1114_v2  ;;  %v1132_v20 = vld [vmem:[%s1213_s26 + $0x30] sm:$0xff]   ;;  %v1134_v22 = vld [vmem:[%s1213_s26 + $0x38] sm:$0xff]   ;;  %v1250_v24 = vld [vmem:[%s1332_s2] ss:$0 sm:$0xff] }
  0x14   : > { %v1133_v21 = vld [vmem:[%s1213_s26 + $0x70] sm:$0xff]   ;;  %v1135_v23 = vld [vmem:[%s1213_s26 + $0x78] sm:$0xff]  }
  0x16   : > { %1029 = vmatpush3.bf16.msra.mxu0 %v1114_v2  ;;  %1082 = vmatpush3.bf16.msra.mxu1 %v1114_v2 }
  0x17   : > { %1030 = vmatprep.subr.bf16.mxu0 %v1115_v3  ;;  %1075 = vmatprep.subr.bf16.mxu1 %v1115_v3 }
  0x1a   : > { %1031 = vmatpush3.bf16.msra.mxu0 %v1115_v3  ;;  %1083 = vmatpush3.bf16.msra.mxu1 %v1115_v3 }
  0x1b   : > { %1032 = vmatprep.subr.bf16.mxu0 %v1116_v6  ;;  %1076 = vmatprep.subr.bf16.mxu1 %v1116_v6 }
  0x1e   : > { %1033 = vmatpush3.bf16.msra.mxu0 %v1116_v6  ;;  %1084 = vmatpush3.bf16.msra.mxu1 %v1116_v6 }
  0x1f   : > { %1034 = vmatprep.subr.bf16.mxu0 %v1117_v7  ;;  %1077 = vmatprep.subr.bf16.mxu1 %v1117_v7 }
  0x22   : > { %1035 = vmatpush3.bf16.msra.mxu0 %v1117_v7  ;;  %1085 = vmatpush3.bf16.msra.mxu1 %v1117_v7 }
  0x23   : > { %1036 = vmatprep.subr.bf16.mxu0 %v1118_v8  ;;  %1078 = vmatprep.subr.bf16.mxu1 %v1118_v8 }
  0x26   : > { %1037 = vmatpush3.bf16.msra.mxu0 %v1118_v8  ;;  %1086 = vmatpush3.bf16.msra.mxu1 %v1118_v8 }
  0x27   : > { %1038 = vmatprep.subr.bf16.mxu0 %v1119_v9  ;;  %1079 = vmatprep.subr.bf16.mxu1 %v1119_v9 }
  0x2a   : > { %1039 = vmatpush3.bf16.msra.mxu0 %v1119_v9  ;;  %1087 = vmatpush3.bf16.msra.mxu1 %v1119_v9 }
  0x2d   : > { %1041 = vmatmul.mubr.bf16.vlgmr.msra.gmra.mxu0 %v1122_v10  ;;  %1057 = vmatmul.mubr.bf16.vlgmr.msra.gmra.mxu1 %v1123_v11 }
  0x2e   : > { %1044 = vmatprep.mubr.bf16.mxu0 %v1124_v12  ;;  %1060 = vmatprep.mubr.bf16.mxu1 %v1125_v13 }
  0x35   : > { %1045 = vmatmul.mubr.bf16.gmra.mxu0 %v1126_v14  ;;  %1061 = vmatmul.mubr.bf16.gmra.mxu1 %v1127_v15 }
  0x36   : > { %1048 = vmatprep.mubr.bf16.mxu0 %v1128_v16  ;;  %1064 = vmatprep.mubr.bf16.mxu1 %v1129_v17 }
  0x3d   : > { %1049 = vmatmul.mubr.bf16.gmra.mxu0 %v1130_v18  ;;  %1065 = vmatmul.mubr.bf16.gmra.mxu1 %v1131_v19 }
  0x3e   : > { %1052 = vmatprep.mubr.bf16.mxu0 %v1132_v20  ;;  %1068 = vmatprep.mubr.bf16.mxu1 %v1133_v21 }
  0x45   : > { %1053 = vmatmul.mubr.bf16.gmra.mxu0 %v1134_v22  ;;  %1069 = vmatmul.mubr.bf16.gmra.mxu1 %v1135_v23 }
  0xed   : > { %v1042_v25 = vpop.f32.mrf.mxu0  ;;  %v1058_v26 = vpop.f32.mrf.mxu1 }
  0xee   : > { %v789_v27 = vadd.f32 %v1042_v25, %v1250_v24  ;;  %v805_v28 = vadd.f32 %v1058_v26, %v1250_v24 }
  0xef   : > { %v554_v29 = vpop.f32.mrf.mxu0  ;;  %v618_v30 = vpop.f32.mrf.mxu1 }
  0xf0   : > { %821 = vst [vmem:[%s1255_s19 + $0x10] sm:$0xff] %v789_v27  ;;  %837 = vst [vmem:[%s1255_s19 + $0x90] sm:$0xff] %v805_v28  ;;  %v787_v31 = vadd.f32 %v1250_v24, %v554_v29  ;;  %v803_v32 = vadd.f32 %v1250_v24, %v618_v30 }
  0xf1   : > { %v1043_v33 = vpop.f32.mrf.mxu0  ;;  %v1059_v34 = vpop.f32.mrf.mxu1 }
  0xf2   : > { %819 = vst [vmem:[%s1255_s19] sm:$0xff] %v787_v31  ;;  %835 = vst [vmem:[%s1255_s19 + $0x80] sm:$0xff] %v803_v32  ;;  %v790_v35 = vadd.f32 %v1043_v33, %v1250_v24  ;;  %v806_v36 = vadd.f32 %v1059_v34, %v1250_v24 }
  0xf3   : > { %v557_v37 = vpop.f32.mrf.mxu0  ;;  %v621_v38 = vpop.f32.mrf.mxu1 }
  0xf4   : > { %822 = vst [vmem:[%s1255_s19 + $0x18] sm:$0xff] %v790_v35  ;;  %838 = vst [vmem:[%s1255_s19 + $0x98] sm:$0xff] %v806_v36  ;;  %v788_v39 = vadd.f32 %v1250_v24, %v557_v37  ;;  %v804_v40 = vadd.f32 %v1250_v24, %v621_v38 }
  0xf5   : > { %v1046_v41 = vpop.f32.mrf.mxu0  ;;  %v1062_v42 = vpop.f32.mrf.mxu1 }
  0xf6   : > { %820 = vst [vmem:[%s1255_s19 + $0x8] sm:$0xff] %v788_v39  ;;  %836 = vst [vmem:[%s1255_s19 + $0x88] sm:$0xff] %v804_v40  ;;  %v793_v43 = vadd.f32 %v1046_v41, %v1250_v24  ;;  %v809_v44 = vadd.f32 %v1062_v42, %v1250_v24 }
  0xf7   : > { %v570_v45 = vpop.f32.mrf.mxu0  ;;  %v634_v46 = vpop.f32.mrf.mxu1 }
  0xf8   : > { %825 = vst [vmem:[%s1255_s19 + $0x30] sm:$0xff] %v793_v43  ;;  %841 = vst [vmem:[%s1255_s19 + $0xb0] sm:$0xff] %v809_v44  ;;  %v791_v47 = vadd.f32 %v1250_v24, %v570_v45  ;;  %v807_v48 = vadd.f32 %v1250_v24, %v634_v46 }
  0xf9   : > { %v1047_v49 = vpop.f32.mrf.mxu0  ;;  %v1063_v50 = vpop.f32.mrf.mxu1 }
  0xfa   : > { %823 = vst [vmem:[%s1255_s19 + $0x20] sm:$0xff] %v791_v47  ;;  %839 = vst [vmem:[%s1255_s19 + $0xa0] sm:$0xff] %v807_v48  ;;  %v794_v51 = vadd.f32 %v1047_v49, %v1250_v24  ;;  %v810_v52 = vadd.f32 %v1063_v50, %v1250_v24 }
  0xfb   : > { %v573_v53 = vpop.f32.mrf.mxu0  ;;  %v637_v54 = vpop.f32.mrf.mxu1 }
  0xfc   : > { %826 = vst [vmem:[%s1255_s19 + $0x38] sm:$0xff] %v794_v51  ;;  %842 = vst [vmem:[%s1255_s19 + $0xb8] sm:$0xff] %v810_v52  ;;  %v792_v55 = vadd.f32 %v1250_v24, %v573_v53  ;;  %v808_v56 = vadd.f32 %v1250_v24, %v637_v54 }
  0xfd   : > { %v1050_v57 = vpop.f32.mrf.mxu0  ;;  %v1066_v58 = vpop.f32.mrf.mxu1 }
  0xfe   : > { %824 = vst [vmem:[%s1255_s19 + $0x28] sm:$0xff] %v792_v55  ;;  %840 = vst [vmem:[%s1255_s19 + $0xa8] sm:$0xff] %v808_v56  ;;  %v797_v59 = vadd.f32 %v1050_v57, %v1250_v24  ;;  %v813_v60 = vadd.f32 %v1066_v58, %v1250_v24 }
  0xff   : > { %v586_v61 = vpop.f32.mrf.mxu0  ;;  %v650_v62 = vpop.f32.mrf.mxu1 }
 0x100   : > { %829 = vst [vmem:[%s1255_s19 + $0x50] sm:$0xff] %v797_v59  ;;  %845 = vst [vmem:[%s1255_s19 + $0xd0] sm:$0xff] %v813_v60  ;;  %v795_v63 = vadd.f32 %v1250_v24, %v586_v61  ;;  %v811_v0 = vadd.f32 %v1250_v24, %v650_v62 }
 0x101   : > { %v1051_v1 = vpop.f32.mrf.mxu0  ;;  %v1067_v2 = vpop.f32.mrf.mxu1 }
 0x102   : > { %827 = vst [vmem:[%s1255_s19 + $0x40] sm:$0xff] %v795_v63  ;;  %843 = vst [vmem:[%s1255_s19 + $0xc0] sm:$0xff] %v811_v0  ;;  %v798_v3 = vadd.f32 %v1051_v1, %v1250_v24  ;;  %v814_v4 = vadd.f32 %v1067_v2, %v1250_v24 }
 0x103   : > { %v589_v5 = vpop.f32.mrf.mxu0  ;;  %v653_v6 = vpop.f32.mrf.mxu1 }
 0x104   : > { %830 = vst [vmem:[%s1255_s19 + $0x58] sm:$0xff] %v798_v3  ;;  %846 = vst [vmem:[%s1255_s19 + $0xd8] sm:$0xff] %v814_v4  ;;  %v796_v7 = vadd.f32 %v1250_v24, %v589_v5  ;;  %v812_v8 = vadd.f32 %v1250_v24, %v653_v6 }
 0x105   : > { %v1054_v9 = vpop.f32.mrf.mxu0  ;;  %v1070_v10 = vpop.f32.mrf.mxu1 }
 0x106   : > { %828 = vst [vmem:[%s1255_s19 + $0x48] sm:$0xff] %v796_v7  ;;  %844 = vst [vmem:[%s1255_s19 + $0xc8] sm:$0xff] %v812_v8  ;;  %v801_v11 = vadd.f32 %v1054_v9, %v1250_v24  ;;  %v817_v12 = vadd.f32 %v1070_v10, %v1250_v24 }
 0x107   : > { %v602_v13 = vpop.f32.mrf.mxu0  ;;  %v666_v14 = vpop.f32.mrf.mxu1 }
 0x108   : > { %833 = vst [vmem:[%s1255_s19 + $0x70] sm:$0xff] %v801_v11  ;;  %849 = vst [vmem:[%s1255_s19 + $0xf0] sm:$0xff] %v817_v12  ;;  %v799_v15 = vadd.f32 %v1250_v24, %v602_v13  ;;  %v815_v16 = vadd.f32 %v1250_v24, %v666_v14 }
 0x109   : > { %v1055_v17 = vpop.f32.mrf.mxu0  ;;  %v1071_v18 = vpop.f32.mrf.mxu1 }
 0x10a   : > { %831 = vst [vmem:[%s1255_s19 + $0x60] sm:$0xff] %v799_v15  ;;  %847 = vst [vmem:[%s1255_s19 + $0xe0] sm:$0xff] %v815_v16  ;;  %v802_v19 = vadd.f32 %v1055_v17, %v1250_v24  ;;  %v818_v20 = vadd.f32 %v1071_v18, %v1250_v24 }
 0x10b   : > { %v605_v21 = vpop.f32.mrf.mxu0  ;;  %v669_v22 = vpop.f32.mrf.mxu1 }
 0x10c   : > { %834 = vst [vmem:[%s1255_s19 + $0x78] sm:$0xff] %v802_v19  ;;  %850 = vst [vmem:[%s1255_s19 + $0xf8] sm:$0xff] %v818_v20  ;;  %v800_v23 = vadd.f32 %v1250_v24, %v605_v21  ;;  %v816_v25 = vadd.f32 %v1250_v24, %v669_v22 }
 0x10e   : > { %832 = vst [vmem:[%s1255_s19 + $0x68] sm:$0xff] %v800_v23  ;;  %848 = vst [vmem:[%s1255_s19 + $0xe8] sm:$0xff] %v816_v25 }
 0x10f PF: > { %s13_s14 = sadd.s32 1, %s1158_s14   ;;  %s1334_s12 = smov %s1154_s13 }
 0x110   : > { %p10_p5 = scmp.ge.s32.totalorder %s13_s14, 4   ;;  %s1335_s13 = smov %s1337_s15 }
 0x112   :  { %12 = sbr.rel (!%p10_p5) target bundleno = 2 (0x2), region = 76 }

// kernel: efficient_mha_forward.10
= control target key start
LH: loop header
LB: loop body
LE: loop exit
PB: predicated region body
PF: predicated region fallthrough
CT: control target
= control target key end

     0   :  { %s3041_s12 = smov 0   ;;  %s3043_s13 = smov 0   ;;  %s4183_s0 = inlined_call_operand.vmem [shape: bf16[16,256,8], index: 0, kind: input, shape index: {}]   ;;  %s4184_s1 = inlined_call_operand.vmem [shape: bf16[16,64,8], index: 1, kind: input, shape index: {}]   ;;  %s4185_s2 = inlined_call_operand.vmem [shape: bf16[16,64,8], index: 2, kind: input, shape index: {}]   ;;  %s4186_s3 = inlined_call_operand.vmem [shape: f32[16,256,8], index: 3, kind: output, shape index: {}]  }
   0x1   :  { %s3045_s14 = smov 0  }
   0x2 LB: > { %s32_s15 = sadd.s32 1, %s3012_s13  ;;  %p2554_p0 = scmp.ge.s32.totalorder %s3016_s14, 1  ;;  %s3016_s14 = sphi %s3045_s14, %s13_s14   ;;  %s3012_s13 = sphi %s3043_s13, %s4304_s13   ;;  %s3008_s12 = sphi %s3041_s12, %s4303_s12  }
   0x3   : > { %p34_p1 = scmp.ge.s32.totalorder %s32_s15, 16  ;;  %p199_p2 = scmp.lt.s32.totalorder %s3016_s14, 17 }
   0x5   : > { %s4306_s15 = smov (%p34_p1, %s32_s15), 0  ;;  %p200_p3 = pnand %p2554_p0, %p199_p2 }
   0x7   : > { %203 = sbr.rel (%p200_p3) target bundleno = 912 (0x390), region = 32 }
   0xc   : > { %p250_p4 = scmp.lt.s32.totalorder %s3008_s12, 15  ;;  %vm359_vm0 = vcmask 64512   ;;  %vm294_vm1 = vcmask 7168   ;;  %v3018_v24 = vmov -inf   ;;  %vm826_vm2 = vcmask 523264  }
   0xd   : > { %297 = vst.msk [vmem:[#allocation2 + $0x10] sm:$0xff] %vm294_vm1, %v3018_v24  ;;  %295 = vst.msk [vmem:[#allocation2] sm:$0xff] %vm294_vm1, %v3018_v24  ;;  %v3019_v47 = vmov 0  }
   0xe   : > { %s4308_s12 = smov (!%p250_p4, %s3008_s12), 15  ;;  %296 = vst.msk [vmem:[#allocation2 + $0x8] sm:$0xff] %vm294_vm1, %v3018_v24  ;;  %298 = vst.msk [vmem:[#allocation2 + $0x18] sm:$0xff] %vm294_vm1, %v3018_v24  ;;  %2777 = vset.pattern.permute.xlu1 %v3019_v47  ;;  %2776 = vset.pattern.permute.xlu0 %v3019_v47 }
   0xf   : > { %s2621_s16 = sshll.u32 %s4308_s12, 7  ;;  %s2622_s17 = sshll.u32 %s4308_s12, 5  ;;  %299 = vst.msk [vmem:[#allocation2 + $0x20] sm:$0xff] %vm294_vm1, %v3018_v24  ;;  %300 = vst.msk [vmem:[#allocation2 + $0x28] sm:$0xff] %vm294_vm1, %v3018_v24 }
  0x10   : > { %s267_s20 = scalar_lea.vmem %s4184_s1, %s2622_s17  ;;  %s3071_s23 = scalar_lea.vmem %s4183_s0, %s2621_s16  ;;  %301 = vst.msk [vmem:[#allocation2 + $0x30] sm:$0xff] %vm294_vm1, %v3018_v24  ;;  %302 = vst.msk [vmem:[#allocation2 + $0x38] sm:$0xff] %vm294_vm1, %v3018_v24 }
  0x11   : > { %v2778_v0 = vld [vmem:[%s267_s20 + $0x18] sm:$0xff]   ;;  %v2779_v1 = vld [vmem:[%s267_s20 + $0x10] sm:$0xff]   ;;  %v2782_v3 = vld [vmem:[%s3071_s23] sm:$0xff]   ;;  %303 = vst.msk [vmem:[#allocation2 + $0x40] sm:$0xff] %vm294_vm1, %v3018_v24  ;;  %s3434_s26 = scalar_lea.vmem %s4185_s2, %s2622_s17  ;;  %s2624_s27 = sshll.u32 %s4308_s12, 8 }
  0x12   : > { %2745 = vmatprep.subr.msk.bf16.mxu0 %vm359_vm0, %v2778_v0  ;;  %v599_v2 = vsel %vm359_vm0, %v2778_v0, 0  ;;  %2673 = vmatprep.mubr.msk.bf16.mxu0 %vm359_vm0, %v2782_v3  ;;  %v596_v4 = vsel %vm359_vm0, %v2779_v1, 0  ;;  %v2780_v5 = vld [vmem:[%s267_s20 + $0x8] sm:$0xff]   ;;  %v2781_v7 = vld [vmem:[%s267_s20] sm:$0xff]   ;;  %v2784_v10 = vld [vmem:[%s3071_s23 + $0x10] sm:$0xff]   ;;  %304 = vst.msk [vmem:[#allocation2 + $0x48] sm:$0xff] %vm294_vm1, %v3018_v24  ;;  %s4108_s30 = scalar_lea.vmem %s4186_s3, %s2624_s27 }
  0x13   : > { %2666 = vmatpush3.bf16.xpose.msra.mxu0 %v599_v2  ;;  %v593_v6 = vsel %vm359_vm0, %v2780_v5, 0  ;;  %v590_v8 = vsel %vm359_vm0, %v2781_v7, 0  ;;  %v2783_v9 = vld [vmem:[%s3071_s23 + $0x8] sm:$0xff]   ;;  %v2785_v11 = vld [vmem:[%s3071_s23 + $0x18] sm:$0xff]   ;;  %v2786_v12 = vld [vmem:[%s3071_s23 + $0x20] sm:$0xff]   ;;  %305 = vst.msk [vmem:[#allocation2 + $0x50] sm:$0xff] %vm294_vm1, %v3018_v24 }
  0x14   : > { %2746 = vmatprep.subr.msk.bf16.mxu0 %vm359_vm0, %v2779_v1  ;;  %v2787_v13 = vld [vmem:[%s3071_s23 + $0x28] sm:$0xff]   ;;  %v2788_v14 = vld [vmem:[%s3071_s23 + $0x30] sm:$0xff]   ;;  %v2789_v15 = vld [vmem:[%s3071_s23 + $0x38] sm:$0xff]   ;;  %306 = vst.msk [vmem:[#allocation2 + $0x58] sm:$0xff] %vm294_vm1, %v3018_v24  ;;  %v3020_v3 = vmov 0.0  }
  0x15   : > { %v2790_v16 = vld [vmem:[%s3071_s23 + $0x40] sm:$0xff]   ;;  %v2791_v17 = vld [vmem:[%s3071_s23 + $0x48] sm:$0xff]   ;;  %v2792_v18 = vld [vmem:[%s3071_s23 + $0x50] sm:$0xff]   ;;  %307 = vst.msk [vmem:[#allocation2 + $0x60] sm:$0xff] %vm294_vm1, %v3018_v24 }
  0x16   : > { %v2793_v19 = vld [vmem:[%s3071_s23 + $0x58] sm:$0xff]   ;;  %v2794_v20 = vld [vmem:[%s3071_s23 + $0x60] sm:$0xff]   ;;  %v2795_v21 = vld [vmem:[%s3071_s23 + $0x68] sm:$0xff]   ;;  %308 = vst.msk [vmem:[#allocation2 + $0x68] sm:$0xff] %vm294_vm1, %v3018_v24 }
  0x17   : > { %v2796_v22 = vld [vmem:[%s3071_s23 + $0x70] sm:$0xff]   ;;  %v2797_v23 = vld [vmem:[%s3071_s23 + $0x78] sm:$0xff]   ;;  %309 = vst.msk [vmem:[#allocation2 + $0x70] sm:$0xff] %vm294_vm1, %v3018_v24  ;;  %310 = vst.msk [vmem:[#allocation2 + $0x78] sm:$0xff] %vm294_vm1, %v3018_v24 }
  0x18   : > { %311 = vst.msk [vmem:[#allocation2 + $0x80] sm:$0xff] %vm294_vm1, %v3018_v24  ;;  %312 = vst.msk [vmem:[#allocation2 + $0x88] sm:$0xff] %vm294_vm1, %v3018_v24 }
  0x19   : > { %313 = vst.msk [vmem:[#allocation2 + $0x90] sm:$0xff] %vm294_vm1, %v3018_v24  ;;  %314 = vst.msk [vmem:[#allocation2 + $0x98] sm:$0xff] %vm294_vm1, %v3018_v24 }
  0x1a   : > { %315 = vst.msk [vmem:[#allocation2 + $0xa0] sm:$0xff] %vm294_vm1, %v3018_v24  ;;  %316 = vst.msk [vmem:[#allocation2 + $0xa8] sm:$0xff] %vm294_vm1, %v3018_v24 }
  0x1b   : > { %2668 = vmatpush3.bf16.xpose.msra.mxu0 %v596_v4  ;;  %317 = vst.msk [vmem:[#allocation2 + $0xb0] sm:$0xff] %vm294_vm1, %v3018_v24  ;;  %318 = vst.msk [vmem:[#allocation2 + $0xb8] sm:$0xff] %vm294_vm1, %v3018_v24 }
  0x1c   : > { %2747 = vmatprep.subr.msk.bf16.mxu0 %vm359_vm0, %v2780_v5  ;;  %319 = vst.msk [vmem:[#allocation2 + $0xc0] sm:$0xff] %vm294_vm1, %v3018_v24  ;;  %320 = vst.msk [vmem:[#allocation2 + $0xc8] sm:$0xff] %vm294_vm1, %v3018_v24 }
  0x1d   : > { %321 = vst.msk [vmem:[#allocation2 + $0xd0] sm:$0xff] %vm294_vm1, %v3018_v24  ;;  %322 = vst.msk [vmem:[#allocation2 + $0xd8] sm:$0xff] %vm294_vm1, %v3018_v24 }
  0x1e   : > { %323 = vst.msk [vmem:[#allocation2 + $0xe0] sm:$0xff] %vm294_vm1, %v3018_v24  ;;  %324 = vst.msk [vmem:[#allocation2 + $0xe8] sm:$0xff] %vm294_vm1, %v3018_v24 }
  0x1f   : > { %325 = vst.msk [vmem:[#allocation2 + $0xf0] sm:$0xff] %vm294_vm1, %v3018_v24  ;;  %326 = vst.msk [vmem:[#allocation2 + $0xf8] sm:$0xff] %vm294_vm1, %v3018_v24 }
  0x20   : > { %360 = vst.msk [vmem:[#allocation4] sm:$0xff] %vm359_vm0, %v3020_v3  ;;  %361 = vst.msk [vmem:[#allocation4 + $0x8] sm:$0xff] %vm359_vm0, %v3020_v3 }
  0x21   : > { %327 = vst.msk [vmem:[#allocation3] sm:$0xff] %vm294_vm1, %v3020_v3  ;;  %328 = vst.msk [vmem:[#allocation3 + $0x8] sm:$0xff] %vm294_vm1, %v3020_v3 }
  0x22   : > { %329 = vst.msk [vmem:[#allocation3 + $0x10] sm:$0xff] %vm294_vm1, %v3020_v3  ;;  %330 = vst.msk [vmem:[#allocation3 + $0x18] sm:$0xff] %vm294_vm1, %v3020_v3 }
  0x23   : > { %2670 = vmatpush3.bf16.xpose.msra.mxu0 %v593_v6  ;;  %331 = vst.msk [vmem:[#allocation3 + $0x20] sm:$0xff] %vm294_vm1, %v3020_v3  ;;  %332 = vst.msk [vmem:[#allocation3 + $0x28] sm:$0xff] %vm294_vm1, %v3020_v3 }
  0x24   : > { %2748 = vmatprep.subr.msk.bf16.mxu0 %vm359_vm0, %v2781_v7  ;;  %333 = vst.msk [vmem:[#allocation3 + $0x30] sm:$0xff] %vm294_vm1, %v3020_v3  ;;  %334 = vst.msk [vmem:[#allocation3 + $0x38] sm:$0xff] %vm294_vm1, %v3020_v3 }
  0x25   : > { %335 = vst.msk [vmem:[#allocation3 + $0x40] sm:$0xff] %vm294_vm1, %v3020_v3  ;;  %336 = vst.msk [vmem:[#allocation3 + $0x48] sm:$0xff] %vm294_vm1, %v3020_v3 }
  0x26   : > { %337 = vst.msk [vmem:[#allocation3 + $0x50] sm:$0xff] %vm294_vm1, %v3020_v3  ;;  %338 = vst.msk [vmem:[#allocation3 + $0x58] sm:$0xff] %vm294_vm1, %v3020_v3 }
  0x27   : > { %339 = vst.msk [vmem:[#allocation3 + $0x60] sm:$0xff] %vm294_vm1, %v3020_v3  ;;  %340 = vst.msk [vmem:[#allocation3 + $0x68] sm:$0xff] %vm294_vm1, %v3020_v3 }
  0x28   : > { %341 = vst.msk [vmem:[#allocation3 + $0x70] sm:$0xff] %vm294_vm1, %v3020_v3  ;;  %342 = vst.msk [vmem:[#allocation3 + $0x78] sm:$0xff] %vm294_vm1, %v3020_v3 }
  0x29   : > { %343 = vst.msk [vmem:[#allocation3 + $0x80] sm:$0xff] %vm294_vm1, %v3020_v3  ;;  %344 = vst.msk [vmem:[#allocation3 + $0x88] sm:$0xff] %vm294_vm1, %v3020_v3 }
  0x2a   : > { %345 = vst.msk [vmem:[#allocation3 + $0x90] sm:$0xff] %vm294_vm1, %v3020_v3  ;;  %346 = vst.msk [vmem:[#allocation3 + $0x98] sm:$0xff] %vm294_vm1, %v3020_v3 }
  0x2b   : > { %2672 = vmatpush3.bf16.xpose.msra.mxu0 %v590_v8  ;;  %347 = vst.msk [vmem:[#allocation3 + $0xa0] sm:$0xff] %vm294_vm1, %v3020_v3  ;;  %348 = vst.msk [vmem:[#allocation3 + $0xa8] sm:$0xff] %vm294_vm1, %v3020_v3 }
  0x2c   : > { %349 = vst.msk [vmem:[#allocation3 + $0xb0] sm:$0xff] %vm294_vm1, %v3020_v3  ;;  %350 = vst.msk [vmem:[#allocation3 + $0xb8] sm:$0xff] %vm294_vm1, %v3020_v3 }
  0x2d   : > { %351 = vst.msk [vmem:[#allocation3 + $0xc0] sm:$0xff] %vm294_vm1, %v3020_v3  ;;  %352 = vst.msk [vmem:[#allocation3 + $0xc8] sm:$0xff] %vm294_vm1, %v3020_v3 }
  0x2e   : > { %353 = vst.msk [vmem:[#allocation3 + $0xd0] sm:$0xff] %vm294_vm1, %v3020_v3  ;;  %354 = vst.msk [vmem:[#allocation3 + $0xd8] sm:$0xff] %vm294_vm1, %v3020_v3 }
  0x2f   : > { %355 = vst.msk [vmem:[#allocation3 + $0xe0] sm:$0xff] %vm294_vm1, %v3020_v3  ;;  %356 = vst.msk [vmem:[#allocation3 + $0xe8] sm:$0xff] %vm294_vm1, %v3020_v3 }
  0x30   : > { %357 = vst.msk [vmem:[#allocation3 + $0xf0] sm:$0xff] %vm294_vm1, %v3020_v3  ;;  %358 = vst.msk [vmem:[#allocation3 + $0xf8] sm:$0xff] %vm294_vm1, %v3020_v3 }
  0x31   : > { %362 = vst.msk [vmem:[#allocation4 + $0x10] sm:$0xff] %vm359_vm0, %v3020_v3  ;;  %363 = vst.msk [vmem:[#allocation4 + $0x18] sm:$0xff] %vm359_vm0, %v3020_v3 }
  0x32   : > { %2674 = vmatmul.mubr.msk.bf16.vlgmr.msra.gmra.mxu0 %vm359_vm0, %v2783_v9  ;;  %364 = vst.msk [vmem:[#allocation4 + $0x20] sm:$0xff] %vm359_vm0, %v3020_v3  ;;  %365 = vst.msk [vmem:[#allocation4 + $0x28] sm:$0xff] %vm359_vm0, %v3020_v3 }
  0x33   : > { %2677 = vmatprep.mubr.msk.bf16.mxu0 %vm359_vm0, %v2784_v10  ;;  %366 = vst.msk [vmem:[#allocation4 + $0x30] sm:$0xff] %vm359_vm0, %v3020_v3  ;;  %367 = vst.msk [vmem:[#allocation4 + $0x38] sm:$0xff] %vm359_vm0, %v3020_v3 }
  0x34   : > { %368 = vst.msk [vmem:[#allocation4 + $0x40] sm:$0xff] %vm359_vm0, %v3020_v3  ;;  %369 = vst.msk [vmem:[#allocation4 + $0x48] sm:$0xff] %vm359_vm0, %v3020_v3 }
  0x35   : > { %370 = vst.msk [vmem:[#allocation4 + $0x50] sm:$0xff] %vm359_vm0, %v3020_v3  ;;  %371 = vst.msk [vmem:[#allocation4 + $0x58] sm:$0xff] %vm359_vm0, %v3020_v3 }
  0x36   : > { %372 = vst.msk [vmem:[#allocation4 + $0x60] sm:$0xff] %vm359_vm0, %v3020_v3  ;;  %373 = vst.msk [vmem:[#allocation4 + $0x68] sm:$0xff] %vm359_vm0, %v3020_v3 }
  0x37   : > { %374 = vst.msk [vmem:[#allocation4 + $0x70] sm:$0xff] %vm359_vm0, %v3020_v3  ;;  %375 = vst.msk [vmem:[#allocation4 + $0x78] sm:$0xff] %vm359_vm0, %v3020_v3 }
  0x38   : > { %376 = vst.msk [vmem:[#allocation4 + $0x80] sm:$0xff] %vm359_vm0, %v3020_v3  ;;  %377 = vst.msk [vmem:[#allocation4 + $0x88] sm:$0xff] %vm359_vm0, %v3020_v3 }
  0x39   : > { %378 = vst.msk [vmem:[#allocation4 + $0x90] sm:$0xff] %vm359_vm0, %v3020_v3  ;;  %379 = vst.msk [vmem:[#allocation4 + $0x98] sm:$0xff] %vm359_vm0, %v3020_v3 }
  0x3a   : > { %2678 = vmatmul.mubr.msk.bf16.gmra.mxu0 %vm359_vm0, %v2785_v11  ;;  %380 = vst.msk [vmem:[#allocation4 + $0xa0] sm:$0xff] %vm359_vm0, %v3020_v3  ;;  %381 = vst.msk [vmem:[#allocation4 + $0xa8] sm:$0xff] %vm359_vm0, %v3020_v3 }
  0x3b   : > { %2681 = vmatprep.mubr.msk.bf16.mxu0 %vm359_vm0, %v2786_v12  ;;  %382 = vst.msk [vmem:[#allocation4 + $0xb0] sm:$0xff] %vm359_vm0, %v3020_v3  ;;  %383 = vst.msk [vmem:[#allocation4 + $0xb8] sm:$0xff] %vm359_vm0, %v3020_v3 }
  0x3c   : > { %384 = vst.msk [vmem:[#allocation4 + $0xc0] sm:$0xff] %vm359_vm0, %v3020_v3  ;;  %385 = vst.msk [vmem:[#allocation4 + $0xc8] sm:$0xff] %vm359_vm0, %v3020_v3 }
  0x3d   : > { %386 = vst.msk [vmem:[#allocation4 + $0xd0] sm:$0xff] %vm359_vm0, %v3020_v3  ;;  %387 = vst.msk [vmem:[#allocation4 + $0xd8] sm:$0xff] %vm359_vm0, %v3020_v3 }
  0x3e   : > { %388 = vst.msk [vmem:[#allocation4 + $0xe0] sm:$0xff] %vm359_vm0, %v3020_v3  ;;  %389 = vst.msk [vmem:[#allocation4 + $0xe8] sm:$0xff] %vm359_vm0, %v3020_v3 }
  0x3f   : > { %390 = vst.msk [vmem:[#allocation4 + $0xf0] sm:$0xff] %vm359_vm0, %v3020_v3  ;;  %391 = vst.msk [vmem:[#allocation4 + $0xf8] sm:$0xff] %vm359_vm0, %v3020_v3 }
  0x42   : > { %2682 = vmatmul.mubr.msk.bf16.gmra.mxu0 %vm359_vm0, %v2787_v13 }
  0x43   : > { %2685 = vmatprep.mubr.msk.bf16.mxu0 %vm359_vm0, %v2788_v14 }
  0x4a   : > { %2686 = vmatmul.mubr.msk.bf16.gmra.mxu0 %vm359_vm0, %v2789_v15 }
  0x4b   : > { %2689 = vmatprep.mubr.msk.bf16.mxu0 %vm359_vm0, %v2790_v16 }
  0x52   : > { %2690 = vmatmul.mubr.msk.bf16.gmra.mxu0 %vm359_vm0, %v2791_v17 }
  0x53   : > { %2693 = vmatprep.mubr.msk.bf16.mxu0 %vm359_vm0, %v2792_v18 }
  0x5a   : > { %2694 = vmatmul.mubr.msk.bf16.gmra.mxu0 %vm359_vm0, %v2793_v19 }
  0x5b   : > { %2697 = vmatprep.mubr.msk.bf16.mxu0 %vm359_vm0, %v2794_v20 }
  0x62   : > { %2698 = vmatmul.mubr.msk.bf16.gmra.mxu0 %vm359_vm0, %v2795_v21 }
  0x63   : > { %2701 = vmatprep.mubr.msk.bf16.mxu0 %vm359_vm0, %v2796_v22 }
  0x6a   : > { %2702 = vmatmul.mubr.msk.bf16.gmra.mxu0 %vm359_vm0, %v2797_v23 }
  0xf2   : > { %v2675_v25 = vpop.f32.mrf.mxu0 }
  0xf3   : > { %v3145_v26 = vmul.f32 0.35355338, %v2675_v25 }
  0xf4   : > { %v635_v27 = vpop.f32.mrf.mxu0 }
  0xf5   : > { %4219 = vst [vmem:[#allocation5_spill] sm:$0xff] %v3145_v26  ;;  %v3147_v28 = vmul.f32 0.35355338, %v635_v27  ;;  %v833_v29 = vsel %vm826_vm2, %v3145_v26, -inf }
  0xf6   : > { %834 = vmax.xlane.f32.xlu1 %v833_v29  ;;  %v2676_v30 = vpop.f32.mrf.mxu0 }
  0xf7   : > { %v3151_v31 = vmul.f32 0.35355338, %v2676_v30  ;;  %v827_v32 = vsel %vm826_vm2, %v3147_v28, -inf }
  0xf8   : > { %828 = vmax.xlane.f32.xlu0 %v827_v32  ;;  %v638_v33 = vpop.f32.mrf.mxu0 }
  0xf9   : > { %v3155_v34 = vmul.f32 0.35355338, %v638_v33  ;;  %v836_v35 = vsel %vm826_vm2, %v3151_v31, -inf }
  0xfa   : > { %837 = vmax.xlane.f32.xlu1 %v836_v35  ;;  %v2679_v36 = vpop.f32.mrf.mxu0 }
  0xfb   : > { %4220 = vst [vmem:[#allocation6_spill] sm:$0xff] %v3155_v34  ;;  %v3159_v37 = vmul.f32 0.35355338, %v2679_v36  ;;  %v830_v38 = vsel %vm826_vm2, %v3155_v34, -inf  ;;  %v3652_v34 = vld [vmem:[#allocation2 + $0xe8] sm:$0xff] }
  0xfc   : > { %831 = vmax.xlane.f32.xlu0 %v830_v38  ;;  %v651_v39 = vpop.f32.mrf.mxu0 }
  0xfd   : > { %4221 = vst [vmem:[#allocation7_spill] sm:$0xff] %v3159_v37  ;;  %v845_v40 = vsel %vm826_vm2, %v3159_v37, -inf  ;;  %v3165_v42 = vmul.f32 0.35355338, %v651_v39 }
  0xfe   : > { %v2680_v41 = vpop.f32.mrf.mxu0 }
  0xff   : > { %4222 = vst [vmem:[#allocation8_spill] sm:$0xff] %v3165_v42  ;;  %v3167_v43 = vmul.f32 0.35355338, %v2680_v41  ;;  %v839_v50 = vsel %vm826_vm2, %v3165_v42, -inf }
 0x100   : > { %846 = vmax.xlane.f32.xlu0 %v845_v40  ;;  %v654_v44 = vpop.f32.mrf.mxu0 }
 0x101   : > { %4223 = vst [vmem:[#allocation9_spill] sm:$0xff] %v3167_v43  ;;  %v3169_v45 = vmul.f32 0.35355338, %v654_v44  ;;  %v848_v46 = vsel %vm826_vm2, %v3167_v43, -inf }
 0x102   : > { %849 = vmax.xlane.f32.xlu1 %v848_v46  ;;  %v2683_v48 = vpop.f32.mrf.mxu0 }
 0x103   : > { %4224 = vst [vmem:[#allocation10_spill] sm:$0xff] %v3169_v45  ;;  %v3173_v49 = vmul.f32 0.35355338, %v2683_v48  ;;  %v842_v53 = vsel %vm826_vm2, %v3169_v45, -inf  ;;  %v3632_v45 = vld [vmem:[#allocation2 + $0xf8] sm:$0xff] }
 0x104   : > { %840 = vmax.xlane.f32.xlu0 %v839_v50  ;;  %v667_v51 = vpop.f32.mrf.mxu0 }
 0x105   : > { %4225 = vst [vmem:[#allocation11_spill] sm:$0xff] %v3173_v49  ;;  %v3177_v52 = vmul.f32 0.35355338, %v667_v51  ;;  %v857_v54 = vsel %vm826_vm2, %v3173_v49, -inf }
 0x106   : > { %843 = vmax.xlane.f32.xlu1 %v842_v53  ;;  %v2684_v55 = vpop.f32.mrf.mxu0 }
 0x107   : > { %4226 = vst [vmem:[#allocation12_spill] sm:$0xff] %v3177_v52  ;;  %v3183_v56 = vmul.f32 0.35355338, %v2684_v55  ;;  %v851_v60 = vsel %vm826_vm2, %v3177_v52, -inf  ;;  %v3614_v52 = vld [vmem:[#allocation2 + $0xc8] sm:$0xff] }
 0x108   : > { %v670_v57 = vpop.f32.mrf.mxu0  ;;  %858 = vmax.xlane.f32.xlu0 %v857_v54 }
 0x109   : > { %4227 = vst [vmem:[#allocation13_spill] sm:$0xff] %v3183_v56  ;;  %v860_v58 = vsel %vm826_vm2, %v3183_v56, -inf  ;;  %v3187_v59 = vmul.f32 0.35355338, %v670_v57 }
 0x10a   : > { %861 = vmax.xlane.f32.xlu1 %v860_v58  ;;  %v2687_v61 = vpop.f32.mrf.mxu0 }
 0x10b   : > { %4228 = vst [vmem:[#allocation14_spill] sm:$0xff] %v3187_v59  ;;  %v3191_v62 = vmul.f32 0.35355338, %v2687_v61  ;;  %v3195_v63 = vsel %vm826_vm2, %v3187_v59, -inf }
 0x10c   : > { %v683_v0 = vpop.f32.mrf.mxu0  ;;  %852 = vmax.xlane.f32.xlu0 %v851_v60 }
 0x10d   : > { %4229 = vst [vmem:[#allocation15_spill] sm:$0xff] %v3191_v62  ;;  %v3197_v1 = vmul.f32 0.35355338, %v683_v0  ;;  %v3201_v2 = vsel %vm826_vm2, %v3191_v62, -inf }
 0x10e   : > { %855 = vmax.xlane.f32.xlu1 %v3195_v63  ;;  %v2688_v4 = vpop.f32.mrf.mxu0 }
 0x10f   : > { %4230 = vst [vmem:[#allocation16_spill] sm:$0xff] %v3197_v1  ;;  %v3332_v5 = vmul.f32 0.35355338, %v2688_v4  ;;  %v863_v9 = vsel %vm826_vm2, %v3197_v1, -inf }
 0x110   : > { %v686_v6 = vpop.f32.mrf.mxu0  ;;  %870 = vmax.xlane.f32.xlu0 %v3201_v2 }
 0x111   : > { %4231 = vst [vmem:[#allocation17_spill] sm:$0xff] %v3332_v5  ;;  %v3335_v7 = vmul.f32 0.35355338, %v686_v6  ;;  %v872_v8 = vsel %vm826_vm2, %v3332_v5, -inf }
 0x112   : > { %873 = vmax.xlane.f32.xlu1 %v872_v8  ;;  %v2691_v10 = vpop.f32.mrf.mxu0 }
 0x113   : > { %4232 = vst [vmem:[#allocation18_spill] sm:$0xff] %v3335_v7  ;;  %v3341_v11 = vmul.f32 0.35355338, %v2691_v10  ;;  %v866_v12 = vsel %vm826_vm2, %v3335_v7, -inf  ;;  %v3605_v7 = vld [vmem:[#allocation2 + $0xc0] sm:$0xff] }
 0x114   : > { %v699_v13 = vpop.f32.mrf.mxu0  ;;  %864 = vmax.xlane.f32.xlu0 %v863_v9 }
 0x115   : > { %4233 = vst [vmem:[#allocation19_spill] sm:$0xff] %v3341_v11  ;;  %v3345_v14 = vmul.f32 0.35355338, %v699_v13  ;;  %v881_v15 = vsel %vm826_vm2, %v3341_v11, -inf  ;;  %v3589_v11 = vld [vmem:[#allocation2 + $0xd0] sm:$0xff] }
 0x116   : > { %867 = vmax.xlane.f32.xlu1 %v866_v12  ;;  %v2692_v16 = vpop.f32.mrf.mxu0  ;;  %v3407_v12 = vld [vmem:[#allocation2 + $0x10] sm:$0xff] }
 0x117   : > { %4234 = vst [vmem:[#allocation20_spill] sm:$0xff] %v3345_v14  ;;  %v3349_v17 = vmul.f32 0.35355338, %v2692_v16  ;;  %v875_v21 = vsel %vm826_vm2, %v3345_v14, -inf  ;;  %v3580_v14 = vld [vmem:[#allocation2 + $0xa8] sm:$0xff] }
 0x118   : > { %v702_v18 = vpop.f32.mrf.mxu0  ;;  %882 = vmax.xlane.f32.xlu0 %v881_v15  ;;  %v794_v15 = vld [vmem:[#allocation2] sm:$0xff] }
 0x119   : > { %4235 = vst [vmem:[#allocation21_spill] sm:$0xff] %v3349_v17  ;;  %v3351_v19 = vmul.f32 0.35355338, %v702_v18  ;;  %v884_v20 = vsel %vm826_vm2, %v3349_v17, -inf }
 0x11a   : > { %885 = vmax.xlane.f32.xlu1 %v884_v20  ;;  %v2695_v22 = vpop.f32.mrf.mxu0  ;;  %v3412_v20 = vld [vmem:[#allocation2 + $0x18] sm:$0xff] }
 0x11b   : > { %4236 = vst [vmem:[#allocation22_spill] sm:$0xff] %v3351_v19  ;;  %v3357_v23 = vmul.f32 0.35355338, %v2695_v22  ;;  %v878_v24 = vsel %vm826_vm2, %v3351_v19, -inf  ;;  %v3596_v19 = vld [vmem:[#allocation2 + $0xd8] sm:$0xff] }
 0x11c   : > { %v715_v25 = vpop.f32.mrf.mxu0  ;;  %876 = vmax.xlane.f32.xlu0 %v875_v21 }
 0x11d   : > { %4237 = vst [vmem:[#allocation23_spill] sm:$0xff] %v3357_v23  ;;  %v3361_v27 = vmul.f32 0.35355338, %v715_v25  ;;  %v893_v29 = vsel %vm826_vm2, %v3357_v23, -inf  ;;  %v3573_v23 = vld [vmem:[#allocation2 + $0xa0] sm:$0xff] }
 0x11e   : > { %879 = vmax.xlane.f32.xlu1 %v878_v24  ;;  %v2696_v30 = vpop.f32.mrf.mxu0  ;;  %v795_v24 = vld [vmem:[#allocation2 + $0x8] sm:$0xff] }
 0x11f   : > { %4238 = vst [vmem:[#allocation24_spill] sm:$0xff] %v3361_v27  ;;  %v3365_v32 = vmul.f32 0.35355338, %v2696_v30  ;;  %v887_v38 = vsel %vm826_vm2, %v3361_v27, -inf  ;;  %v3564_v27 = vld [vmem:[#allocation2 + $0xb8] sm:$0xff] }
 0x120   : > { %v718_v33 = vpop.f32.mrf.mxu0  ;;  %894 = vmax.xlane.f32.xlu0 %v893_v29 }
 0x121   : > { %4239 = vst [vmem:[#allocation25_spill] sm:$0xff] %v3365_v32  ;;  %v3367_v35 = vmul.f32 0.35355338, %v718_v33  ;;  %v896_v36 = vsel %vm826_vm2, %v3365_v32, -inf }
 0x122   : > { %897 = vmax.xlane.f32.xlu1 %v896_v36  ;;  %v2699_v39 = vpop.f32.mrf.mxu0  ;;  %v3424_v36 = vld [vmem:[#allocation2 + $0x30] sm:$0xff] }
 0x123   : > { %4240 = vst [vmem:[#allocation26_spill] sm:$0xff] %v3367_v35  ;;  %v3373_v40 = vmul.f32 0.35355338, %v2699_v39  ;;  %v890_v41 = vsel %vm826_vm2, %v3367_v35, -inf  ;;  %v3427_v39 = vld [vmem:[#allocation2 + $0x38] sm:$0xff] }
 0x124   : > { %v731_v44 = vpop.f32.mrf.mxu0  ;;  %888 = vmax.xlane.f32.xlu0 %v887_v38 }
 0x125   : > { %4241 = vst [vmem:[#allocation27_spill] sm:$0xff] %v3373_v40  ;;  %v3377_v46 = vmul.f32 0.35355338, %v731_v44  ;;  %v905_v47 = vsel %vm826_vm2, %v3373_v40, -inf  ;;  %v2798_v44 = vld [vmem:[%s3434_s26 + $0x18] sm:$0xff]   ;;  %v3555_v40 = vld [vmem:[#allocation2 + $0xb0] sm:$0xff] }
 0x126   : > { %891 = vmax.xlane.f32.xlu1 %v890_v41  ;;  %v2700_v48 = vpop.f32.mrf.mxu0  ;;  %2705 = vmatprep.subr.bf16.mxu1 %v2798_v44 }
 0x127   : > { %4242 = vst [vmem:[#allocation28_spill] sm:$0xff] %v3377_v46  ;;  %v3381_v50 = vmul.f32 0.35355338, %v2700_v48  ;;  %v899_v55 = vsel %vm826_vm2, %v3377_v46, -inf  ;;  %v3440_v48 = vld [vmem:[#allocation2 + $0x20] sm:$0xff]  ;;  %2706 = vmatpush3.bf16.msra.mxu1 %v2798_v44 }
 0x128   : > { %v734_v51 = vpop.f32.mrf.mxu0  ;;  %906 = vmax.xlane.f32.xlu0 %v905_v47 }
 0x129   : > { %4243 = vst [vmem:[#allocation29_spill] sm:$0xff] %v3381_v50  ;;  %v3383_v53 = vmul.f32 0.35355338, %v734_v51  ;;  %v908_v54 = vsel %vm826_vm2, %v3381_v50, -inf }
 0x12a   : > { %909 = vmax.xlane.f32.xlu1 %v908_v54  ;;  %v2703_v57 = vpop.f32.mrf.mxu0 }
 0x12b   : > { %4244 = vst [vmem:[#allocation30_spill] sm:$0xff] %v3383_v53  ;;  %v3389_v58 = vmul.f32 0.35355338, %v2703_v57  ;;  %v902_v60 = vsel %vm826_vm2, %v3383_v53, -inf  ;;  %v3447_v57 = vld [vmem:[#allocation2 + $0x28] sm:$0xff] }
 0x12c   : > { %v747_v61 = vpop.f32.mrf.mxu0  ;;  %900 = vmax.xlane.f32.xlu0 %v899_v55 }
 0x12d   : > { %4245 = vst [vmem:[#allocation31_spill] sm:$0xff] %v3389_v58  ;;  %v3393_v63 = vmul.f32 0.35355338, %v747_v61  ;;  %v917_v0 = vsel %vm826_vm2, %v3389_v58, -inf  ;;  %v3539_v58 = vld [vmem:[#allocation2 + $0x80] sm:$0xff] }
 0x12e   : > { %903 = vmax.xlane.f32.xlu1 %v902_v60  ;;  %v2704_v2 = vpop.f32.mrf.mxu0  ;;  %v2799_v60 = vld [vmem:[%s3434_s26 + $0x10] sm:$0xff]  }
 0x12f   : > { %4246 = vst [vmem:[#allocation32_spill] sm:$0xff] %v3393_v63  ;;  %v3397_v3 = vmul.f32 0.35355338, %v2704_v2  ;;  %v911_v9 = vsel %vm826_vm2, %v3393_v63, -inf  ;;  %v3456_v2 = vld [vmem:[#allocation2 + $0x50] sm:$0xff]  ;;  %2707 = vmatprep.subr.bf16.mxu1 %v2799_v60 }
 0x130   : > { %v750_v4 = vpop.f32.mrf.mxu0  ;;  %918 = vmax.xlane.f32.xlu0 %v917_v0  ;;  %2708 = vmatpush3.bf16.msra.mxu1 %v2799_v60 }
 0x131   : > { %4247 = vst [vmem:[#allocation33_spill] sm:$0xff] %v3397_v3  ;;  %v920_v6 = vsel %vm826_vm2, %v3397_v3, -inf  ;;  %v3401_v8 = vmul.f32 0.35355338, %v750_v4 }
 0x132   : > { %921 = vmax.xlane.f32.xlu1 %v920_v6  ;;  %v3463_v6 = vld [vmem:[#allocation2 + $0x58] sm:$0xff] }
 0x133   : > { %4248 = vst [vmem:[#allocation34_spill] sm:$0xff] %v3401_v8  ;;  %v914_v10 = vsel %vm826_vm2, %v3401_v8, -inf }
 0x134   : > { %912 = vmax.xlane.f32.xlu0 %v911_v9 }
 0x136   : > { %915 = vmax.xlane.f32.xlu1 %v914_v10 }
 0x17f   : > { %v835_v13 = vpop.xlane.xlu1 %834 }
 0x180   : > { %v3410_v16 = vmax.f32 %v3407_v12, %v835_v13  ;;  %v2800_v13 = vld [vmem:[%s3434_s26 + $0x8] sm:$0xff]  }
 0x181   : > { %v829_v18 = vpop.xlane.xlu0 %828  ;;  %2709 = vmatprep.subr.bf16.mxu1 %v2800_v13 }
 0x182   : > { %2071 = vst.msk [vmem:[#allocation2 + $0x10] sm:$0xff] %vm294_vm1, %v3410_v16  ;;  %v923_v21 = vmax.f32 %v794_v15, %v829_v18  ;;  %1063 = vperm.xlu1 %2777, %v3410_v16   ;;  %v3472_v18 = vld [vmem:[#allocation2 + $0x40] sm:$0xff]  ;;  %2710 = vmatpush3.bf16.msra.mxu1 %v2800_v13 }
 0x183   : > { %v838_v22 = vpop.xlane.xlu1 %837 }
 0x184   : > { %v955_v25 = vsub.f32 %v794_v15, %v923_v21  ;;  %2069 = vst.msk [vmem:[#allocation2] sm:$0xff] %vm294_vm1, %v923_v21  ;;  %v3419_v29 = vmax.f32 %v3412_v20, %v838_v22  ;;  %1053 = vperm.xlu0 %2776, %v923_v21  }
 0x185   : > { %v832_v30 = vpop.xlane.xlu0 %831 }
 0x186   : > { %2072 = vst.msk [vmem:[#allocation2 + $0x18] sm:$0xff] %vm294_vm1, %v3419_v29  ;;  %v924_v33 = vmax.f32 %v795_v24, %v832_v30  ;;  %1068 = vperm.xlu1 %2777, %v3419_v29   ;;  %v987_v38 = vmul.f32 1.442695, %v955_v25  ;;  %v3479_v30 = vld [vmem:[#allocation2 + $0x48] sm:$0xff] }
 0x188   : > { %2070 = vst.msk [vmem:[#allocation2 + $0x8] sm:$0xff] %vm294_vm1, %v924_v33  ;;  %2802 = vpow2.f32 %v987_v38  ;;  %v956_v21 = vsub.f32 %v795_v24, %v924_v33 }
 0x189   : > { %v847_v41 = vpop.xlane.xlu0 %846 }
 0x18a   : > { %v3438_v47 = vmax.f32 %v3424_v36, %v847_v41  ;;  %1058 = vperm.xlu1 %2777, %v924_v33   ;;  %v2801_v33 = vld [vmem:[%s3434_s26] sm:$0xff]   ;;  %v3489_v41 = vld [vmem:[#allocation2 + $0x70] sm:$0xff]  ;;  %v989_v44 = vmul.f32 1.442695, %v956_v21 }
 0x18b   : > { %v850_v51 = vpop.xlane.xlu1 %849  ;;  %2711 = vmatprep.subr.bf16.mxu1 %v2801_v33 }
 0x18c   : > { %2075 = vst.msk [vmem:[#allocation2 + $0x30] sm:$0xff] %vm294_vm1, %v3438_v47  ;;  %v3445_v54 = vmax.f32 %v3427_v39, %v850_v51  ;;  %2712 = vmatpush3.bf16.msra.mxu1 %v2801_v33  ;;  %2804 = vpow2.f32 %v989_v44  ;;  %v3514_v33 = vld [vmem:[#allocation2 + $0x68] sm:$0xff] }
 0x18d   : > { %v841_v55 = vpop.xlane.xlu0 %840 }
 0x18e   : > { %2076 = vst.msk [vmem:[#allocation2 + $0x38] sm:$0xff] %vm294_vm1, %v3445_v54  ;;  %v3453_v61 = vmax.f32 %v3440_v48, %v841_v55  ;;  %1083 = vperm.xlu1 %2777, %v3438_v47  }
 0x18f   : > { %v844_v0 = vpop.xlane.xlu1 %843 }
 0x190   : > { %2073 = vst.msk [vmem:[#allocation2 + $0x20] sm:$0xff] %vm294_vm1, %v3453_v61  ;;  %v3461_v4 = vmax.f32 %v3447_v57, %v844_v0  ;;  %v3498_v0 = vld [vmem:[#allocation2 + $0x78] sm:$0xff] }
 0x191   : > { %v859_v9 = vpop.xlane.xlu0 %858 }
 0x192   : > { %2074 = vst.msk [vmem:[#allocation2 + $0x28] sm:$0xff] %vm294_vm1, %v3461_v4  ;;  %1073 = vperm.xlu1 %2777, %v3453_v61   ;;  %v3469_v10 = vmax.f32 %v3456_v2, %v859_v9  ;;  %v960_v49 = vsub.f32 %v3447_v57, %v3461_v4  ;;  %v957_v57 = vsub.f32 %v3407_v12, %v3410_v16 }
 0x193   : > { %v862_v15 = vpop.xlane.xlu1 %861 }
 0x194   : > { %v3475_v22 = vmax.f32 %v3463_v6, %v862_v15  ;;  %2079 = vst.msk [vmem:[#allocation2 + $0x50] sm:$0xff] %vm294_vm1, %v3469_v10  ;;  %v3507_v15 = vld [vmem:[#allocation2 + $0x60] sm:$0xff]  ;;  %v997_v42 = vmul.f32 1.442695, %v960_v49  ;;  %v991_v16 = vmul.f32 1.442695, %v957_v57 }
 0x195   : > { %v853_v25 = vpop.xlane.xlu0 %852  ;;  %v3496_v55 = vpop.eup %2802 }
 0x196   : > { %2080 = vst.msk [vmem:[#allocation2 + $0x58] sm:$0xff] %vm294_vm1, %v3475_v22  ;;  %1108 = vperm.xlu0 %2776, %v3475_v22   ;;  %1088 = vperm.xlu1 %2777, %v3445_v54   ;;  %v3486_v24 = vmax.f32 %v3472_v18, %v853_v25  ;;  %4249 = vst [vmem:[#allocation35_spill] sm:$0xff] %v3496_v55 }
 0x197   : > { %v856_v38 = vpop.xlane.xlu1 %855 }
 0x198   : > { %2077 = vst.msk [vmem:[#allocation2 + $0x40] sm:$0xff] %vm294_vm1, %v3486_v24  ;;  %v3494_v51 = vmax.f32 %v3479_v30, %v856_v38  ;;  %v963_v57 = vsub.f32 %v3472_v18, %v3486_v24 }
 0x199   : > { %v871_v60 = vpop.xlane.xlu0 %870  ;;  %v3562_v53 = vpop.eup %2804 }
 0x19a   : > { %1566 = vperm.xlu0 %2776, %v3496_v55   ;;  %1078 = vperm.xlu1 %2777, %v3461_v4   ;;  %2078 = vst.msk [vmem:[#allocation2 + $0x48] sm:$0xff] %vm294_vm1, %v3494_v51  ;;  %v3505_v9 = vmax.f32 %v3489_v41, %v871_v60  ;;  %v3523_v60 = vld [vmem:[#allocation2 + $0x90] sm:$0xff]  ;;  %v3530_v55 = vld [vmem:[#allocation2 + $0x98] sm:$0xff]  ;;  %4250 = vst [vmem:[#allocation36_spill] sm:$0xff] %v3562_v53 }
 0x19b   : > { %v874_v13 = vpop.xlane.xlu1 %873 }
 0x19c   : > { %2083 = vst.msk [vmem:[#allocation2 + $0x70] sm:$0xff] %vm294_vm1, %v3505_v9  ;;  %v3512_v21 = vmax.f32 %v3498_v0, %v874_v13 }
 0x19d   : > { %v865_v25 = vpop.xlane.xlu0 %864 }
 0x19e   : > { %1098 = vperm.xlu0 %2776, %v3494_v51   ;;  %1103 = vperm.xlu1 %2777, %v3469_v10   ;;  %2084 = vst.msk [vmem:[#allocation2 + $0x78] sm:$0xff] %vm294_vm1, %v3512_v21  ;;  %v3521_v38 = vmax.f32 %v3507_v15, %v865_v25  ;;  %v970_v18 = vsub.f32 %v3498_v0, %v3512_v21 }
 0x19f   : > { %v868_v44 = vpop.xlane.xlu1 %867 }
 0x1a0   : > { %2081 = vst.msk [vmem:[#allocation2 + $0x60] sm:$0xff] %vm294_vm1, %v3521_v38  ;;  %v3528_v13 = vmax.f32 %v3514_v33, %v868_v44  ;;  %v3546_v44 = vld [vmem:[#allocation2 + $0x88] sm:$0xff] }
 0x1a1   : > { %v883_v63 = vpop.xlane.xlu0 %882 }
 0x1a2   : > { %1128 = vperm.xlu0 %2776, %v3512_v21   ;;  %1093 = vperm.xlu1 %2777, %v3486_v24   ;;  %2082 = vst.msk [vmem:[#allocation2 + $0x68] sm:$0xff] %vm294_vm1, %v3528_v13  ;;  %v3537_v25 = vmax.f32 %v3523_v60, %v883_v63  ;;  %v969_v21 = vsub.f32 %v3489_v41, %v3505_v9 }
 0x1a3   : > { %v886_v3 = vpop.xlane.xlu1 %885 }
 0x1a4   : > { %v3542_v8 = vmax.f32 %v3530_v55, %v886_v3  ;;  %2087 = vst.msk [vmem:[#allocation2 + $0x90] sm:$0xff] %vm294_vm1, %v3537_v25 }
 0x1a5   : > { %v877_v46 = vpop.xlane.xlu0 %876 }
 0x1a6   : > { %1118 = vperm.xlu0 %2776, %v3528_v13   ;;  %1123 = vperm.xlu1 %2777, %v3505_v9   ;;  %2088 = vst.msk [vmem:[#allocation2 + $0x98] sm:$0xff] %vm294_vm1, %v3542_v8  ;;  %v3553_v63 = vmax.f32 %v3539_v58, %v877_v46 }
 0x1a7   : > { %v880_v50 = vpop.xlane.xlu1 %879 }
 0x1a8   : > { %v3558_v3 = vmax.f32 %v3546_v44, %v880_v50  ;;  %2085 = vst.msk [vmem:[#allocation2 + $0x80] sm:$0xff] %vm294_vm1, %v3553_v63 }
 0x1a9   : > { %v895_v32 = vpop.xlane.xlu0 %894 }
 0x1aa   : > { %1148 = vperm.xlu0 %2776, %v3542_v8   ;;  %1571 = vperm.xlu1 %2777, %v3562_v53   ;;  %2086 = vst.msk [vmem:[#allocation2 + $0x88] sm:$0xff] %vm294_vm1, %v3558_v3  ;;  %v3571_v46 = vmax.f32 %v3555_v40, %v895_v32 }
 0x1ab   : > { %v898_v50 = vpop.xlane.xlu1 %897 }
 0x1ac   : > { %v3576_v35 = vmax.f32 %v3564_v27, %v898_v50  ;;  %2091 = vst.msk [vmem:[#allocation2 + $0xb0] sm:$0xff] %vm294_vm1, %v3571_v46 }
 0x1ad   : > { %v889_v17 = vpop.xlane.xlu0 %888 }
 0x1ae   : > { %1138 = vperm.xlu0 %2776, %v3558_v3   ;;  %1113 = vperm.xlu1 %2777, %v3521_v38   ;;  %2092 = vst.msk [vmem:[#allocation2 + $0xb8] sm:$0xff] %vm294_vm1, %v3576_v35  ;;  %v3587_v32 = vmax.f32 %v3573_v23, %v889_v17 }
 0x1af   : > { %v892_v53 = vpop.xlane.xlu1 %891 }
 0x1b0   : > { %v3592_v50 = vmax.f32 %v3580_v14, %v892_v53  ;;  %2089 = vst.msk [vmem:[#allocation2 + $0xa0] sm:$0xff] %vm294_vm1, %v3587_v32  ;;  %v958_v53 = vsub.f32 %v3412_v20, %v3419_v29  ;;  %v3623_v29 = vld [vmem:[#allocation2 + $0xf0] sm:$0xff] }
 0x1b1   : > { %v907_v1 = vpop.xlane.xlu0 %906 }
 0x1b2   : > { %1168 = vperm.xlu0 %2776, %v3576_v35   ;;  %1143 = vperm.xlu1 %2777, %v3537_v25   ;;  %2090 = vst.msk [vmem:[#allocation2 + $0xa8] sm:$0xff] %vm294_vm1, %v3592_v50  ;;  %v3603_v17 = vmax.f32 %v3589_v11, %v907_v1 }
 0x1b3   : > { %v910_v5 = vpop.xlane.xlu1 %909 }
 0x1b4   : > { %v3610_v62 = vmax.f32 %v3596_v19, %v910_v5  ;;  %2095 = vst.msk [vmem:[#allocation2 + $0xd0] sm:$0xff] %vm294_vm1, %v3603_v17  ;;  %v993_v5 = vmul.f32 1.442695, %v958_v53  ;;  %v3643_v53 = vld [vmem:[#allocation2 + $0xe0] sm:$0xff] }
 0x1b5   : > { %v901_v56 = vpop.xlane.xlu0 %900 }
 0x1b6   : > { %1158 = vperm.xlu0 %2776, %v3592_v50   ;;  %1133 = vperm.xlu1 %2777, %v3553_v63   ;;  %2096 = vst.msk [vmem:[#allocation2 + $0xd8] sm:$0xff] %vm294_vm1, %v3610_v62  ;;  %v3621_v1 = vmax.f32 %v3605_v7, %v901_v56  ;;  %2806 = vpow2.f32 %v993_v5 }
 0x1b7   : > { %v904_v20 = vpop.xlane.xlu1 %903  ;;  %2808 = vpow2.f32 %v997_v42  ;;  %v961_v42 = vsub.f32 %v3424_v36, %v3438_v47  ;;  %v968_v36 = vsub.f32 %v3514_v33, %v3528_v13  ;;  %v967_v13 = vsub.f32 %v3507_v15, %v3521_v38 }
 0x1b8   : > { %v3628_v59 = vmax.f32 %v3614_v52, %v904_v20  ;;  %2093 = vst.msk [vmem:[#allocation2 + $0xc0] sm:$0xff] %vm294_vm1, %v3621_v1  ;;  %v962_v20 = vsub.f32 %v3427_v39, %v3445_v54  ;;  %v959_v39 = vsub.f32 %v3440_v48, %v3453_v61  ;;  %2810 = vpow2.f32 %v991_v16 }
 0x1b9   : > { %v919_v43 = vpop.xlane.xlu0 %918  ;;  %v966_v61 = vsub.f32 %v3463_v6, %v3475_v22  ;;  %v965_v6 = vsub.f32 %v3456_v2, %v3469_v10  ;;  %v1003_v22 = vmul.f32 1.442695, %v963_v57  ;;  %v1013_v24 = vmul.f32 1.442695, %v968_v36 }
 0x1ba   : > { %1188 = vperm.xlu0 %2776, %v3610_v62   ;;  %1163 = vperm.xlu1 %2777, %v3571_v46   ;;  %2094 = vst.msk [vmem:[#allocation2 + $0xc8] sm:$0xff] %vm294_vm1, %v3628_v59  ;;  %v3639_v56 = vmax.f32 %v3623_v29, %v919_v43  ;;  %v1001_v5 = vmul.f32 1.442695, %v962_v20  ;;  %v995_v48 = vmul.f32 1.442695, %v959_v39  ;;  %v972_v10 = vsub.f32 %v3546_v44, %v3558_v3 }
 0x1bb   : > { %v922_v4 = vpop.xlane.xlu1 %921  ;;  %v1009_v20 = vmul.f32 1.442695, %v966_v61  ;;  %v1007_v33 = vmul.f32 1.442695, %v965_v6  ;;  %v1017_v2 = vmul.f32 1.442695, %v970_v18  ;;  %v974_v15 = vsub.f32 %v3530_v55, %v3542_v8 }
 0x1bc   : > { %v3648_v37 = vmax.f32 %v3632_v45, %v922_v4  ;;  %2099 = vst.msk [vmem:[#allocation2 + $0xf0] sm:$0xff] %vm294_vm1, %v3639_v56  ;;  %v964_v4 = vsub.f32 %v3479_v30, %v3494_v51  ;;  %2812 = vpow2.f32 %v1001_v5  ;;  %v999_v51 = vmul.f32 1.442695, %v961_v42 }
 0x1bd   : > { %v913_v43 = vpop.xlane.xlu0 %912  ;;  %2814 = vpow2.f32 %v995_v48  ;;  %v1011_v39 = vmul.f32 1.442695, %v967_v13  ;;  %v1021_v38 = vmul.f32 1.442695, %v972_v10  ;;  %v1015_v44 = vmul.f32 1.442695, %v969_v21 }
 0x1be   : > { %1178 = vperm.xlu0 %2776, %v3628_v59   ;;  %1153 = vperm.xlu1 %2777, %v3587_v32   ;;  %v986_v12 = vsub.f32 %v3632_v45, %v3648_v37  ;;  %2100 = vst.msk [vmem:[#allocation2 + $0xf8] sm:$0xff] %vm294_vm1, %v3648_v37  ;;  %v3661_v49 = vmax.f32 %v3643_v53, %v913_v43  ;;  %v1005_v30 = vmul.f32 1.442695, %v964_v4  ;;  %v1025_v9 = vmul.f32 1.442695, %v974_v15 }
 0x1bf   : > { %v916_v54 = vpop.xlane.xlu1 %915  ;;  %v971_v3 = vsub.f32 %v3539_v58, %v3553_v63  ;;  %v978_v4 = vsub.f32 %v3564_v27, %v3576_v35  ;;  %v973_v55 = vsub.f32 %v3523_v60, %v3537_v25  ;;  %v976_v63 = vsub.f32 %v3580_v14, %v3592_v50 }
 0x1c0   : > { %v3668_v26 = vmax.f32 %v3652_v34, %v916_v54  ;;  %2097 = vst.msk [vmem:[#allocation2 + $0xe0] sm:$0xff] %vm294_vm1, %v3661_v49  ;;  %2816 = vpow2.f32 %v1005_v30  ;;  %v975_v35 = vsub.f32 %v3573_v23, %v3587_v32  ;;  %v982_v30 = vsub.f32 %v3596_v19, %v3610_v62 }
 0x1c1   : > { %2818 = vpow2.f32 %v999_v51  ;;  %v1019_v42 = vmul.f32 1.442695, %v971_v3  ;;  %v1033_v58 = vmul.f32 1.442695, %v978_v4  ;;  %v1023_v27 = vmul.f32 1.442695, %v973_v55 }
 0x1c2   : > { %1208 = vperm.xlu0 %2776, %v3648_v37   ;;  %1183 = vperm.xlu1 %2777, %v3603_v17   ;;  %2098 = vst.msk [vmem:[#allocation2 + $0xe8] sm:$0xff] %vm294_vm1, %v3668_v26  ;;  %2820 = vpow2.f32 %v1009_v20  ;;  %v1029_v25 = vmul.f32 1.442695, %v976_v63  ;;  %v977_v14 = vsub.f32 %v3555_v40, %v3571_v46  ;;  %v1027_v50 = vmul.f32 1.442695, %v975_v35  ;;  %v4251_v3 = vld [vmem:[#allocation5_spill] sm:$0xff] }
 0x1c3   : > { %v3686_v47 = vpop.eup %2806  ;;  %2822 = vpow2.f32 %v1003_v22  ;;  %v1041_v23 = vmul.f32 1.442695, %v982_v30  ;;  %v980_v32 = vsub.f32 %v3614_v52, %v3628_v59  ;;  %v981_v19 = vsub.f32 %v3589_v11, %v3603_v17  ;;  %v4252_v63 = vld [vmem:[#allocation6_spill] sm:$0xff]  ;;  %v4253_v30 = vld [vmem:[#allocation7_spill] sm:$0xff] }
 0x1c4   : > { %v3694_v43 = vpop.eup %2808  ;;  %2824 = vpow2.f32 %v1013_v24  ;;  %v1031_v62 = vmul.f32 1.442695, %v977_v14  ;;  %v984_v36 = vsub.f32 %v3652_v34, %v3668_v26  ;;  %v979_v11 = vsub.f32 %v3605_v7, %v3621_v1 }
 0x1c5   : > { %v3700_v16 = vpop.eup %2810  ;;  %2826 = vpow2.f32 %v1007_v33  ;;  %v1037_v46 = vmul.f32 1.442695, %v980_v32  ;;  %v1039_v52 = vmul.f32 1.442695, %v981_v19  ;;  %v985_v18 = vsub.f32 %v3623_v29, %v3639_v56  ;;  %v4254_v32 = vld [vmem:[#allocation8_spill] sm:$0xff] }
 0x1c6   : > { %1173 = vperm.xlu1 %2777, %v3621_v1   ;;  %1198 = vperm.xlu0 %2776, %v3668_v26   ;;  %2828 = vpow2.f32 %v1017_v2  ;;  %v1045_v17 = vmul.f32 1.442695, %v984_v36  ;;  %v1035_v34 = vmul.f32 1.442695, %v979_v11  ;;  %v983_v33 = vsub.f32 %v3643_v53, %v3661_v49  ;;  %v4255_v36 = vld [vmem:[#allocation9_spill] sm:$0xff] }
 0x1c7   : > { %2830 = vpow2.f32 %v1011_v39  ;;  %v1047_v1 = vmul.f32 1.442695, %v985_v18 }
 0x1c8   : > { %2832 = vpow2.f32 %v1021_v38 }
 0x1c9   : > { %v3704_v0 = vpop.eup %2812  ;;  %2834 = vpow2.f32 %v1015_v44 }
 0x1ca   : > { %1203 = vperm.xlu1 %2777, %v3639_v56   ;;  %1581 = vperm.xlu0 %2776, %v3686_v47   ;;  %v3710_v54 = vpop.eup %2814  ;;  %2836 = vpow2.f32 %v1025_v9  ;;  %v1043_v56 = vmul.f32 1.442695, %v983_v33 }
 0x1cb   : > { %2838 = vpow2.f32 %v1019_v42 }
 0x1cc   : > { %2840 = vpow2.f32 %v1033_v58 }
 0x1cd   : > { %v3714_v5 = vpop.eup %2816  ;;  %2842 = vpow2.f32 %v1023_v27 }
 0x1ce   : > { %1193 = vperm.xlu1 %2777, %v3661_v49   ;;  %1591 = vperm.xlu0 %2776, %v3694_v43   ;;  %v3720_v41 = vpop.eup %2818  ;;  %2844 = vpow2.f32 %v1029_v25 }
 0x1cf   : > { %v3724_v8 = vpop.eup %2820  ;;  %2846 = vpow2.f32 %v1027_v50 }
 0x1d0   : > { %v3730_v48 = vpop.eup %2822  ;;  %2848 = vpow2.f32 %v1041_v23 }
 0x1d1   : > { %v3734_v61 = vpop.eup %2824  ;;  %2850 = vpow2.f32 %v1031_v62 }
 0x1d2   : > { %1576 = vperm.xlu1 %2777, %v3700_v16   ;;  %1601 = vperm.xlu0 %2776, %v3704_v0   ;;  %v3740_v60 = vpop.eup %2826  ;;  %2852 = vpow2.f32 %v1037_v46 }
 0x1d3   : > { %v3744_v51 = vpop.eup %2828  ;;  %2854 = vpow2.f32 %v1039_v52 }
 0x1d4   : > { %v3750_v57 = vpop.eup %2830  ;;  %2856 = vpow2.f32 %v1045_v17 }
 0x1d5   : > { %v3754_v20 = vpop.eup %2832  ;;  %2858 = vpow2.f32 %v1035_v34 }
 0x1d6   : > { %1586 = vperm.xlu1 %2777, %v3710_v54   ;;  %1611 = vperm.xlu0 %2776, %v3714_v5   ;;  %v3760_v40 = vpop.eup %2834  ;;  %2860 = vpow2.f32 %v1047_v1 }
 0x1d7   : > { %v3764_v6 = vpop.eup %2836  ;;  %2862 = vpow2.f32 %v1043_v56  ;;  %v4256_v56 = vld [vmem:[#allocation10_spill] sm:$0xff] }
 0x1d8   : > { %v3768_v59 = vpop.eup %2838 }
 0x1d9   : > { %v3772_v22 = vpop.eup %2840 }
 0x1da   : > { %1596 = vperm.xlu1 %2777, %v3720_v41   ;;  %1621 = vperm.xlu0 %2776, %v3724_v8   ;;  %v3776_v26 = vpop.eup %2842 }
 0x1db   : > { %v3780_v24 = vpop.eup %2844 }
 0x1dc   : > { %v3784_v7 = vpop.eup %2846 }
 0x1dd   : > { %v3788_v13 = vpop.eup %2848 }
 0x1de   : > { %1606 = vperm.xlu1 %2777, %v3730_v48   ;;  %1631 = vperm.xlu0 %2776, %v3734_v61   ;;  %v3792_v29 = vpop.eup %2850 }
 0x1df   : > { %v3794_v2 = vpop.eup %2852 }
 0x1e0   : > { %v3798_v10 = vpop.eup %2854 }
 0x1e1   : > { %v3800_v53 = vpop.eup %2856 }
 0x1e2   : > { %1616 = vperm.xlu1 %2777, %v3740_v60   ;;  %1641 = vperm.xlu0 %2776, %v3744_v51   ;;  %v3805_v15 = vpop.eup %2858 }
 0x1e3   : > { %v3810_v55 = vpop.eup %2860 }
 0x1e4   : > { %v3814_v25 = vpop.eup %2862 }
 0x1e6   : > { %1626 = vperm.xlu1 %2777, %v3750_v57   ;;  %1651 = vperm.xlu0 %2776, %v3754_v20  }
 0x1ea   : > { %1636 = vperm.xlu1 %2777, %v3760_v40   ;;  %1661 = vperm.xlu0 %2776, %v3764_v6  }
 0x1ee   : > { %1646 = vperm.xlu1 %2777, %v3768_v59   ;;  %1681 = vperm.xlu0 %2776, %v3772_v22  }
 0x1f2   : > { %1656 = vperm.xlu1 %2777, %v3776_v26   ;;  %1671 = vperm.xlu0 %2776, %v3780_v24  }
 0x1f6   : > { %1666 = vperm.xlu1 %2777, %v3784_v7   ;;  %1701 = vperm.xlu0 %2776, %v3788_v13  }
 0x1fa   : > { %1676 = vperm.xlu1 %2777, %v3792_v29   ;;  %1691 = vperm.xlu0 %2776, %v3794_v2  }
 0x1fd   : > { %v1064_v49 = vpop.permute.xlu1 %1063 }
 0x1fe   : > { %1696 = vperm.xlu1 %2777, %v3798_v10   ;;  %1711 = vperm.xlu0 %2776, %v3800_v53   ;;  %v1213_v9 = vsub.f32 %v4251_v3, %v1064_v49 }
 0x1ff   : > { %v1054_v21 = vpop.permute.xlu0 %1053 }
 0x200   : > { %v1211_v39 = vsub.f32 %v3147_v28, %v1054_v21  ;;  %v1247_v35 = vmul.f32 1.442695, %v1213_v9 }
 0x201   : > { %v1069_v38 = vpop.permute.xlu1 %1068 }
 0x202   : > { %v1214_v44 = vsub.f32 %v3151_v31, %v1069_v38  ;;  %1686 = vperm.xlu1 %2777, %v3805_v15   ;;  %v1243_v4 = vmul.f32 1.442695, %v1211_v39 }
 0x204   : > { %v1249_v42 = vmul.f32 1.442695, %v1214_v44  ;;  %2864 = vpow2.f32 %v1243_v4 }
 0x205   : > { %v1059_v58 = vpop.permute.xlu1 %1058 }
 0x206   : > { %v1212_v27 = vsub.f32 %v4252_v63, %v1059_v58  ;;  %1716 = vperm.xlu1 %2777, %v3810_v55   ;;  %2866 = vpow2.f32 %v1249_v42  ;;  %v4257_v42 = vld [vmem:[#allocation14_spill] sm:$0xff]  ;;  %v4258_v63 = vld [vmem:[#allocation11_spill] sm:$0xff] }
 0x208   : > { %v1245_v28 = vmul.f32 1.442695, %v1212_v27 }
 0x209   : > { %v1084_v31 = vpop.permute.xlu1 %1083 }
 0x20a   : > { %2868 = vpow2.f32 %v1245_v28  ;;  %1706 = vperm.xlu1 %2777, %v3814_v25   ;;  %v1217_v14 = vsub.f32 %v4253_v30, %v1084_v31 }
 0x20b   : > { %2870 = vpow2.f32 %v1247_v35  ;;  %v4259_v35 = vld [vmem:[#allocation13_spill] sm:$0xff] }
 0x20c   : > { %v1255_v23 = vmul.f32 1.442695, %v1217_v14 }
 0x20d   : > { %v1074_v50 = vpop.permute.xlu1 %1073 }
 0x20e   : > { %v1215_v62 = vsub.f32 %v4254_v32, %v1074_v50  ;;  %2872 = vpow2.f32 %v1255_v23  ;;  %v4260_v32 = vld [vmem:[#allocation12_spill] sm:$0xff] }
 0x210   : > { %v1251_v11 = vmul.f32 1.442695, %v1215_v62 }
 0x211   : > { %v1109_v19 = vpop.permute.xlu0 %1108  ;;  %v1089_v46 = vpop.permute.xlu1 %1088 }
 0x212   : > { %v1218_v52 = vsub.f32 %v4255_v36, %v1089_v46  ;;  %v3820_v17 = vpop.eup %2864  ;;  %2874 = vpow2.f32 %v1251_v11  ;;  %v1222_v28 = vsub.f32 %v4259_v35, %v1109_v19  ;;  %v4261_v19 = vld [vmem:[#allocation15_spill] sm:$0xff] }
 0x213   : > { %v3824_v33 = vpop.eup %2866 }
 0x214   : > { %v1257_v34 = vmul.f32 1.442695, %v1218_v52  ;;  %v1265_v46 = vmul.f32 1.442695, %v1222_v28 }
 0x215   : > { %v3822_v18 = vpop.permute.xlu0 %1566  ;;  %v1079_v1 = vpop.permute.xlu1 %1078 }
 0x216   : > { %v1216_v49 = vsub.f32 %v4256_v56, %v1079_v1  ;;  %2876 = vpow2.f32 %v1257_v34 }
 0x217   : > { %v2869_v21 = vpop.eup %2868 }
 0x218   : > { %v2871_v39 = vpop.eup %2870  ;;  %v1253_v38 = vmul.f32 1.442695, %v1216_v49  ;;  %v1756_v44 = vpack.c.bf16 %v2869_v21, %v3820_v17  ;;  %v1374_v52 = vsel %vm826_vm2, %v2869_v21, 0.0 }
 0x219   : > { %v1099_v3 = vpop.permute.xlu0 %1098  ;;  %v1104_v9 = vpop.permute.xlu1 %1103  ;;  %v1757_v4 = vpack.c.bf16 %v3824_v33, %v2871_v39  ;;  %v1377_v30 = vsel %vm826_vm2, %v2871_v39, 0.0 }
 0x21a   : > { %2878 = vpow2.f32 %v1253_v38  ;;  %v1220_v58 = vsub.f32 %v4257_v42, %v1099_v3  ;;  %v1221_v27 = vsub.f32 %v4258_v63, %v1104_v9  ;;  %2713 = vmatprep.mubr.msk.bf16.mxu1 %vm826_vm2, %v1756_v44 }
 0x21b   : > { %2714 = vmatmul.mubr.msk.bf16.vlgmr.msra.gmra.mxu1 %vm826_vm2, %v1757_v4  ;;  %v2873_v11 = vpop.eup %2872  ;;  %v4262_v4 = vld [vmem:[#allocation18_spill] sm:$0xff] }
 0x21c   : > { %v1263_v31 = vmul.f32 1.442695, %v1221_v27  ;;  %v1261_v23 = vmul.f32 1.442695, %v1220_v58  ;;  %v1389_v39 = vsel %vm826_vm2, %v2873_v11, 0.0  ;;  %v4263_v58 = vld [vmem:[#allocation17_spill] sm:$0xff] }
 0x21d   : > { %v1129_v14 = vpop.permute.xlu0 %1128  ;;  %1378 = vadd.xlane.f32.xlu0 %v1377_v30  ;;  %v1094_v50 = vpop.permute.xlu1 %1093 }
 0x21e   : > { %v1219_v62 = vsub.f32 %v4260_v32, %v1094_v50  ;;  %2880 = vpow2.f32 %v1263_v31  ;;  %v1226_v63 = vsub.f32 %v4263_v58, %v1129_v14 }
 0x21f   : > { %2882 = vpow2.f32 %v1261_v23  ;;  %v2875_v38 = vpop.eup %2874  ;;  %v4264_v23 = vld [vmem:[#allocation16_spill] sm:$0xff] }
 0x220   : > { %v1259_v36 = vmul.f32 1.442695, %v1219_v62  ;;  %v1383_v27 = vsel %vm826_vm2, %v2875_v38, 0.0 }
 0x221   : > { %v1119_v34 = vpop.permute.xlu0 %1118  ;;  %1375 = vadd.xlane.f32.xlu0 %v1374_v52  ;;  %v1124_v1 = vpop.permute.xlu1 %1123 }
 0x222   : > { %v1225_v56 = vsub.f32 %v4261_v19, %v1124_v1  ;;  %2884 = vpow2.f32 %v1259_v36  ;;  %v1224_v21 = vsub.f32 %v4262_v4, %v1119_v34  ;;  %v1371_v1 = vsel %vm826_vm2, %v3820_v17, 0.0  ;;  %v4265_v19 = vld [vmem:[#allocation22_spill] sm:$0xff]  ;;  %v4267_v4 = vld [vmem:[#allocation21_spill] sm:$0xff] }
 0x223   : > { %2886 = vpow2.f32 %v1265_v46  ;;  %v2877_v9 = vpop.eup %2876  ;;  %v1273_v46 = vmul.f32 1.442695, %v1226_v63 }
 0x224   : > { %v1271_v49 = vmul.f32 1.442695, %v1225_v56  ;;  %v1759_v30 = vpack.c.bf16 %v2877_v9, %v2873_v11  ;;  %v1269_v50 = vmul.f32 1.442695, %v1224_v21  ;;  %v4266_v56 = vld [vmem:[#allocation19_spill] sm:$0xff] }
 0x225   : > { %v1149_v44 = vpop.permute.xlu0 %1148  ;;  %1390 = vadd.xlane.f32.xlu0 %v1389_v39  ;;  %v3839_v3 = vpop.permute.xlu1 %1571 }
 0x226   : > { %2888 = vpow2.f32 %v1271_v49  ;;  %v1230_v21 = vsub.f32 %v4267_v4, %v1149_v44 }
 0x227   : > { %v3842_v42 = vpop.eup %2878  ;;  %2890 = vpow2.f32 %v1269_v50  ;;  %v4268_v50 = vld [vmem:[#allocation20_spill] sm:$0xff] }
 0x228   : > { %v1758_v35 = vpack.c.bf16 %v3842_v42, %v2875_v38 }
 0x229   : > { %v1139_v28 = vpop.permute.xlu0 %1138  ;;  %1384 = vadd.xlane.f32.xlu0 %v1383_v27  ;;  %v1114_v31 = vpop.permute.xlu1 %1113 }
 0x22a   : > { %v1223_v32 = vsub.f32 %v4264_v23, %v1114_v31  ;;  %2717 = vmatprep.mubr.msk.bf16.mxu1 %vm826_vm2, %v1758_v35  ;;  %v1228_v11 = vsub.f32 %v4265_v19, %v1139_v28  ;;  %v1380_v28 = vsel %vm826_vm2, %v3824_v33, 0.0  ;;  %v4269_v19 = vld [vmem:[#allocation26_spill] sm:$0xff] }
 0x22b   : > { %2718 = vmatmul.mubr.msk.bf16.gmra.mxu1 %vm826_vm2, %v1759_v30  ;;  %v2881_v62 = vpop.eup %2880 }
 0x22c   : > { %v1267_v36 = vmul.f32 1.442695, %v1223_v32  ;;  %v1401_v14 = vsel %vm826_vm2, %v2881_v62, 0.0  ;;  %v3855_v39 = vpop.eup %2882  ;;  %v1277_v30 = vmul.f32 1.442695, %v1228_v11 }
 0x22d   : > { %v1169_v52 = vpop.permute.xlu0 %1168  ;;  %v1144_v34 = vpop.permute.xlu1 %1143  ;;  %1402 = vadd.xlane.f32.xlu0 %v1401_v14 }
 0x22e   : > { %v1229_v49 = vsub.f32 %v4266_v56, %v1144_v34  ;;  %1372 = vadd.xlane.f32.xlu1 %v1371_v1  ;;  %2892 = vpow2.f32 %v1267_v36  ;;  %v1392_v1 = vsel %vm826_vm2, %v2877_v9, 0.0  ;;  %v4270_v56 = vld [vmem:[#allocation23_spill] sm:$0xff] }
 0x22f   : > { %v2885_v38 = vpop.eup %2884  ;;  %2894 = vpow2.f32 %v1273_v46  ;;  %v1281_v46 = vmul.f32 1.442695, %v1230_v21 }
 0x230   : > { %v1279_v58 = vmul.f32 1.442695, %v1229_v49  ;;  %v2887_v63 = vpop.eup %2886  ;;  %v1395_v35 = vsel %vm826_vm2, %v2885_v38, 0.0  ;;  %v1760_v31 = vpack.c.bf16 %v3855_v39, %v2885_v38  ;;  %v4271_v49 = vld [vmem:[#allocation25_spill] sm:$0xff] }
 0x231   : > { %v1159_v27 = vpop.permute.xlu0 %1158  ;;  %v1134_v17 = vpop.permute.xlu1 %1133  ;;  %1396 = vadd.xlane.f32.xlu0 %v1395_v35  ;;  %v1761_v32 = vpack.c.bf16 %v2887_v63, %v2881_v62  ;;  %v1234_v38 = vsub.f32 %v4271_v49, %v1169_v52  ;;  %v1386_v35 = vsel %vm826_vm2, %v3842_v42, 0.0 }
 0x232   : > { %v1227_v23 = vsub.f32 %v4268_v50, %v1134_v17  ;;  %1381 = vadd.xlane.f32.xlu1 %v1380_v28  ;;  %2896 = vpow2.f32 %v1279_v58  ;;  %2721 = vmatprep.mubr.msk.bf16.mxu1 %vm826_vm2, %v1760_v31  ;;  %v1232_v11 = vsub.f32 %v4269_v19, %v1159_v27  ;;  %v4272_v28 = vld [vmem:[#allocation24_spill] sm:$0xff] }
 0x233   : > { %v2889_v44 = vpop.eup %2888  ;;  %2722 = vmatmul.mubr.msk.bf16.gmra.mxu1 %vm826_vm2, %v1761_v32  ;;  %2898 = vpow2.f32 %v1277_v30  ;;  %v1289_v30 = vmul.f32 1.442695, %v1234_v38 }
 0x234   : > { %v1275_v36 = vmul.f32 1.442695, %v1227_v23  ;;  %v1413_v34 = vsel %vm826_vm2, %v2889_v44, 0.0  ;;  %v1285_v17 = vmul.f32 1.442695, %v1232_v11  ;;  %v2891_v31 = vpop.eup %2890 }
 0x235   : > { %v1189_v14 = vpop.permute.xlu0 %1188  ;;  %v1164_v33 = vpop.permute.xlu1 %1163  ;;  %1414 = vadd.xlane.f32.xlu0 %v1413_v34 }
 0x236   : > { %v1233_v62 = vsub.f32 %v4270_v56, %v1164_v33  ;;  %1393 = vadd.xlane.f32.xlu1 %v1392_v1  ;;  %2900 = vpow2.f32 %v1275_v36  ;;  %v1404_v36 = vsel %vm826_vm2, %v2887_v63, 0.0  ;;  %v4273_v33 = vld [vmem:[#allocation30_spill] sm:$0xff]  ;;  %v4274_v1 = vld [vmem:[#allocation27_spill] sm:$0xff] }
 0x237   : > { %2902 = vpow2.f32 %v1281_v46 }
 0x238   : > { %v1287_v4 = vmul.f32 1.442695, %v1233_v62  ;;  %v4275_v62 = vld [vmem:[#allocation29_spill] sm:$0xff] }
 0x239   : > { %v1179_v21 = vpop.permute.xlu0 %1178  ;;  %v1154_v58 = vpop.permute.xlu1 %1153  ;;  %v1238_v49 = vsub.f32 %v4275_v62, %v1189_v14 }
 0x23a   : > { %v1231_v9 = vsub.f32 %v4272_v28, %v1154_v58  ;;  %1387 = vadd.xlane.f32.xlu1 %v1386_v35  ;;  %2904 = vpow2.f32 %v1287_v4  ;;  %v1236_v42 = vsub.f32 %v4273_v33, %v1179_v21  ;;  %v1398_v21 = vsel %vm826_vm2, %v3855_v39, 0.0  ;;  %v4278_v33 = vld [vmem:[#allocation31_spill] sm:$0xff] }
 0x23b   : > { %v2893_v27 = vpop.eup %2892  ;;  %2906 = vpow2.f32 %v1285_v17 }
 0x23c   : > { %v1283_v50 = vmul.f32 1.442695, %v1231_v9  ;;  %v2895_v23 = vpop.eup %2894  ;;  %v1407_v46 = vsel %vm826_vm2, %v2893_v27, 0.0  ;;  %v1762_v34 = vpack.c.bf16 %v2891_v31, %v2893_v27  ;;  %v1293_v58 = vmul.f32 1.442695, %v1236_v42 }
 0x23d   : > { %v1209_v32 = vpop.permute.xlu0 %1208  ;;  %v1184_v52 = vpop.permute.xlu1 %1183  ;;  %1408 = vadd.xlane.f32.xlu0 %v1407_v46  ;;  %v1763_v11 = vpack.c.bf16 %v2895_v23, %v2889_v44  ;;  %v4276_v44 = vld [vmem:[#allocation28_spill] sm:$0xff]  ;;  %v1297_v27 = vmul.f32 1.442695, %v1238_v49 }
 0x23e   : > { %v1237_v19 = vsub.f32 %v4274_v1, %v1184_v52  ;;  %1405 = vadd.xlane.f32.xlu1 %v1404_v36  ;;  %2908 = vpow2.f32 %v1283_v50  ;;  %2725 = vmatprep.mubr.msk.bf16.mxu1 %vm826_vm2, %v1762_v34  ;;  %v4277_v50 = vld [vmem:[#allocation34_spill] sm:$0xff]  ;;  %v1416_v34 = vsel %vm826_vm2, %v2895_v23, 0.0 }
 0x23f   : > { %v2897_v56 = vpop.eup %2896  ;;  %2910 = vpow2.f32 %v1289_v30  ;;  %2726 = vmatmul.mubr.msk.bf16.gmra.mxu1 %vm826_vm2, %v1763_v11  ;;  %v4279_v11 = vld [vmem:[#allocation33_spill] sm:$0xff] }
 0x240   : > { %v1295_v38 = vmul.f32 1.442695, %v1237_v19  ;;  %v1425_v63 = vsel %vm826_vm2, %v2897_v56, 0.0  ;;  %v2899_v28 = vpop.eup %2898  ;;  %v1242_v62 = vsub.f32 %v4279_v11, %v1209_v32 }
 0x241   : > { %v1174_v4 = vpop.permute.xlu1 %1173  ;;  %v1199_v35 = vpop.permute.xlu0 %1198  ;;  %1426 = vadd.xlane.f32.xlu0 %v1425_v63 }
 0x242   : > { %v1235_v17 = vsub.f32 %v4276_v44, %v1174_v4  ;;  %1399 = vadd.xlane.f32.xlu1 %v1398_v21  ;;  %2912 = vpow2.f32 %v1295_v38  ;;  %v1240_v46 = vsub.f32 %v4277_v50, %v1199_v35  ;;  %v1410_v4 = vsel %vm826_vm2, %v2891_v31, 0.0  ;;  %v4280_v21 = vld [vmem:[#allocation32_spill] sm:$0xff] }
 0x243   : > { %v2901_v9 = vpop.eup %2900  ;;  %2914 = vpow2.f32 %v1293_v58  ;;  %v1305_v44 = vmul.f32 1.442695, %v1242_v62 }
 0x244   : > { %v1291_v14 = vmul.f32 1.442695, %v1235_v17  ;;  %v2903_v30 = vpop.eup %2902  ;;  %v1419_v52 = vsel %vm826_vm2, %v2901_v9, 0.0  ;;  %v1764_v39 = vpack.c.bf16 %v2899_v28, %v2901_v9  ;;  %v1301_v38 = vmul.f32 1.442695, %v1240_v46 }
 0x245   : > { %v1204_v36 = vpop.permute.xlu1 %1203  ;;  %1420 = vadd.xlane.f32.xlu0 %v1419_v52  ;;  %v1765_v1 = vpack.c.bf16 %v2903_v30, %v2897_v56  ;;  %v1422_v52 = vsel %vm826_vm2, %v2899_v28, 0.0 }
 0x246   : > { %v1241_v42 = vsub.f32 %v4278_v33, %v1204_v36  ;;  %1417 = vadd.xlane.f32.xlu1 %v1416_v34  ;;  %2916 = vpow2.f32 %v1291_v14  ;;  %2729 = vmatprep.mubr.msk.bf16.mxu1 %vm826_vm2, %v1764_v39 }
 0x247   : > { %v2905_v19 = vpop.eup %2904  ;;  %2918 = vpow2.f32 %v1297_v27  ;;  %2730 = vmatmul.mubr.msk.bf16.gmra.mxu1 %vm826_vm2, %v1765_v1  ;;  %v1428_v27 = vsel %vm826_vm2, %v2903_v30, 0.0  ;;  %v3900_v30 = vpop.permute.xlu0 %1581 }
 0x248   : > { %v1303_v49 = vmul.f32 1.442695, %v1241_v42  ;;  %v1437_v23 = vsel %vm826_vm2, %v2905_v19, 0.0  ;;  %v2907_v58 = vpop.eup %2906 }
 0x249   : > { %v1194_v63 = vpop.permute.xlu1 %1193  ;;  %1438 = vadd.xlane.f32.xlu0 %v1437_v23  ;;  %v1434_v62 = vsel %vm826_vm2, %v2907_v58, 0.0 }
 0x24a   : > { %2920 = vpow2.f32 %v1303_v49  ;;  %v1239_v56 = vsub.f32 %v4280_v21, %v1194_v63  ;;  %1411 = vadd.xlane.f32.xlu1 %v1410_v4 }
 0x24b   : > { %v2909_v35 = vpop.eup %2908  ;;  %2922 = vpow2.f32 %v1301_v38  ;;  %v3908_v38 = vpop.permute.xlu0 %1591 }
 0x24c   : > { %v1299_v17 = vmul.f32 1.442695, %v1239_v56  ;;  %v2911_v9 = vpop.eup %2910  ;;  %v1431_v32 = vsel %vm826_vm2, %v2909_v35, 0.0  ;;  %v1766_v14 = vpack.c.bf16 %v2907_v58, %v2909_v35 }
 0x24d   : > { %1432 = vadd.xlane.f32.xlu0 %v1431_v32  ;;  %v1767_v31 = vpack.c.bf16 %v2911_v9, %v2905_v19  ;;  %v1440_v42 = vsel %vm826_vm2, %v2911_v9, 0.0  ;;  %v1049_v9 = vmul.f32 1.442695, %v986_v12 }
 0x24e   : > { %2924 = vpow2.f32 %v1299_v17  ;;  %1429 = vadd.xlane.f32.xlu1 %v1428_v27  ;;  %2733 = vmatprep.mubr.msk.bf16.mxu1 %vm826_vm2, %v1766_v14 }
 0x24f   : > { %v2913_v50 = vpop.eup %2912  ;;  %2926 = vpow2.f32 %v1305_v44  ;;  %2734 = vmatmul.mubr.msk.bf16.gmra.mxu1 %vm826_vm2, %v1767_v31  ;;  %v3912_v44 = vpop.permute.xlu1 %1576 }
 0x250   : > { %v1449_v46 = vsel %vm826_vm2, %v2913_v50, 0.0  ;;  %v2915_v36 = vpop.eup %2914  ;;  %v3915_v58 = vpop.permute.xlu0 %1601  ;;  %2928 = vpow2.f32 %v1049_v9  ;;  %v1308_v9 = vld [vmem:[#allocation3 + $0x8] sm:$0xff] }
 0x251   : > { %1450 = vadd.xlane.f32.xlu0 %v1449_v46  ;;  %v1446_v17 = vsel %vm826_vm2, %v2915_v36, 0.0 }
 0x252   : > { %1423 = vadd.xlane.f32.xlu1 %v1422_v52 }
 0x253   : > { %v2917_v34 = vpop.eup %2916  ;;  %v3922_v32 = vpop.permute.xlu1 %1586 }
 0x254   : > { %v2919_v39 = vpop.eup %2918  ;;  %v1443_v33 = vsel %vm826_vm2, %v2917_v34, 0.0  ;;  %v1768_v1 = vpack.c.bf16 %v2915_v36, %v2917_v34  ;;  %v3925_v14 = vpop.permute.xlu0 %1611 }
 0x255   : > { %1444 = vadd.xlane.f32.xlu0 %v1443_v33  ;;  %v1769_v19 = vpack.c.bf16 %v2919_v39, %v2913_v50  ;;  %v1452_v56 = vsel %vm826_vm2, %v2919_v39, 0.0 }
 0x256   : > { %1441 = vadd.xlane.f32.xlu1 %v1440_v42  ;;  %2737 = vmatprep.mubr.msk.bf16.mxu1 %vm826_vm2, %v1768_v1 }
 0x257   : > { %v2921_v11 = vpop.eup %2920  ;;  %2738 = vmatmul.mubr.msk.bf16.gmra.mxu1 %vm826_vm2, %v1769_v19  ;;  %v3928_v50 = vpop.permute.xlu1 %1596 }
 0x258   : > { %v1461_v28 = vsel %vm826_vm2, %v2921_v11, 0.0  ;;  %v2923_v49 = vpop.eup %2922  ;;  %v3930_v46 = vpop.permute.xlu0 %1621 }
 0x259   : > { %1462 = vadd.xlane.f32.xlu0 %v1461_v28  ;;  %v1458_v31 = vsel %vm826_vm2, %v2923_v49, 0.0 }
 0x25a   : > { %1435 = vadd.xlane.f32.xlu1 %v1434_v62 }
 0x25b   : > { %v2925_v23 = vpop.eup %2924  ;;  %v3932_v52 = vpop.permute.xlu1 %1606 }
 0x25c   : > { %v1455_v63 = vsel %vm826_vm2, %v2925_v23, 0.0  ;;  %v1770_v4 = vpack.c.bf16 %v2923_v49, %v2925_v23  ;;  %v2927_v21 = vpop.eup %2926  ;;  %v3934_v37 = vpop.permute.xlu0 %1631 }
 0x25d   : > { %1456 = vadd.xlane.f32.xlu0 %v1455_v63  ;;  %v1771_v35 = vpack.c.bf16 %v2927_v21, %v2921_v11  ;;  %v1464_v27 = vsel %vm826_vm2, %v2927_v21, 0.0  ;;  %v3936_v45 = vpop.eup %2928 }
 0x25e   : > { %1453 = vadd.xlane.f32.xlu1 %v1452_v56  ;;  %2741 = vmatprep.mubr.msk.bf16.mxu1 %vm826_vm2, %v1770_v4  ;;  %v1309_v56 = vld [vmem:[#allocation3 + $0x10] sm:$0xff] }
 0x25f   : > { %2742 = vmatmul.mubr.msk.bf16.gmra.mxu1 %vm826_vm2, %v1771_v35  ;;  %v3939_v12 = vpop.permute.xlu1 %1616  ;;  %v1341_v35 = vmul.f32 %v3700_v16, %v1309_v56  ;;  %v1311_v16 = vld [vmem:[#allocation3 + $0x20] sm:$0xff] }
 0x260   : > { %v3941_v36 = vpop.permute.xlu0 %1641 }
 0x262   : > { %1447 = vadd.xlane.f32.xlu1 %v1446_v17 }
 0x263   : > { %v3943_v34 = vpop.permute.xlu1 %1626 }
 0x264   : > { %v3945_v39 = vpop.permute.xlu0 %1651 }
 0x265   : > { %4281 = vst [vmem:[#allocation5_spill] sm:$0xff] %v3945_v39 }
 0x266   : > { %1465 = vadd.xlane.f32.xlu1 %v1464_v27 }
 0x267   : > { %v3947_v33 = vpop.permute.xlu1 %1636 }
 0x268   : > { %v3949_v42 = vpop.permute.xlu0 %1661 }
 0x26a   : > { %1459 = vadd.xlane.f32.xlu1 %v1458_v31 }
 0x26b   : > { %v3951_v1 = vpop.permute.xlu1 %1646 }
 0x26c   : > { %v3953_v19 = vpop.permute.xlu0 %1681 }
 0x26d   : > { %4282 = vst [vmem:[#allocation6_spill] sm:$0xff] %v3953_v19 }
 0x26f   : > { %v3955_v11 = vpop.permute.xlu1 %1656 }
 0x270   : > { %v3957_v28 = vpop.permute.xlu0 %1671 }
 0x271   : > { %4283 = vst [vmem:[#allocation7_spill] sm:$0xff] %v3957_v28  ;;  %v4290_v28 = vld [vmem:[#allocation36_spill] sm:$0xff] }
 0x273   : > { %1721 = vperm.xlu0 %2776, %v3936_v45   ;;  %v3959_v62 = vpop.permute.xlu1 %1666 }
 0x274   : > { %4284 = vst [vmem:[#allocation8_spill] sm:$0xff] %v3959_v62  ;;  %v3961_v49 = vpop.permute.xlu0 %1701  ;;  %v1313_v62 = vld [vmem:[#allocation3 + $0x30] sm:$0xff] }
 0x275   : > { %4285 = vst [vmem:[#allocation9_spill] sm:$0xff] %v3961_v49  ;;  %v1340_v49 = vmul.f32 %v4290_v28, %v1308_v9 }
 0x277   : > { %v3963_v23 = vpop.permute.xlu1 %1676 }
 0x278   : > { %4286 = vst [vmem:[#allocation10_spill] sm:$0xff] %v3963_v23  ;;  %v3965_v63 = vpop.permute.xlu0 %1691 }
 0x279   : > { %4287 = vst [vmem:[#allocation14_spill] sm:$0xff] %v3965_v63 }
 0x27b   : > { %v3967_v4 = vpop.permute.xlu1 %1696 }
 0x27c   : > { %4288 = vst [vmem:[#allocation11_spill] sm:$0xff] %v3967_v4  ;;  %v3969_v21 = vpop.permute.xlu0 %1711 }
 0x27d   : > { %4289 = vst [vmem:[#allocation13_spill] sm:$0xff] %v3969_v21  ;;  %v1345_v21 = vmul.f32 %v3720_v41, %v1313_v62  ;;  %v4292_v41 = vld [vmem:[#allocation35_spill] sm:$0xff] }
 0x27f   : > { %v3972_v27 = vpop.permute.xlu1 %1686 }
 0x283   : > { %v3976_v63 = vpop.permute.xlu1 %1716 }
 0x284   : > { %4291 = vst [vmem:[#allocation12_spill] sm:$0xff] %v3976_v63 }
 0x287   : > { %v3982_v28 = vpop.permute.xlu1 %1706 }
 0x2a6   : > { %v1379_v17 = vpop.xlane.xlu0 %1378 }
 0x2a7   : > { %v1469_v31 = vadd.f32 %v1379_v17, %v1341_v35  ;;  %v1343_v35 = vmul.f32 %v3710_v54, %v1311_v16 }
 0x2a9   : > { %1502 = vst.msk [vmem:[#allocation3 + $0x10] sm:$0xff] %vm294_vm1, %v1469_v31 }
 0x2aa   : > { %v1376_v19 = vpop.xlane.xlu0 %1375 }
 0x2ab   : > { %v1468_v23 = vadd.f32 %v1376_v19, %v1340_v49  ;;  %v1317_v19 = vld [vmem:[#allocation3 + $0x50] sm:$0xff]  ;;  %v1307_v49 = vld [vmem:[#allocation3] sm:$0xff] }
 0x2ac   : > { %v1339_v62 = vmul.f32 %v4292_v41, %v1307_v49 }
 0x2ad   : > { %1501 = vst.msk [vmem:[#allocation3 + $0x8] sm:$0xff] %vm294_vm1, %v1468_v23  ;;  %v1349_v23 = vmul.f32 %v3740_v60, %v1317_v19  ;;  %v1314_v60 = vld [vmem:[#allocation3 + $0x38] sm:$0xff] }
 0x2ae   : > { %v1391_v4 = vpop.xlane.xlu0 %1390 }
 0x2af   : > { %v1473_v56 = vadd.f32 %v1391_v4, %v1345_v21  ;;  %v1315_v21 = vld [vmem:[#allocation3 + $0x40] sm:$0xff] }
 0x2b0   : > { %v2106_v39 = vld [vmem:[#allocation3 + $0x10] sm:$0xff]  ;;  %v1347_v54 = vmul.f32 %v3730_v48, %v1315_v21 }
 0x2b1   : > { %2930 = vrcp.f32 %v2106_v39  ;;  %1506 = vst.msk [vmem:[#allocation3 + $0x30] sm:$0xff] %vm294_vm1, %v1473_v56  ;;  %v1310_v39 = vld [vmem:[#allocation3 + $0x18] sm:$0xff] }
 0x2b2   : > { %v1385_v17 = vpop.xlane.xlu0 %1384  ;;  %v1342_v16 = vmul.f32 %v3686_v47, %v1310_v39 }
 0x2b3   : > { %v1471_v9 = vadd.f32 %v1385_v17, %v1343_v35 }
 0x2b5   : > { %1504 = vst.msk [vmem:[#allocation3 + $0x20] sm:$0xff] %vm294_vm1, %v1471_v9  ;;  %v1321_v9 = vld [vmem:[#allocation3 + $0x70] sm:$0xff] }
 0x2b6   : > { %v1403_v31 = vpop.xlane.xlu0 %1402 }
 0x2b7   : > { %v1373_v4 = vpop.xlane.xlu1 %1372  ;;  %v1477_v63 = vadd.f32 %v1403_v31, %v1349_v23  ;;  %v1353_v23 = vmul.f32 %v3760_v40, %v1321_v9  ;;  %v1312_v31 = vld [vmem:[#allocation3 + $0x28] sm:$0xff]  ;;  %v1318_v40 = vld [vmem:[#allocation3 + $0x58] sm:$0xff] }
 0x2b8   : > { %v1467_v56 = vadd.f32 %v1373_v4, %v1339_v62  ;;  %v1344_v39 = vmul.f32 %v3694_v43, %v1312_v31  ;;  %v1350_v9 = vmul.f32 %v3724_v8, %v1318_v40  ;;  %v1316_v43 = vld [vmem:[#allocation3 + $0x48] sm:$0xff] }
 0x2b9   : > { %1510 = vst.msk [vmem:[#allocation3 + $0x50] sm:$0xff] %vm294_vm1, %v1477_v63  ;;  %v1346_v63 = vmul.f32 %v3704_v0, %v1314_v60  ;;  %v2105_v60 = vld [vmem:[#allocation3 + $0x8] sm:$0xff] }
 0x2ba   : > { %1500 = vst.msk [vmem:[#allocation3] sm:$0xff] %vm294_vm1, %v1467_v56  ;;  %v1397_v35 = vpop.xlane.xlu0 %1396  ;;  %v2110_v56 = vld [vmem:[#allocation3 + $0x30] sm:$0xff] }
 0x2bb   : > { %v1382_v17 = vpop.xlane.xlu1 %1381  ;;  %v1475_v19 = vadd.f32 %v1397_v35, %v1347_v54 }
 0x2bc   : > { %v1470_v49 = vadd.f32 %v1382_v17, %v1342_v16  ;;  %v1319_v16 = vld [vmem:[#allocation3 + $0x60] sm:$0xff] }
 0x2bd   : > { %1508 = vst.msk [vmem:[#allocation3 + $0x40] sm:$0xff] %vm294_vm1, %v1475_v19  ;;  %v1351_v17 = vmul.f32 %v3750_v57, %v1319_v16  ;;  %v1348_v57 = vmul.f32 %v3714_v5, %v1316_v43 }
 0x2be   : > { %v2931_v41 = vpop.eup %2930  ;;  %1503 = vst.msk [vmem:[#allocation3 + $0x18] sm:$0xff] %vm294_vm1, %v1470_v49  ;;  %v1415_v62 = vpop.xlane.xlu0 %1414 }
 0x2bf   : > { %2212 = vperm.xlu1 %2777, %v2931_v41   ;;  %v1394_v48 = vpop.xlane.xlu1 %1393  ;;  %v1481_v47 = vadd.f32 %v1415_v62, %v1353_v23  ;;  %v1325_v41 = vld [vmem:[#allocation3 + $0x90] sm:$0xff]  ;;  %v2108_v23 = vld [vmem:[#allocation3 + $0x20] sm:$0xff] }
 0x2c0   : > { %v1474_v4 = vadd.f32 %v1394_v48, %v1346_v63  ;;  %v1357_v48 = vmul.f32 %v3776_v26, %v1325_v41  ;;  %v2114_v8 = vld [vmem:[#allocation3 + $0x50] sm:$0xff] }
 0x2c1   : > { %v2104_v21 = vld [vmem:[#allocation3] sm:$0xff]  ;;  %1514 = vst.msk [vmem:[#allocation3 + $0x70] sm:$0xff] %vm294_vm1, %v1481_v47 }
 0x2c2   : > { %1507 = vst.msk [vmem:[#allocation3 + $0x38] sm:$0xff] %vm294_vm1, %v1474_v4  ;;  %2932 = vrcp.f32 %v2104_v21  ;;  %v1323_v4 = vld [vmem:[#allocation3 + $0x80] sm:$0xff]  ;;  %v1322_v21 = vld [vmem:[#allocation3 + $0x78] sm:$0xff] }
 0x2c3   : > { %v1388_v54 = vpop.xlane.xlu1 %1387  ;;  %2934 = vrcp.f32 %v2110_v56  ;;  %v1355_v16 = vmul.f32 %v3768_v59, %v1323_v4  ;;  %v1354_v26 = vmul.f32 %v3744_v51, %v1322_v21  ;;  %v1534_v21 = vld [vmem:[#allocation4 + $0x10] sm:$0xff] }
 0x2c4   : > { %v1472_v35 = vadd.f32 %v1388_v54, %v1344_v39  ;;  %v2112_v40 = vld [vmem:[#allocation3 + $0x40] sm:$0xff] }
 0x2c5   : > { %v2107_v0 = vld [vmem:[#allocation3 + $0x18] sm:$0xff] }
 0x2c6   : > { %1505 = vst.msk [vmem:[#allocation3 + $0x28] sm:$0xff] %vm294_vm1, %v1472_v35  ;;  %2936 = vrcp.f32 %v2107_v0  ;;  %v1409_v19 = vpop.xlane.xlu0 %1408  ;;  %v1329_v0 = vld [vmem:[#allocation3 + $0xb0] sm:$0xff] }
 0x2c7   : > { %v1406_v49 = vpop.xlane.xlu1 %1405  ;;  %v1479_v63 = vadd.f32 %v1409_v19, %v1351_v17  ;;  %2938 = vrcp.f32 %v2105_v60  ;;  %v1320_v17 = vld [vmem:[#allocation3 + $0x68] sm:$0xff]  ;;  %v1361_v59 = vmul.f32 %v3792_v29, %v1329_v0 }
 0x2c8   : > { %v1478_v62 = vadd.f32 %v1406_v49, %v1350_v9  ;;  %2940 = vrcp.f32 %v2108_v23  ;;  %v1352_v51 = vmul.f32 %v3734_v61, %v1320_v17  ;;  %v2118_v43 = vld [vmem:[#allocation3 + $0x70] sm:$0xff]  ;;  %v1324_v0 = vld [vmem:[#allocation3 + $0x88] sm:$0xff]  ;;  %v1532_v17 = vld [vmem:[#allocation4] sm:$0xff] }
 0x2c9   : > { %1512 = vst.msk [vmem:[#allocation3 + $0x60] sm:$0xff] %vm294_vm1, %v1479_v63  ;;  %v2111_v39 = vld [vmem:[#allocation3 + $0x38] sm:$0xff]  ;;  %2942 = vrcp.f32 %v2114_v8 }
 0x2ca   : > { %1511 = vst.msk [vmem:[#allocation3 + $0x58] sm:$0xff] %vm294_vm1, %v1478_v62  ;;  %v1427_v31 = vpop.xlane.xlu0 %1426  ;;  %2944 = vrcp.f32 %v2111_v39  ;;  %v1327_v62 = vld [vmem:[#allocation3 + $0xa0] sm:$0xff] }
 0x2cb   : > { %v1400_v47 = vpop.xlane.xlu1 %1399  ;;  %v1485_v56 = vadd.f32 %v1427_v31, %v1357_v48  ;;  %2946 = vrcp.f32 %v2112_v40  ;;  %v1326_v48 = vld [vmem:[#allocation3 + $0x98] sm:$0xff]  ;;  %v1359_v61 = vmul.f32 %v3784_v7, %v1327_v62 }
 0x2cc   : > { %v1476_v54 = vadd.f32 %v1400_v47, %v1348_v57  ;;  %v1358_v29 = vmul.f32 %v3764_v6, %v1326_v48 }
 0x2cd   : > { %1518 = vst.msk [vmem:[#allocation3 + $0x90] sm:$0xff] %vm294_vm1, %v1485_v56  ;;  %v2109_v60 = vld [vmem:[#allocation3 + $0x28] sm:$0xff] }
 0x2ce   : > { %1509 = vst.msk [vmem:[#allocation3 + $0x48] sm:$0xff] %vm294_vm1, %v1476_v54  ;;  %v1421_v5 = vpop.xlane.xlu0 %1420  ;;  %2948 = vrcp.f32 %v2109_v60  ;;  %v1535_v60 = vld [vmem:[#allocation4 + $0x18] sm:$0xff] }
 0x2cf   : > { %v1418_v35 = vpop.xlane.xlu1 %1417  ;;  %v2933_v9 = vpop.eup %2932  ;;  %v1483_v19 = vadd.f32 %v1421_v5, %v1355_v16  ;;  %2950 = vrcp.f32 %v2118_v43  ;;  %v1333_v16 = vld [vmem:[#allocation3 + $0xd0] sm:$0xff] }
 0x2d0   : > { %v1482_v49 = vadd.f32 %v1418_v35, %v1354_v26  ;;  %2202 = vperm.xlu1 %2777, %v2933_v9   ;;  %v2935_v41 = vpop.eup %2934  ;;  %v2116_v39 = vld [vmem:[#allocation3 + $0x60] sm:$0xff]  ;;  %v1726_v9 = vmul.f32 %v3912_v44, %v1534_v21  ;;  %v1365_v6 = vmul.f32 %v3798_v10, %v1333_v16 }
 0x2d1   : > { %1516 = vst.msk [vmem:[#allocation3 + $0x80] sm:$0xff] %vm294_vm1, %v1483_v19  ;;  %v2115_v8 = vld [vmem:[#allocation3 + $0x58] sm:$0xff] }
 0x2d2   : > { %1515 = vst.msk [vmem:[#allocation3 + $0x78] sm:$0xff] %vm294_vm1, %v1482_v49  ;;  %v1439_v23 = vpop.xlane.xlu0 %1438  ;;  %2952 = vrcp.f32 %v2115_v8  ;;  %v1533_v8 = vld [vmem:[#allocation4 + $0x8] sm:$0xff] }
 0x2d3   : > { %v1412_v63 = vpop.xlane.xlu1 %1411  ;;  %v2937_v57 = vpop.eup %2936  ;;  %v1489_v31 = vadd.f32 %v1439_v23, %v1361_v59  ;;  %2954 = vrcp.f32 %v2116_v39  ;;  %v1724_v23 = vmul.f32 %v3822_v18, %v1532_v17 }
 0x2d4   : > { %v1480_v47 = vadd.f32 %v1412_v63, %v1352_v51  ;;  %2232 = vperm.xlu1 %2777, %v2935_v41   ;;  %2217 = vperm.xlu0 %2776, %v2937_v57   ;;  %v2939_v4 = vpop.eup %2938  ;;  %v2122_v19 = vld [vmem:[#allocation3 + $0x90] sm:$0xff]  ;;  %v1356_v51 = vmul.f32 %v3754_v20, %v1324_v0  ;;  %v1331_v41 = vld [vmem:[#allocation3 + $0xc0] sm:$0xff]  ;;  %v1330_v57 = vld [vmem:[#allocation3 + $0xb8] sm:$0xff] }
 0x2d5   : > { %1522 = vst.msk [vmem:[#allocation3 + $0xb0] sm:$0xff] %vm294_vm1, %v1489_v31  ;;  %v2941_v26 = vpop.eup %2940  ;;  %v2113_v40 = vld [vmem:[#allocation3 + $0x48] sm:$0xff]  ;;  %v1363_v18 = vmul.f32 %v3805_v15, %v1331_v41  ;;  %v1362_v39 = vmul.f32 %v3772_v22, %v1330_v57  ;;  %v1334_v41 = vld [vmem:[#allocation3 + $0xd8] sm:$0xff] }
 0x2d6   : > { %1513 = vst.msk [vmem:[#allocation3 + $0x68] sm:$0xff] %vm294_vm1, %v1480_v47  ;;  %v1433_v56 = vpop.xlane.xlu0 %1432  ;;  %v2943_v7 = vpop.eup %2942  ;;  %2956 = vrcp.f32 %v2113_v40  ;;  %v1727_v47 = vmul.f32 %v3900_v30, %v1535_v60  ;;  %v1725_v30 = vmul.f32 %v3839_v3, %v1533_v8  ;;  %v1328_v15 = vld [vmem:[#allocation3 + $0xa8] sm:$0xff]  ;;  %v1335_v60 = vld [vmem:[#allocation3 + $0xe0] sm:$0xff] }
 0x2d7   : > { %v1430_v54 = vpop.xlane.xlu1 %1429  ;;  %v1487_v5 = vadd.f32 %v1433_v56, %v1359_v61  ;;  %v2945_v43 = vpop.eup %2944  ;;  %2958 = vrcp.f32 %v2122_v19  ;;  %v1337_v56 = vld [vmem:[#allocation3 + $0xf0] sm:$0xff] }
 0x2d8   : > { %v1486_v35 = vadd.f32 %v1430_v54, %v1358_v29  ;;  %2222 = vperm.xlu1 %2777, %v2941_v26   ;;  %2207 = vperm.xlu0 %2776, %v2939_v4   ;;  %v2947_v61 = vpop.eup %2946  ;;  %v2120_v29 = vld [vmem:[#allocation3 + $0x80] sm:$0xff]  ;;  %v1369_v17 = vmul.f32 %v3810_v55, %v1337_v56  ;;  %v1367_v55 = vmul.f32 %v3814_v25, %v1335_v60 }
 0x2d9   : > { %1520 = vst.msk [vmem:[#allocation3 + $0xa0] sm:$0xff] %vm294_vm1, %v1487_v5  ;;  %v2119_v44 = vld [vmem:[#allocation3 + $0x78] sm:$0xff] }
 0x2da   : > { %1519 = vst.msk [vmem:[#allocation3 + $0x98] sm:$0xff] %vm294_vm1, %v1486_v35  ;;  %v1451_v49 = vpop.xlane.xlu0 %1450  ;;  %2960 = vrcp.f32 %v2119_v44  ;;  %v1538_v44 = vld [vmem:[#allocation4 + $0x30] sm:$0xff] }
 0x2db   : > { %v2715_v59 = vpop.f32.mrf.mxu1  ;;  %v1493_v63 = vadd.f32 %v1451_v49, %v1365_v6  ;;  %v1424_v48 = vpop.xlane.xlu1 %1423  ;;  %2962 = vrcp.f32 %v2120_v29  ;;  %v1730_v25 = vmul.f32 %v3928_v50, %v1538_v44  ;;  %v1537_v50 = vld [vmem:[#allocation4 + $0x28] sm:$0xff] }
 0x2dc   : > { %v2007_v62 = vadd.f32 %v2715_v59, %v1726_v9  ;;  %v1484_v31 = vadd.f32 %v1424_v48, %v1356_v51  ;;  %2252 = vperm.xlu1 %2777, %v2943_v7   ;;  %2237 = vperm.xlu0 %2776, %v2945_v43   ;;  %v2949_v54 = vpop.eup %2948  ;;  %v2126_v9 = vld [vmem:[#allocation3 + $0xb0] sm:$0xff]  ;;  %v1360_v7 = vmul.f32 %v3780_v24, %v1328_v15 }
 0x2dd   : > { %v1878_v10 = vpop.f32.mrf.mxu1  ;;  %1526 = vst.msk [vmem:[#allocation3 + $0xd0] sm:$0xff] %vm294_vm1, %v1493_v63  ;;  %v2117_v16 = vld [vmem:[#allocation3 + $0x68] sm:$0xff]  ;;  %v2951_v3 = vpop.eup %2950 }
 0x2de   : > { %2039 = vst.msk [vmem:[#allocation4 + $0x10] sm:$0xff] %vm359_vm0, %v2007_v62  ;;  %v2005_v20 = vadd.f32 %v1878_v10, %v1724_v23  ;;  %v1445_v4 = vpop.xlane.xlu0 %1444  ;;  %2964 = vrcp.f32 %v2117_v16  ;;  %v1366_v62 = vmul.f32 %v3788_v13, %v1334_v41  ;;  %v1332_v10 = vld [vmem:[#allocation3 + $0xc8] sm:$0xff]  ;;  %v1338_v16 = vld [vmem:[#allocation3 + $0xf8] sm:$0xff] }
 0x2df   : > { %1517 = vst.msk [vmem:[#allocation3 + $0x88] sm:$0xff] %vm294_vm1, %v1484_v31  ;;  %v2716_v21 = vpop.f32.mrf.mxu1  ;;  %v1491_v26 = vadd.f32 %v1445_v4, %v1363_v18  ;;  %v1442_v5 = vpop.xlane.xlu1 %1441  ;;  %2966 = vrcp.f32 %v2126_v9  ;;  %v1364_v4 = vmul.f32 %v3794_v2, %v1332_v10 }
 0x2e0   : > { %2037 = vst.msk [vmem:[#allocation4] sm:$0xff] %vm359_vm0, %v2005_v20  ;;  %v2008_v40 = vadd.f32 %v2716_v21, %v1727_v47  ;;  %v1490_v35 = vadd.f32 %v1442_v5, %v1362_v39  ;;  %2242 = vperm.xlu1 %2777, %v2947_v61   ;;  %2227 = vperm.xlu0 %2776, %v2949_v54   ;;  %v2953_v19 = vpop.eup %2952  ;;  %v2124_v63 = vld [vmem:[#allocation3 + $0xa0] sm:$0xff]  ;;  %v1539_v61 = vld [vmem:[#allocation4 + $0x38] sm:$0xff] }
 0x2e1   : > { %v1881_v0 = vpop.f32.mrf.mxu1  ;;  %1524 = vst.msk [vmem:[#allocation3 + $0xc0] sm:$0xff] %vm294_vm1, %v1491_v26  ;;  %v2123_v49 = vld [vmem:[#allocation3 + $0x98] sm:$0xff]  ;;  %v2955_v23 = vpop.eup %2954  ;;  %v1536_v47 = vld [vmem:[#allocation4 + $0x20] sm:$0xff]  ;;  %v1731_v5 = vmul.f32 %v3915_v58, %v1539_v61 }
 0x2e2   : > { %2040 = vst.msk [vmem:[#allocation4 + $0x18] sm:$0xff] %vm359_vm0, %v2008_v40  ;;  %v2006_v22 = vadd.f32 %v1881_v0, %v1725_v30  ;;  %v1463_v6 = vpop.xlane.xlu0 %1462  ;;  %2968 = vrcp.f32 %v2123_v49  ;;  %v1728_v39 = vmul.f32 %v3922_v32, %v1536_v47  ;;  %v1370_v0 = vmul.f32 %v3936_v45, %v1338_v16  ;;  %v1540_v49 = vld [vmem:[#allocation4 + $0x40] sm:$0xff] }
 0x2e3   : > { %1523 = vst.msk [vmem:[#allocation3 + $0xb8] sm:$0xff] %vm294_vm1, %v1490_v35  ;;  %v1497_v59 = vadd.f32 %v1463_v6, %v1369_v17  ;;  %v1436_v51 = vpop.xlane.xlu1 %1435  ;;  %v2957_v48 = vpop.eup %2956  ;;  %2970 = vrcp.f32 %v2124_v63  ;;  %v1729_v17 = vmul.f32 %v3908_v38, %v1537_v50 }
 0x2e4   : > { %2038 = vst.msk [vmem:[#allocation4 + $0x8] sm:$0xff] %vm359_vm0, %v2006_v22  ;;  %v1488_v43 = vadd.f32 %v1436_v51, %v1360_v7  ;;  %2272 = vperm.xlu1 %2777, %v2951_v3   ;;  %2257 = vperm.xlu0 %2776, %v2953_v19   ;;  %v2959_v18 = vpop.eup %2958  ;;  %v2130_v29 = vld [vmem:[#allocation3 + $0xd0] sm:$0xff]  ;;  %v1336_v7 = vld [vmem:[#allocation3 + $0xe8] sm:$0xff] }
 0x2e5   : > { %1530 = vst.msk [vmem:[#allocation3 + $0xf0] sm:$0xff] %vm294_vm1, %v1497_v59  ;;  %v1542_v3 = vld [vmem:[#allocation4 + $0x50] sm:$0xff]  ;;  %v1368_v41 = vmul.f32 %v3800_v53, %v1336_v7 }
 0x2e6   : > { %1521 = vst.msk [vmem:[#allocation3 + $0xa8] sm:$0xff] %vm294_vm1, %v1488_v43  ;;  %v1457_v24 = vpop.xlane.xlu0 %1456  ;;  %v2121_v57 = vld [vmem:[#allocation3 + $0x88] sm:$0xff]  ;;  %v1734_v51 = vmul.f32 %v3939_v12, %v1542_v3  ;;  %v1548_v3 = vld [vmem:[#allocation4 + $0x80] sm:$0xff] }
 0x2e7   : > { %v1495_v8 = vadd.f32 %v1457_v24, %v1367_v55  ;;  %v1454_v31 = vpop.xlane.xlu1 %1453  ;;  %2972 = vrcp.f32 %v2121_v57  ;;  %v2961_v21 = vpop.eup %2960  ;;  %v1543_v55 = vld [vmem:[#allocation4 + $0x58] sm:$0xff]  ;;  %v1732_v24 = vmul.f32 %v3932_v52, %v1540_v49  ;;  %v1541_v12 = vld [vmem:[#allocation4 + $0x48] sm:$0xff]  ;;  %v1740_v49 = vmul.f32 %v3951_v1, %v1548_v3 }
 0x2e8   : > { %v1494_v20 = vadd.f32 %v1454_v31, %v1366_v62  ;;  %2262 = vperm.xlu1 %2777, %v2955_v23   ;;  %2247 = vperm.xlu0 %2776, %v2957_v48   ;;  %2974 = vrcp.f32 %v2130_v29  ;;  %v2963_v35 = vpop.eup %2962  ;;  %v2128_v2 = vld [vmem:[#allocation3 + $0xc0] sm:$0xff]  ;;  %v1735_v31 = vmul.f32 %v3930_v46, %v1543_v55 }
 0x2e9   : > { %1528 = vst.msk [vmem:[#allocation3 + $0xe0] sm:$0xff] %vm294_vm1, %v1495_v8  ;;  %v4293_v55 = vld [vmem:[#allocation5_spill] sm:$0xff] }
 0x2ea   : > { %1527 = vst.msk [vmem:[#allocation3 + $0xd8] sm:$0xff] %vm294_vm1, %v1494_v20  ;;  %v2127_v56 = vld [vmem:[#allocation3 + $0xb8] sm:$0xff] }
 0x2eb   : > { %v2719_v13 = vpop.f32.mrf.mxu1  ;;  %v1448_v30 = vpop.xlane.xlu1 %1447  ;;  %2976 = vrcp.f32 %v2127_v56 }
 0x2ec   : > { %v2011_v54 = vadd.f32 %v2719_v13, %v1730_v25  ;;  %v1492_v26 = vadd.f32 %v1448_v30, %v1364_v4  ;;  %2292 = vperm.xlu1 %2777, %v2959_v18   ;;  %2277 = vperm.xlu0 %2776, %v2961_v21   ;;  %v2965_v22 = vpop.eup %2964  ;;  %2978 = vrcp.f32 %v2128_v2  ;;  %v2134_v53 = vld [vmem:[#allocation3 + $0xf0] sm:$0xff]  ;;  %v1733_v25 = vmul.f32 %v3925_v14, %v1541_v12  ;;  %v1544_v21 = vld [vmem:[#allocation4 + $0x60] sm:$0xff]  ;;  %v1547_v30 = vld [vmem:[#allocation4 + $0x78] sm:$0xff] }
 0x2ed   : > { %v1894_v40 = vpop.f32.mrf.mxu1  ;;  %v2125_v9 = vld [vmem:[#allocation3 + $0xa8] sm:$0xff]  ;;  %v2967_v45 = vpop.eup %2966  ;;  %v1546_v4 = vld [vmem:[#allocation4 + $0x70] sm:$0xff]  ;;  %v1739_v2 = vmul.f32 %v3941_v36, %v1547_v30  ;;  %v1555_v12 = vld [vmem:[#allocation4 + $0xb8] sm:$0xff] }
 0x2ee   : > { %2043 = vst.msk [vmem:[#allocation4 + $0x30] sm:$0xff] %vm359_vm0, %v2011_v54  ;;  %v2009_v15 = vadd.f32 %v1894_v40, %v1728_v39  ;;  %2980 = vrcp.f32 %v2125_v9  ;;  %v1738_v56 = vmul.f32 %v3947_v33, %v1546_v4  ;;  %v1556_v4 = vld [vmem:[#allocation4 + $0xc0] sm:$0xff] }
 0x2ef   : > { %1525 = vst.msk [vmem:[#allocation3 + $0xc8] sm:$0xff] %vm294_vm1, %v1492_v26  ;;  %v2720_v32 = vpop.f32.mrf.mxu1  ;;  %v1466_v6 = vpop.xlane.xlu1 %1465  ;;  %v1736_v26 = vmul.f32 %v3943_v34, %v1544_v21 }
 0x2f0   : > { %2041 = vst.msk [vmem:[#allocation4 + $0x20] sm:$0xff] %vm359_vm0, %v2009_v15  ;;  %v2012_v58 = vadd.f32 %v2720_v32, %v1731_v5  ;;  %v1498_v60 = vadd.f32 %v1466_v6, %v1370_v0  ;;  %2282 = vperm.xlu1 %2777, %v2963_v35   ;;  %2267 = vperm.xlu0 %2776, %v2965_v22   ;;  %v2132_v38 = vld [vmem:[#allocation3 + $0xe0] sm:$0xff]  ;;  %v2969_v43 = vpop.eup %2968  ;;  %v1545_v5 = vld [vmem:[#allocation4 + $0x68] sm:$0xff]  ;;  %v1550_v0 = vld [vmem:[#allocation4 + $0x90] sm:$0xff] }
 0x2f1   : > { %v1897_v19 = vpop.f32.mrf.mxu1  ;;  %v2131_v23 = vld [vmem:[#allocation3 + $0xd8] sm:$0xff]  ;;  %2982 = vrcp.f32 %v2132_v38  ;;  %v2971_v8 = vpop.eup %2970  ;;  %v1742_v6 = vmul.f32 %v3955_v11, %v1550_v0 }
 0x2f2   : > { %2044 = vst.msk [vmem:[#allocation4 + $0x38] sm:$0xff] %vm359_vm0, %v2012_v58  ;;  %v2010_v59 = vadd.f32 %v1897_v19, %v1729_v17  ;;  %2984 = vrcp.f32 %v2131_v23  ;;  %v1737_v17 = vmul.f32 %v3934_v37, %v1545_v5  ;;  %v4299_v5 = vld [vmem:[#allocation9_spill] sm:$0xff] }
 0x2f3   : > { %1531 = vst.msk [vmem:[#allocation3 + $0xf8] sm:$0xff] %vm294_vm1, %v1498_v60  ;;  %v2723_v44 = vpop.f32.mrf.mxu1  ;;  %v1460_v63 = vpop.xlane.xlu1 %1459  ;;  %2986 = vrcp.f32 %v2134_v53  ;;  %v1551_v60 = vld [vmem:[#allocation4 + $0x98] sm:$0xff] }
 0x2f4   : > { %2042 = vst.msk [vmem:[#allocation4 + $0x28] sm:$0xff] %vm359_vm0, %v2010_v59  ;;  %v2015_v62 = vadd.f32 %v2723_v44, %v1734_v51  ;;  %v1496_v48 = vadd.f32 %v1460_v63, %v1368_v41  ;;  %2312 = vperm.xlu1 %2777, %v2967_v45   ;;  %2297 = vperm.xlu0 %2776, %v2969_v43   ;;  %v2973_v47 = vpop.eup %2972  ;;  %v1549_v59 = vld [vmem:[#allocation4 + $0x88] sm:$0xff]  ;;  %v1554_v41 = vld [vmem:[#allocation4 + $0xb0] sm:$0xff]  ;;  %v1552_v44 = vld [vmem:[#allocation4 + $0xa0] sm:$0xff] }
 0x2f5   : > { %v1910_v57 = vpop.f32.mrf.mxu1  ;;  %v2975_v46 = vpop.eup %2974  ;;  %v1743_v51 = vmul.f32 %v3949_v42, %v1551_v60  ;;  %v1741_v23 = vmul.f32 %v4293_v55, %v1549_v59 }
 0x2f6   : > { %2047 = vst.msk [vmem:[#allocation4 + $0x50] sm:$0xff] %vm359_vm0, %v2015_v62  ;;  %v2013_v10 = vadd.f32 %v1910_v57, %v1732_v24  ;;  %v2129_v20 = vld [vmem:[#allocation3 + $0xc8] sm:$0xff] }
 0x2f7   : > { %1529 = vst.msk [vmem:[#allocation3 + $0xe8] sm:$0xff] %vm294_vm1, %v1496_v48  ;;  %v2724_v52 = vpop.f32.mrf.mxu1  ;;  %2988 = vrcp.f32 %v2129_v20  ;;  %v4294_v24 = vld [vmem:[#allocation10_spill] sm:$0xff] }
 0x2f8   : > { %2045 = vst.msk [vmem:[#allocation4 + $0x40] sm:$0xff] %vm359_vm0, %v2013_v10  ;;  %v2016_v18 = vadd.f32 %v2724_v52, %v1735_v31  ;;  %2302 = vperm.xlu1 %2777, %v2971_v8   ;;  %2287 = vperm.xlu0 %2776, %v2973_v47   ;;  %v2977_v13 = vpop.eup %2976  ;;  %v1746_v62 = vmul.f32 %v4294_v24, %v1554_v41  ;;  %v4295_v8 = vld [vmem:[#allocation8_spill] sm:$0xff]  ;;  %v1553_v10 = vld [vmem:[#allocation4 + $0xa8] sm:$0xff] }
 0x2f9   : > { %v1913_v61 = vpop.f32.mrf.mxu1  ;;  %v2979_v39 = vpop.eup %2978  ;;  %v1744_v31 = vmul.f32 %v4295_v8, %v1552_v44  ;;  %v4296_v20 = vld [vmem:[#allocation6_spill] sm:$0xff]  ;;  %v2171_v24 = vld [vmem:[#allocation4 + $0x18] sm:$0xff] }
 0x2fa   : > { %2048 = vst.msk [vmem:[#allocation4 + $0x58] sm:$0xff] %vm359_vm0, %v2016_v18  ;;  %v2014_v29 = vadd.f32 %v1913_v61, %v1733_v25  ;;  %v2135_v16 = vld [vmem:[#allocation3 + $0xf8] sm:$0xff]  ;;  %v1747_v52 = vmul.f32 %v4296_v20, %v1555_v12  ;;  %v1558_v18 = vld [vmem:[#allocation4 + $0xd0] sm:$0xff]  ;;  %v2169_v8 = vld [vmem:[#allocation4 + $0x8] sm:$0xff] }
 0x2fb   : > { %v2981_v54 = vpop.eup %2980 }
 0x2fc   : > { %2046 = vst.msk [vmem:[#allocation4 + $0x48] sm:$0xff] %vm359_vm0, %v2014_v29  ;;  %2332 = vperm.xlu1 %2777, %v2975_v46   ;;  %2317 = vperm.xlu0 %2776, %v2977_v13   ;;  %v4297_v46 = vld [vmem:[#allocation7_spill] sm:$0xff] }
 0x2fd   : > { %v1745_v29 = vmul.f32 %v4297_v46, %v1553_v10 }
 0x2fe   : > { %v2133_v14 = vld [vmem:[#allocation3 + $0xe8] sm:$0xff]  ;;  %v2983_v35 = vpop.eup %2982 }
 0x2ff   : > { %2990 = vrcp.f32 %v2133_v14  ;;  %v2727_v50 = vpop.f32.mrf.mxu1  ;;  %v2985_v33 = vpop.eup %2984  ;;  %v4298_v14 = vld [vmem:[#allocation11_spill] sm:$0xff] }
 0x300   : > { %v2019_v40 = vadd.f32 %v2727_v50, %v1738_v56  ;;  %2322 = vperm.xlu1 %2777, %v2979_v39   ;;  %2307 = vperm.xlu0 %2776, %v2981_v54   ;;  %2992 = vrcp.f32 %v2135_v16  ;;  %v2987_v58 = vpop.eup %2986  ;;  %v1750_v39 = vmul.f32 %v4298_v14, %v1558_v18  ;;  %v1559_v54 = vld [vmem:[#allocation4 + $0xd8] sm:$0xff]  ;;  %v1748_v16 = vmul.f32 %v3972_v27, %v1556_v4  ;;  %v2178_v18 = vld [vmem:[#allocation4 + $0x50] sm:$0xff] }
 0x301   : > { %v1926_v15 = vpop.f32.mrf.mxu1  ;;  %v4301_v27 = vld [vmem:[#allocation12_spill] sm:$0xff] }
 0x302   : > { %2051 = vst.msk [vmem:[#allocation4 + $0x70] sm:$0xff] %vm359_vm0, %v2019_v40  ;;  %v2017_v32 = vadd.f32 %v1926_v15, %v1736_v26  ;;  %v1557_v26 = vld [vmem:[#allocation4 + $0xc8] sm:$0xff]  ;;  %v1751_v15 = vmul.f32 %v4299_v5, %v1559_v54  ;;  %v2179_v54 = vld [vmem:[#allocation4 + $0x58] sm:$0xff] }
 0x303   : > { %v2728_v22 = vpop.f32.mrf.mxu1  ;;  %v2177_v5 = vld [vmem:[#allocation4 + $0x48] sm:$0xff] }
 0x304   : > { %2049 = vst.msk [vmem:[#allocation4 + $0x60] sm:$0xff] %vm359_vm0, %v2017_v32  ;;  %v2020_v34 = vadd.f32 %v2728_v22, %v1739_v2  ;;  %2342 = vperm.xlu1 %2777, %v2983_v35   ;;  %2337 = vperm.xlu0 %2776, %v2985_v33   ;;  %v2989_v7 = vpop.eup %2988  ;;  %v1562_v2 = vld [vmem:[#allocation4 + $0xf0] sm:$0xff]  ;;  %v4300_v33 = vld [vmem:[#allocation14_spill] sm:$0xff] }
 0x305   : > { %v1929_v9 = vpop.f32.mrf.mxu1  ;;  %v1749_v0 = vmul.f32 %v4300_v33, %v1557_v26  ;;  %v1754_v3 = vmul.f32 %v4301_v27, %v1562_v2 }
 0x306   : > { %2052 = vst.msk [vmem:[#allocation4 + $0x78] sm:$0xff] %vm359_vm0, %v2020_v34  ;;  %v2018_v36 = vadd.f32 %v1929_v9, %v1737_v17  ;;  %v1560_v17 = vld [vmem:[#allocation4 + $0xe0] sm:$0xff] }
 0x307   : > { %v2731_v19 = vpop.f32.mrf.mxu1 }
 0x308   : > { %2050 = vst.msk [vmem:[#allocation4 + $0x68] sm:$0xff] %vm359_vm0, %v2018_v36  ;;  %v2023_v37 = vadd.f32 %v2731_v19, %v1742_v6  ;;  %2352 = vperm.xlu1 %2777, %v2987_v58   ;;  %2327 = vperm.xlu0 %2776, %v2989_v7   ;;  %v1563_v58 = vld [vmem:[#allocation4 + $0xf8] sm:$0xff]  ;;  %v1722_v6 = vpop.permute.xlu0 %1721  ;;  %v1752_v7 = vmul.f32 %v3982_v28, %v1560_v17  ;;  %v1561_v19 = vld [vmem:[#allocation4 + $0xe8] sm:$0xff] }
 0x309   : > { %v1942_v45 = vpop.f32.mrf.mxu1 }
 0x30a   : > { %2055 = vst.msk [vmem:[#allocation4 + $0x90] sm:$0xff] %vm359_vm0, %v2023_v37  ;;  %v2021_v11 = vadd.f32 %v1942_v45, %v1740_v49  ;;  %v1755_v37 = vmul.f32 %v1722_v6, %v1563_v58 }
 0x30b   : > { %v2732_v43 = vpop.f32.mrf.mxu1 }
 0x30c   : > { %v2991_v38 = vpop.eup %2990  ;;  %2053 = vst.msk [vmem:[#allocation4 + $0x80] sm:$0xff] %vm359_vm0, %v2021_v11  ;;  %v2024_v1 = vadd.f32 %v2732_v43, %v1743_v51  ;;  %v4302_v51 = vld [vmem:[#allocation13_spill] sm:$0xff]  ;;  %v2170_v43 = vld [vmem:[#allocation4 + $0x10] sm:$0xff] }
 0x30d   : > { %2347 = vperm.xlu0 %2776, %v2991_v38   ;;  %v1945_v63 = vpop.f32.mrf.mxu1  ;;  %v2993_v42 = vpop.eup %2992  ;;  %v1753_v11 = vmul.f32 %v4302_v51, %v1561_v19 }
 0x30e   : > { %2056 = vst.msk [vmem:[#allocation4 + $0x98] sm:$0xff] %vm359_vm0, %v2024_v1  ;;  %v2022_v48 = vadd.f32 %v1945_v63, %v1741_v23  ;;  %v2168_v1 = vld [vmem:[#allocation4] sm:$0xff] }
 0x30f   : > { %v2735_v57 = vpop.f32.mrf.mxu1 }
 0x310   : > { %2054 = vst.msk [vmem:[#allocation4 + $0x88] sm:$0xff] %vm359_vm0, %v2022_v48  ;;  %v2027_v53 = vadd.f32 %v2735_v57, %v1746_v62  ;;  %v2174_v48 = vld [vmem:[#allocation4 + $0x30] sm:$0xff] }
 0x311   : > { %2357 = vperm.xlu0 %2776, %v2993_v42   ;;  %v1958_v47 = vpop.f32.mrf.mxu1  ;;  %v2186_v17 = vld [vmem:[#allocation4 + $0x90] sm:$0xff] }
 0x312   : > { %2059 = vst.msk [vmem:[#allocation4 + $0xb0] sm:$0xff] %vm359_vm0, %v2027_v53  ;;  %v2025_v25 = vadd.f32 %v1958_v47, %v1744_v31  ;;  %v2172_v53 = vld [vmem:[#allocation4 + $0x20] sm:$0xff] }
 0x313   : > { %v2736_v61 = vpop.f32.mrf.mxu1  ;;  %v2184_v6 = vld [vmem:[#allocation4 + $0x80] sm:$0xff] }
 0x314   : > { %2057 = vst.msk [vmem:[#allocation4 + $0xa0] sm:$0xff] %vm359_vm0, %v2025_v25  ;;  %v2028_v13 = vadd.f32 %v2736_v61, %v1747_v52  ;;  %v2175_v52 = vld [vmem:[#allocation4 + $0x38] sm:$0xff] }
 0x315   : > { %v1961_v21 = vpop.f32.mrf.mxu1  ;;  %v2187_v19 = vld [vmem:[#allocation4 + $0x98] sm:$0xff] }
 0x316   : > { %2060 = vst.msk [vmem:[#allocation4 + $0xb8] sm:$0xff] %vm359_vm0, %v2028_v13  ;;  %v2026_v56 = vadd.f32 %v1961_v21, %v1745_v29  ;;  %v2173_v13 = vld [vmem:[#allocation4 + $0x28] sm:$0xff]  ;;  %v2176_v21 = vld [vmem:[#allocation4 + $0x40] sm:$0xff] }
 0x317   : > { %v2739_v30 = vpop.f32.mrf.mxu1 }
 0x318   : > { %2058 = vst.msk [vmem:[#allocation4 + $0xa8] sm:$0xff] %vm359_vm0, %v2026_v56  ;;  %v2031_v50 = vadd.f32 %v2739_v30, %v1750_v39 }
 0x319   : > { %v1974_v40 = vpop.f32.mrf.mxu1 }
 0x31a   : > { %2063 = vst.msk [vmem:[#allocation4 + $0xd0] sm:$0xff] %vm359_vm0, %v2031_v50  ;;  %v2029_v35 = vadd.f32 %v1974_v40, %v1748_v16  ;;  %v2182_v16 = vld [vmem:[#allocation4 + $0x70] sm:$0xff] }
 0x31b   : > { %v2740_v32 = vpop.f32.mrf.mxu1 }
 0x31c   : > { %2061 = vst.msk [vmem:[#allocation4 + $0xc0] sm:$0xff] %vm359_vm0, %v2029_v35  ;;  %v2032_v22 = vadd.f32 %v2740_v32, %v1751_v15  ;;  %v2180_v35 = vld [vmem:[#allocation4 + $0x60] sm:$0xff] }
 0x31d   : > { %v1977_v34 = vpop.f32.mrf.mxu1 }
 0x31e   : > { %2064 = vst.msk [vmem:[#allocation4 + $0xd8] sm:$0xff] %vm359_vm0, %v2032_v22  ;;  %v2030_v9 = vadd.f32 %v1977_v34, %v1749_v0  ;;  %v2183_v0 = vld [vmem:[#allocation4 + $0x78] sm:$0xff] }
 0x31f   : > { %v2743_v36 = vpop.f32.mrf.mxu1 }
 0x320   : > { %2062 = vst.msk [vmem:[#allocation4 + $0xc8] sm:$0xff] %vm359_vm0, %v2030_v9  ;;  %v2035_v60 = vadd.f32 %v2743_v36, %v1754_v3  ;;  %v2181_v9 = vld [vmem:[#allocation4 + $0x68] sm:$0xff] }
 0x321   : > { %v1990_v49 = vpop.f32.mrf.mxu1 }
 0x322   : > { %2067 = vst.msk [vmem:[#allocation4 + $0xf0] sm:$0xff] %vm359_vm0, %v2035_v60  ;;  %v2033_v59 = vadd.f32 %v1990_v49, %v1752_v7 }
 0x323   : > { %v2744_v45 = vpop.f32.mrf.mxu1 }
 0x324   : > { %2065 = vst.msk [vmem:[#allocation4 + $0xe0] sm:$0xff] %vm359_vm0, %v2033_v59  ;;  %v2036_v38 = vadd.f32 %v2744_v45, %v1755_v37  ;;  %v2190_v37 = vld [vmem:[#allocation4 + $0xb0] sm:$0xff] }
 0x325   : > { %v1993_v41 = vpop.f32.mrf.mxu1 }
 0x326   : > { %2068 = vst.msk [vmem:[#allocation4 + $0xf8] sm:$0xff] %vm359_vm0, %v2036_v38  ;;  %v2034_v28 = vadd.f32 %v1993_v41, %v1753_v11  ;;  %v2185_v11 = vld [vmem:[#allocation4 + $0x88] sm:$0xff]  ;;  %v2188_v41 = vld [vmem:[#allocation4 + $0xa0] sm:$0xff] }
 0x328   : > { %2066 = vst.msk [vmem:[#allocation4 + $0xe8] sm:$0xff] %vm359_vm0, %v2034_v28 }
 0x33a   : > { %v2213_v55 = vpop.permute.xlu1 %2212 }
 0x33b   : > { %v2362_v23 = vmul.f32 %v2213_v55, %v2170_v43 }
 0x33d   : > { %2394 = vst.msk [vmem:[%s4108_s30 + $0x10] sm:$0xff] %vm359_vm0, %v2362_v23  ;;  %v2191_v23 = vld [vmem:[#allocation4 + $0xb8] sm:$0xff] }
 0x34b   : > { %v2203_v44 = vpop.permute.xlu1 %2202 }
 0x34c   : > { %v2360_v63 = vmul.f32 %v2203_v44, %v2168_v1  ;;  %v2194_v44 = vld [vmem:[#allocation4 + $0xd0] sm:$0xff] }
 0x34e   : > { %2392 = vst.msk [vmem:[%s4108_s30] sm:$0xff] %vm359_vm0, %v2360_v63 }
 0x34f   : > { %v2218_v62 = vpop.permute.xlu0 %2217  ;;  %v2233_v42 = vpop.permute.xlu1 %2232 }
 0x350   : > { %v2363_v12 = vmul.f32 %v2218_v62, %v2171_v24  ;;  %v2366_v57 = vmul.f32 %v2233_v42, %v2174_v48  ;;  %v2189_v48 = vld [vmem:[#allocation4 + $0xa8] sm:$0xff] }
 0x352   : > { %2395 = vst.msk [vmem:[%s4108_s30 + $0x18] sm:$0xff] %vm359_vm0, %v2363_v12  ;;  %2398 = vst.msk [vmem:[%s4108_s30 + $0x30] sm:$0xff] %vm359_vm0, %v2366_v57  ;;  %v2192_v12 = vld [vmem:[#allocation4 + $0xc0] sm:$0xff] }
 0x353   : > { %v2208_v31 = vpop.permute.xlu0 %2207  ;;  %v2223_v10 = vpop.permute.xlu1 %2222 }
 0x354   : > { %v2361_v47 = vmul.f32 %v2208_v31, %v2169_v8  ;;  %v2364_v20 = vmul.f32 %v2223_v10, %v2172_v53  ;;  %v2195_v53 = vld [vmem:[#allocation4 + $0xd8] sm:$0xff] }
 0x356   : > { %2393 = vst.msk [vmem:[%s4108_s30 + $0x8] sm:$0xff] %vm359_vm0, %v2361_v47  ;;  %2396 = vst.msk [vmem:[%s4108_s30 + $0x20] sm:$0xff] %vm359_vm0, %v2364_v20  ;;  %v2196_v47 = vld [vmem:[#allocation4 + $0xe0] sm:$0xff] }
 0x357   : > { %v2238_v25 = vpop.permute.xlu0 %2237  ;;  %v2253_v61 = vpop.permute.xlu1 %2252 }
 0x358   : > { %v2367_v46 = vmul.f32 %v2238_v25, %v2175_v52  ;;  %v2370_v29 = vmul.f32 %v2253_v61, %v2178_v18  ;;  %v2193_v18 = vld [vmem:[#allocation4 + $0xc8] sm:$0xff] }
 0x35a   : > { %2399 = vst.msk [vmem:[%s4108_s30 + $0x38] sm:$0xff] %vm359_vm0, %v2367_v46  ;;  %2402 = vst.msk [vmem:[%s4108_s30 + $0x50] sm:$0xff] %vm359_vm0, %v2370_v29  ;;  %v2198_v46 = vld [vmem:[#allocation4 + $0xf0] sm:$0xff] }
 0x35b   : > { %v2228_v4 = vpop.permute.xlu0 %2227  ;;  %v2243_v14 = vpop.permute.xlu1 %2242 }
 0x35c   : > { %v2365_v39 = vmul.f32 %v2228_v4, %v2173_v13  ;;  %v2368_v56 = vmul.f32 %v2243_v14, %v2176_v21  ;;  %v2197_v21 = vld [vmem:[#allocation4 + $0xe8] sm:$0xff] }
 0x35e   : > { %2397 = vst.msk [vmem:[%s4108_s30 + $0x28] sm:$0xff] %vm359_vm0, %v2365_v39  ;;  %2400 = vst.msk [vmem:[%s4108_s30 + $0x40] sm:$0xff] %vm359_vm0, %v2368_v56  ;;  %v2199_v56 = vld [vmem:[#allocation4 + $0xf8] sm:$0xff] }
 0x35f   : > { %v2258_v30 = vpop.permute.xlu0 %2257  ;;  %v2273_v50 = vpop.permute.xlu1 %2272 }
 0x360   : > { %v2371_v26 = vmul.f32 %v2258_v30, %v2179_v54  ;;  %v2374_v40 = vmul.f32 %v2273_v50, %v2182_v16 }
 0x362   : > { %2403 = vst.msk [vmem:[%s4108_s30 + $0x58] sm:$0xff] %vm359_vm0, %v2371_v26  ;;  %2406 = vst.msk [vmem:[%s4108_s30 + $0x70] sm:$0xff] %vm359_vm0, %v2374_v40 }
 0x363   : > { %v2248_v15 = vpop.permute.xlu0 %2247  ;;  %v2263_v2 = vpop.permute.xlu1 %2262 }
 0x364   : > { %v2369_v32 = vmul.f32 %v2248_v15, %v2177_v5  ;;  %v2372_v33 = vmul.f32 %v2263_v2, %v2180_v35 }
 0x366   : > { %2401 = vst.msk [vmem:[%s4108_s30 + $0x48] sm:$0xff] %vm359_vm0, %v2369_v32  ;;  %2404 = vst.msk [vmem:[%s4108_s30 + $0x60] sm:$0xff] %vm359_vm0, %v2372_v33 }
 0x367   : > { %v2278_v22 = vpop.permute.xlu0 %2277  ;;  %v2293_v34 = vpop.permute.xlu1 %2292 }
 0x368   : > { %v2375_v27 = vmul.f32 %v2278_v22, %v2183_v0  ;;  %v2378_v3 = vmul.f32 %v2293_v34, %v2186_v17 }
 0x36a   : > { %2407 = vst.msk [vmem:[%s4108_s30 + $0x78] sm:$0xff] %vm359_vm0, %v2375_v27  ;;  %2410 = vst.msk [vmem:[%s4108_s30 + $0x90] sm:$0xff] %vm359_vm0, %v2378_v3 }
 0x36b   : > { %v2268_v58 = vpop.permute.xlu0 %2267  ;;  %v2283_v36 = vpop.permute.xlu1 %2282 }
 0x36c   : > { %v2373_v7 = vmul.f32 %v2268_v58, %v2181_v9  ;;  %v2376_v60 = vmul.f32 %v2283_v36, %v2184_v6 }
 0x36e   : > { %2405 = vst.msk [vmem:[%s4108_s30 + $0x68] sm:$0xff] %vm359_vm0, %v2373_v7  ;;  %2408 = vst.msk [vmem:[%s4108_s30 + $0x80] sm:$0xff] %vm359_vm0, %v2376_v60 }
 0x36f   : > { %v2298_v49 = vpop.permute.xlu0 %2297  ;;  %v2313_v59 = vpop.permute.xlu1 %2312 }
 0x370   : > { %v2379_v45 = vmul.f32 %v2298_v49, %v2187_v19  ;;  %v2382_v51 = vmul.f32 %v2313_v59, %v2190_v37 }
 0x372   : > { %2411 = vst.msk [vmem:[%s4108_s30 + $0x98] sm:$0xff] %vm359_vm0, %v2379_v45  ;;  %2414 = vst.msk [vmem:[%s4108_s30 + $0xb0] sm:$0xff] %vm359_vm0, %v2382_v51 }
 0x373   : > { %v2288_v38 = vpop.permute.xlu0 %2287  ;;  %v2303_v28 = vpop.permute.xlu1 %2302 }
 0x374   : > { %v2377_v43 = vmul.f32 %v2288_v38, %v2185_v11  ;;  %v2380_v55 = vmul.f32 %v2303_v28, %v2188_v41 }
 0x376   : > { %2409 = vst.msk [vmem:[%s4108_s30 + $0x88] sm:$0xff] %vm359_vm0, %v2377_v43  ;;  %2412 = vst.msk [vmem:[%s4108_s30 + $0xa0] sm:$0xff] %vm359_vm0, %v2380_v55 }
 0x377   : > { %v2318_v1 = vpop.permute.xlu0 %2317  ;;  %v2333_v63 = vpop.permute.xlu1 %2332 }
 0x378   : > { %v2383_v24 = vmul.f32 %v2318_v1, %v2191_v23  ;;  %v2386_v62 = vmul.f32 %v2333_v63, %v2194_v44 }
 0x37a   : > { %2415 = vst.msk [vmem:[%s4108_s30 + $0xb8] sm:$0xff] %vm359_vm0, %v2383_v24  ;;  %2418 = vst.msk [vmem:[%s4108_s30 + $0xd0] sm:$0xff] %vm359_vm0, %v2386_v62 }
 0x37b   : > { %v2308_v42 = vpop.permute.xlu0 %2307  ;;  %v2323_v57 = vpop.permute.xlu1 %2322 }
 0x37c   : > { %v2381_v8 = vmul.f32 %v2308_v42, %v2189_v48  ;;  %v2384_v31 = vmul.f32 %v2323_v57, %v2192_v12 }
 0x37e   : > { %2413 = vst.msk [vmem:[%s4108_s30 + $0xa8] sm:$0xff] %vm359_vm0, %v2381_v8  ;;  %2416 = vst.msk [vmem:[%s4108_s30 + $0xc0] sm:$0xff] %vm359_vm0, %v2384_v31 }
 0x37f   : > { %v2338_v10 = vpop.permute.xlu0 %2337  ;;  %v2343_v20 = vpop.permute.xlu1 %2342 }
 0x380   : > { %v2387_v52 = vmul.f32 %v2338_v10, %v2195_v53  ;;  %v2388_v25 = vmul.f32 %v2343_v20, %v2196_v47 }
 0x382   : > { %2419 = vst.msk [vmem:[%s4108_s30 + $0xd8] sm:$0xff] %vm359_vm0, %v2387_v52  ;;  %2420 = vst.msk [vmem:[%s4108_s30 + $0xe0] sm:$0xff] %vm359_vm0, %v2388_v25 }
 0x383   : > { %v2328_v61 = vpop.permute.xlu0 %2327  ;;  %v2353_v29 = vpop.permute.xlu1 %2352 }
 0x384   : > { %v2385_v13 = vmul.f32 %v2328_v61, %v2193_v18  ;;  %v2390_v4 = vmul.f32 %v2353_v29, %v2198_v46 }
 0x386   : > { %2417 = vst.msk [vmem:[%s4108_s30 + $0xc8] sm:$0xff] %vm359_vm0, %v2385_v13  ;;  %2422 = vst.msk [vmem:[%s4108_s30 + $0xf0] sm:$0xff] %vm359_vm0, %v2390_v4 }
 0x388   : > { %v2348_v14 = vpop.permute.xlu0 %2347 }
 0x389   : > { %v2389_v39 = vmul.f32 %v2348_v14, %v2197_v21 }
 0x38b   : > { %2421 = vst.msk [vmem:[%s4108_s30 + $0xe8] sm:$0xff] %vm359_vm0, %v2389_v39 }
 0x38c   : > { %v2358_v54 = vpop.permute.xlu0 %2357 }
 0x38d   : > { %v2391_v30 = vmul.f32 %v2358_v54, %v2199_v56 }
 0x38f   : > { %2423 = vst.msk [vmem:[%s4108_s30 + $0xf8] sm:$0xff] %vm359_vm0, %v2391_v30 }
 0x390 PF: > { %s13_s14 = sadd.s32 1, %s3016_s14   ;;  %s4303_s12 = smov %s3012_s13 }
 0x391   : > { %p10_p5 = scmp.ge.s32.totalorder %s13_s14, 18   ;;  %s4304_s13 = smov %s4306_s15 }
 0x393   :  { %12 = sbr.rel (!%p10_p5) target bundleno = 2 (0x2), region = 76 }

// kernel: efficient_mha_forward.11
= control target key start
LH: loop header
LB: loop body
LE: loop exit
PB: predicated region body
PF: predicated region fallthrough
CT: control target
= control target key end

     0   :  { %8 = vsyncpa [#allocation4], 0  ;;  %s1508_s0 = inlined_call_operand.vmem [shape: bf16[512,128], index: 0, kind: input, shape index: {}]   ;;  %s1509_s1 = inlined_call_operand.vmem [shape: bf16[128,128], index: 1, kind: input, shape index: {}]   ;;  %s1510_s2 = inlined_call_operand.vmem [shape: f32[1,128], index: 2, kind: input, shape index: {}]   ;;  %s1511_s3 = inlined_call_operand.hbm [shape: f32[512,128], index: 3, kind: output, shape index: {}]  }
   0x1   :  { %10 = vsyncpa [#allocation4 + $0x1], 0  ;;  %s1277_s12 = smov 0   ;;  %s1279_s13 = smov 0  }
   0x2   :  { %s1281_s14 = smov 0   ;;  %s1283_s15 = smov 0  }
   0x3   :  { %s1285_s16 = smov 0   ;;  %s1287_s17 = smov 0  }
   0x4 LB: > { %s966_s18 = sadd.s32 4294967295, %s1252_s17   ;;  %s967_s19 = sadd.s32 4294967294, %s1252_s17   ;;  %s1252_s17 = sphi %s1287_s17, %s16_s17   ;;  %s1248_s16 = sphi %s1285_s16, %s1518_s16   ;;  %s1244_s15 = sphi %s1283_s15, %s1517_s15   ;;  %s1240_s14 = sphi %s1281_s14, %s1516_s14   ;;  %s1236_s13 = sphi %s1279_s13, %s1515_s13   ;;  %s1232_s12 = sphi %s1277_s12, %s1514_s12  }
   0x5   : > { %s35_s20 = sadd.s32 1, %s1248_s16  ;;  %s126_s21 = sadd.s32 1, %s1240_s14 }
   0x6   : > { %p37_p0 = scmp.ge.s32.totalorder %s35_s20, 2  ;;  %p136_p1 = scmp.ne.s32.totalorder %s1240_s14, %s1236_s13 }
   0x7   : > { %p137_p2 = scmp.eq.s32.totalorder %s966_s18, 1  ;;  %p142_p3 = scmp.ne.s32.totalorder %s1236_s13, %s1232_s12 }
   0x8   : > { %s1520_s20 = smov (%p37_p0, %s35_s20), 0  ;;  %p143_p5 = scmp.eq.s32.totalorder %s967_s19, 1 }
   0x9   : > { %p1317_p4 = por %p137_p2, %p136_p1  ;;  %s121_s23 = ssub.s32 %s1248_s16, %s1520_s20 }
   0xa   : > { %p972_p6 = scmp.ge.s32.totalorder %s1252_s17, 1  ;;  %p124_p7 = scmp.eq.s32.totalorder %s121_s23, 0 }
   0xb   : > { %p1324_p8 = por %p143_p5, %p142_p3  ;;  %p191_p9 = scmp.lt.s32.totalorder %s1252_s17, 3 }
   0xc   : > { %s1330_s25 = scalar_select %p124_p7, %s1240_s14, %s126_s21  }
   0xd   : > { %p192_p10 = pnand %p972_p6, %p191_p9 }
   0xe   : > { %s974_s28 = sshll.u32 (!%p192_p10), %s1244_s15, 5  ;;  %s226_s30 = sand.u32 (!%p192_p10), 1, %s1236_s13  }
   0xf   : > { %195 = sbr.rel (%p192_p10) target bundleno = 292 (0x124), region = 32  ;;  %p230_p11 = scmp.lt.s32.totalorder (!%p192_p10), %s974_s28, 63 }
  0x10   : > { %s973_s4 = sshll.u32 (!%p192_p10), %s226_s30, 8  ;;  %s1006_s8 = sshll.u32 (!%p192_p10), %s1244_s15, 12 }
  0x11   : > { %s1388_s7 = scalar_lea.vmem (!%p192_p10), [#allocation3], %s973_s4  ;;  %s1451_s18 = scalar_lea.hbm (!%p192_p10), %s1511_s3, %s1006_s8 }
  0x12   : > { %s1463_s15 = scalar_lea.sflag (!%p192_p10), [#allocation4], %s226_s30  ;;  %s1254_s21 = smov (!%p192_p10), [#allocation3]  }
  0x13   : > { %s1180_s23 = sshll.u32 (!%p192_p10), %s1254_s21, 4  ;;  %s1181_s23 = int_to_ptr.vmem [resolvable:$false] %s1180_s23 }
  0x14   : > { %v1152_v0 = vld [vmem:[%s1509_s1 + $0x38] sm:$0xff]   ;;  %v1153_v1 = vld [vmem:[%s1509_s1 + $0x30] sm:$0xff]   ;;  %s1522_s28 = smov (!%p230_p11, %s974_s28), 63  ;;  %v1154_v2 = vld [vmem:[%s1509_s1 + $0x28] sm:$0xff]   ;;  %s1182_s26 = scalar_lea.vmem %s1181_s23, 8192 }
  0x15   : > { %1031 = vmatprep.subr.bf16.mxu0 %v1152_v0  ;;  %1079 = vmatprep.subr.bf16.mxu1 %v1152_v0  ;;  %s975_s6 = sshll.u32 %s1522_s28, 2  ;;  %v1155_v3 = vld [vmem:[%s1509_s1 + $0x20] sm:$0xff]   ;;  %v1156_v6 = vld [vmem:[%s1509_s1 + $0x18] sm:$0xff]   ;;  %v1157_v7 = vld [vmem:[%s1509_s1 + $0x10] sm:$0xff]  }
  0x16   : > { %1032 = vmatpush3.bf16.msra.mxu0 %v1152_v0  ;;  %1087 = vmatpush3.bf16.msra.mxu1 %v1152_v0  ;;  %s1345_s9 = scalar_lea.vmem %s1508_s0, %s975_s6  ;;  %v1158_v8 = vld [vmem:[%s1509_s1 + $0x8] sm:$0xff]   ;;  %v1159_v9 = vld [vmem:[%s1509_s1] sm:$0xff]  }
  0x17   : > { %1033 = vmatprep.subr.bf16.mxu0 %v1153_v1  ;;  %1080 = vmatprep.subr.bf16.mxu1 %v1153_v1  ;;  %v1160_v4 = vld [vmem:[%s1345_s9] sm:$0xff]   ;;  %v1162_v10 = vld [vmem:[%s1345_s9 + $0x8] sm:$0xff]   ;;  %v1164_v12 = vld [vmem:[%s1345_s9 + $0x10] sm:$0xff]  }
  0x18   : > { %v1161_v5 = vld [vmem:[%s1345_s9 + $0x40] sm:$0xff]   ;;  %1047 = vmatprep.mubr.bf16.mxu0 %v1160_v4  ;;  %v1163_v11 = vld [vmem:[%s1345_s9 + $0x48] sm:$0xff]   ;;  %v1165_v13 = vld [vmem:[%s1345_s9 + $0x50] sm:$0xff]  }
  0x19   : > { %1063 = vmatprep.mubr.bf16.mxu1 %v1161_v5  ;;  %v1166_v14 = vld [vmem:[%s1345_s9 + $0x18] sm:$0xff]   ;;  %v1168_v16 = vld [vmem:[%s1345_s9 + $0x20] sm:$0xff]   ;;  %v1170_v18 = vld [vmem:[%s1345_s9 + $0x28] sm:$0xff]  }
  0x1a   : > { %1034 = vmatpush3.bf16.msra.mxu0 %v1153_v1  ;;  %1088 = vmatpush3.bf16.msra.mxu1 %v1153_v1  ;;  %v1167_v15 = vld [vmem:[%s1345_s9 + $0x58] sm:$0xff]   ;;  %v1169_v17 = vld [vmem:[%s1345_s9 + $0x60] sm:$0xff]   ;;  %v1171_v19 = vld [vmem:[%s1345_s9 + $0x68] sm:$0xff]  }
  0x1b   : > { %1035 = vmatprep.subr.bf16.mxu0 %v1154_v2  ;;  %1081 = vmatprep.subr.bf16.mxu1 %v1154_v2  ;;  %v1172_v20 = vld [vmem:[%s1345_s9 + $0x30] sm:$0xff]   ;;  %v1174_v22 = vld [vmem:[%s1345_s9 + $0x38] sm:$0xff]   ;;  %v1384_v24 = vld [vmem:[%s1510_s2] ss:$0 sm:$0xff] }
  0x1c   : > { %v1173_v21 = vld [vmem:[%s1345_s9 + $0x70] sm:$0xff]   ;;  %v1175_v23 = vld [vmem:[%s1345_s9 + $0x78] sm:$0xff]   ;;  %s858_s9 = sshll.u32 %s1388_s7, 4  ;;  %s1453_s9 = int_to_ptr.vmem [resolvable:$true] %s858_s9 }
  0x1d   : > { %s1176_s19 = scalar_lea.vmem %s1453_s9, 4096  ;;  %p1183_p1 = scmp.lt.s32.totalorder %s1453_s9, %s1181_s23 }
  0x1e   : > { %1036 = vmatpush3.bf16.msra.mxu0 %v1154_v2  ;;  %1089 = vmatpush3.bf16.msra.mxu1 %v1154_v2  ;;  %p1177_p12 = scmp.ne.s32.totalorder %s1453_s9, %s1176_s19  ;;  %p1184_p2 = scmp.lt.s32.totalorder %s1182_s26, %s1176_s19 }
  0x1f   : > { %1037 = vmatprep.subr.bf16.mxu0 %v1155_v3  ;;  %1082 = vmatprep.subr.bf16.mxu1 %v1155_v3 }
  0x20   : > { %p1178_p13 = pnand %p1177_p12, %p1317_p4  ;;  %p1185_p3 = por %p1184_p2, %p1183_p1 }
  0x22   : > { %1038 = vmatpush3.bf16.msra.mxu0 %v1155_v3  ;;  %1090 = vmatpush3.bf16.msra.mxu1 %v1155_v3  ;;  %p1179_p0 = pneg %p1178_p13 }
  0x23   : > { %1039 = vmatprep.subr.bf16.mxu0 %v1156_v6  ;;  %1083 = vmatprep.subr.bf16.mxu1 %v1156_v6 }
  0x24   : > { %p1186_p5 = pnand %p1185_p3, %p1179_p0 }
  0x26   : > { %1040 = vmatpush3.bf16.msra.mxu0 %v1156_v6  ;;  %1091 = vmatpush3.bf16.msra.mxu1 %v1156_v6 }
  0x27   : > { %1041 = vmatprep.subr.bf16.mxu0 %v1157_v7  ;;  %1084 = vmatprep.subr.bf16.mxu1 %v1157_v7 }
  0x2a   : > { %1042 = vmatpush3.bf16.msra.mxu0 %v1157_v7  ;;  %1092 = vmatpush3.bf16.msra.mxu1 %v1157_v7 }
  0x2b   : > { %1043 = vmatprep.subr.bf16.mxu0 %v1158_v8  ;;  %1085 = vmatprep.subr.bf16.mxu1 %v1158_v8 }
  0x2e   : > { %1044 = vmatpush3.bf16.msra.mxu0 %v1158_v8  ;;  %1093 = vmatpush3.bf16.msra.mxu1 %v1158_v8 }
  0x2f   : > { %1045 = vmatprep.subr.bf16.mxu0 %v1159_v9  ;;  %1086 = vmatprep.subr.bf16.mxu1 %v1159_v9 }
  0x32   : > { %1046 = vmatpush3.bf16.msra.mxu0 %v1159_v9  ;;  %1094 = vmatpush3.bf16.msra.mxu1 %v1159_v9 }
  0x35   : > { %1048 = vmatmul.mubr.bf16.vlgmr.msra.gmra.mxu0 %v1162_v10  ;;  %1064 = vmatmul.mubr.bf16.vlgmr.msra.gmra.mxu1 %v1163_v11 }
  0x36   : > { %1051 = vmatprep.mubr.bf16.mxu0 %v1164_v12  ;;  %1067 = vmatprep.mubr.bf16.mxu1 %v1165_v13 }
  0x3d   : > { %1052 = vmatmul.mubr.bf16.gmra.mxu0 %v1166_v14  ;;  %1068 = vmatmul.mubr.bf16.gmra.mxu1 %v1167_v15 }
  0x3e   : > { %1055 = vmatprep.mubr.bf16.mxu0 %v1168_v16  ;;  %1071 = vmatprep.mubr.bf16.mxu1 %v1169_v17 }
  0x45   : > { %1056 = vmatmul.mubr.bf16.gmra.mxu0 %v1170_v18  ;;  %1072 = vmatmul.mubr.bf16.gmra.mxu1 %v1171_v19 }
  0x46   : > { %1059 = vmatprep.mubr.bf16.mxu0 %v1172_v20  ;;  %1075 = vmatprep.mubr.bf16.mxu1 %v1173_v21 }
  0x4d   : > { %1060 = vmatmul.mubr.bf16.gmra.mxu0 %v1174_v22  ;;  %1076 = vmatmul.mubr.bf16.gmra.mxu1 %v1175_v23 }
  0xf5   : > { %v1049_v25 = vpop.f32.mrf.mxu0  ;;  %v1065_v26 = vpop.f32.mrf.mxu1 }
  0xf6   : > { %v781_v27 = vadd.f32 %v1049_v25, %v1384_v24  ;;  %v797_v28 = vadd.f32 %v1065_v26, %v1384_v24 }
  0xf7   : > { %v546_v29 = vpop.f32.mrf.mxu0  ;;  %v610_v30 = vpop.f32.mrf.mxu1 }
  0xf8   : > { %813 = vst [vmem:[%s1388_s7 + $0x10] sm:$0xff] %v781_v27  ;;  %829 = vst [vmem:[%s1388_s7 + $0x90] sm:$0xff] %v797_v28  ;;  %v779_v31 = vadd.f32 %v1384_v24, %v546_v29  ;;  %v795_v32 = vadd.f32 %v1384_v24, %v610_v30 }
  0xf9   : > { %v1050_v33 = vpop.f32.mrf.mxu0  ;;  %v1066_v34 = vpop.f32.mrf.mxu1 }
  0xfa   : > { %811 = vst [vmem:[%s1388_s7] sm:$0xff] %v779_v31  ;;  %827 = vst [vmem:[%s1388_s7 + $0x80] sm:$0xff] %v795_v32  ;;  %v782_v35 = vadd.f32 %v1050_v33, %v1384_v24  ;;  %v798_v36 = vadd.f32 %v1066_v34, %v1384_v24 }
  0xfb   : > { %v549_v37 = vpop.f32.mrf.mxu0  ;;  %v613_v38 = vpop.f32.mrf.mxu1 }
  0xfc   : > { %814 = vst [vmem:[%s1388_s7 + $0x18] sm:$0xff] %v782_v35  ;;  %830 = vst [vmem:[%s1388_s7 + $0x98] sm:$0xff] %v798_v36  ;;  %v780_v39 = vadd.f32 %v1384_v24, %v549_v37  ;;  %v796_v40 = vadd.f32 %v1384_v24, %v613_v38 }
  0xfd   : > { %v1053_v41 = vpop.f32.mrf.mxu0  ;;  %v1069_v42 = vpop.f32.mrf.mxu1 }
  0xfe   : > { %812 = vst [vmem:[%s1388_s7 + $0x8] sm:$0xff] %v780_v39  ;;  %828 = vst [vmem:[%s1388_s7 + $0x88] sm:$0xff] %v796_v40  ;;  %v785_v43 = vadd.f32 %v1053_v41, %v1384_v24  ;;  %v801_v44 = vadd.f32 %v1069_v42, %v1384_v24 }
  0xff   : > { %v562_v45 = vpop.f32.mrf.mxu0  ;;  %v626_v46 = vpop.f32.mrf.mxu1 }
 0x100   : > { %817 = vst [vmem:[%s1388_s7 + $0x30] sm:$0xff] %v785_v43  ;;  %833 = vst [vmem:[%s1388_s7 + $0xb0] sm:$0xff] %v801_v44  ;;  %v783_v47 = vadd.f32 %v1384_v24, %v562_v45  ;;  %v799_v48 = vadd.f32 %v1384_v24, %v626_v46 }
 0x101   : > { %v1054_v49 = vpop.f32.mrf.mxu0  ;;  %v1070_v50 = vpop.f32.mrf.mxu1 }
 0x102   : > { %815 = vst [vmem:[%s1388_s7 + $0x20] sm:$0xff] %v783_v47  ;;  %831 = vst [vmem:[%s1388_s7 + $0xa0] sm:$0xff] %v799_v48  ;;  %v786_v51 = vadd.f32 %v1054_v49, %v1384_v24  ;;  %v802_v52 = vadd.f32 %v1070_v50, %v1384_v24 }
 0x103   : > { %v565_v53 = vpop.f32.mrf.mxu0  ;;  %v629_v54 = vpop.f32.mrf.mxu1 }
 0x104   : > { %818 = vst [vmem:[%s1388_s7 + $0x38] sm:$0xff] %v786_v51  ;;  %834 = vst [vmem:[%s1388_s7 + $0xb8] sm:$0xff] %v802_v52  ;;  %v784_v55 = vadd.f32 %v1384_v24, %v565_v53  ;;  %v800_v56 = vadd.f32 %v1384_v24, %v629_v54 }
 0x105   : > { %v1057_v57 = vpop.f32.mrf.mxu0  ;;  %v1073_v58 = vpop.f32.mrf.mxu1 }
 0x106   : > { %816 = vst [vmem:[%s1388_s7 + $0x28] sm:$0xff] %v784_v55  ;;  %832 = vst [vmem:[%s1388_s7 + $0xa8] sm:$0xff] %v800_v56  ;;  %v789_v59 = vadd.f32 %v1057_v57, %v1384_v24  ;;  %v805_v60 = vadd.f32 %v1073_v58, %v1384_v24 }
 0x107   : > { %v578_v61 = vpop.f32.mrf.mxu0  ;;  %v642_v62 = vpop.f32.mrf.mxu1 }
 0x108   : > { %821 = vst [vmem:[%s1388_s7 + $0x50] sm:$0xff] %v789_v59  ;;  %837 = vst [vmem:[%s1388_s7 + $0xd0] sm:$0xff] %v805_v60  ;;  %v787_v63 = vadd.f32 %v1384_v24, %v578_v61  ;;  %v803_v0 = vadd.f32 %v1384_v24, %v642_v62 }
 0x109   : > { %v1058_v1 = vpop.f32.mrf.mxu0  ;;  %v1074_v2 = vpop.f32.mrf.mxu1 }
 0x10a   : > { %819 = vst [vmem:[%s1388_s7 + $0x40] sm:$0xff] %v787_v63  ;;  %835 = vst [vmem:[%s1388_s7 + $0xc0] sm:$0xff] %v803_v0  ;;  %v790_v3 = vadd.f32 %v1058_v1, %v1384_v24  ;;  %v806_v4 = vadd.f32 %v1074_v2, %v1384_v24 }
 0x10b   : > { %v581_v5 = vpop.f32.mrf.mxu0  ;;  %v645_v6 = vpop.f32.mrf.mxu1 }
 0x10c   : > { %822 = vst [vmem:[%s1388_s7 + $0x58] sm:$0xff] %v790_v3  ;;  %838 = vst [vmem:[%s1388_s7 + $0xd8] sm:$0xff] %v806_v4  ;;  %v788_v7 = vadd.f32 %v1384_v24, %v581_v5  ;;  %v804_v8 = vadd.f32 %v1384_v24, %v645_v6 }
 0x10d   : > { %v1061_v9 = vpop.f32.mrf.mxu0  ;;  %v1077_v10 = vpop.f32.mrf.mxu1 }
 0x10e   : > { %820 = vst [vmem:[%s1388_s7 + $0x48] sm:$0xff] %v788_v7  ;;  %836 = vst [vmem:[%s1388_s7 + $0xc8] sm:$0xff] %v804_v8  ;;  %v793_v11 = vadd.f32 %v1061_v9, %v1384_v24  ;;  %v809_v12 = vadd.f32 %v1077_v10, %v1384_v24 }
 0x10f   : > { %v594_v13 = vpop.f32.mrf.mxu0  ;;  %v658_v14 = vpop.f32.mrf.mxu1 }
 0x110   : > { %825 = vst [vmem:[%s1388_s7 + $0x70] sm:$0xff] %v793_v11  ;;  %841 = vst [vmem:[%s1388_s7 + $0xf0] sm:$0xff] %v809_v12  ;;  %v791_v15 = vadd.f32 %v1384_v24, %v594_v13  ;;  %v807_v16 = vadd.f32 %v1384_v24, %v658_v14 }
 0x111   : > { %v1062_v17 = vpop.f32.mrf.mxu0  ;;  %v1078_v18 = vpop.f32.mrf.mxu1 }
 0x112   : > { %823 = vst [vmem:[%s1388_s7 + $0x60] sm:$0xff] %v791_v15  ;;  %839 = vst [vmem:[%s1388_s7 + $0xe0] sm:$0xff] %v807_v16  ;;  %v794_v19 = vadd.f32 %v1062_v17, %v1384_v24  ;;  %v810_v20 = vadd.f32 %v1078_v18, %v1384_v24 }
 0x113   : > { %v597_v21 = vpop.f32.mrf.mxu0  ;;  %v661_v22 = vpop.f32.mrf.mxu1 }
 0x114   : > { %826 = vst [vmem:[%s1388_s7 + $0x78] sm:$0xff] %v794_v19  ;;  %842 = vst [vmem:[%s1388_s7 + $0xf8] sm:$0xff] %v810_v20  ;;  %v792_v23 = vadd.f32 %v1384_v24, %v597_v21  ;;  %v808_v25 = vadd.f32 %v1384_v24, %v661_v22 }
 0x116   : > { %824 = vst [vmem:[%s1388_s7 + $0x68] sm:$0xff] %v792_v23  ;;  %840 = vst [vmem:[%s1388_s7 + $0xe8] sm:$0xff] %v808_v25 }
 0x117   : > { %1189 = shalt.err (!%p1186_p5)
}
 0x118   : > { %s1190_s27 = scalar_lea.hbm %s1451_s18, 4096  ;;  %s1194_s30 = scalar_lea.hbm %s1511_s3, 8192 }
 0x119   : > { %p1191_p6 = scmp.ne.s32.totalorder %s1451_s18, %s1190_s27  ;;  %p1195_p10 = scmp.lt.s32.totalorder %s1451_s18, %s1511_s3 }
 0x11a   : > { %p1196_p11 = scmp.lt.s32.totalorder %s1194_s30, %s1190_s27 }
 0x11b   : > { %p1192_p7 = pnand %p1191_p6, %p1317_p4 }
 0x11c   : > { %p1197_p12 = por %p1196_p11, %p1195_p10 }
 0x11d   : > { %p1193_p9 = pneg %p1192_p7 }
 0x11f   : > { %p1198_p13 = pnand %p1197_p12, %p1193_p9 }
 0x121   : > { %1201 = shalt.err (!%p1198_p13)
}
 0x122   : > { %s1255_s6 = smov 128   ;;  %s1256_s7 = smov 8  }
 0x123   : > { %1095 = dma.vmem_to_hbm [thread:$0]  (%p1317_p4), %s1453_s9, 4096, %s1451_s18, %s1463_s15, %s1255_s6, %s1255_s6, %s1256_s7  }
 0x124 PF: > { %p1101_p0 = scmp.ge.s32.totalorder %s1252_s17, 2  ;;  %s873_s8 = sand.u32 1, %s1232_s12  }
 0x125   : > { %s874_s10 = scalar_lea.sflag [#allocation4], %s873_s8 }
 0x126   : > { %p1098_p1 = pnand %p1101_p0, %p1324_p8 }
 0x128   : > { %p1099_p2 = pneg %p1098_p1 }
 0x12a   : > { %1227 = dma.done.wait (%p1099_p2), %s874_s10, 4096  }
 0x12b   : > { %1229 = vsyncadd (%p1099_p2), %s874_s10, 4294963200  ;;  %s16_s17 = sadd.s32 1, %s1252_s17   ;;  %s1514_s12 = smov %s1236_s13 }
 0x12c   : > { %p13_p3 = scmp.ge.s32.totalorder %s16_s17, 4   ;;  %s1515_s13 = smov %s1240_s14 }
 0x12d   : > { %s1516_s14 = smov %s1330_s25  ;;  %s1517_s15 = smov %s1248_s16 }
 0x12e   : > { %s1518_s16 = smov %s1520_s20  ;;  %15 = sbr.rel (!%p13_p3) target bundleno = 4 (0x4), region = 81 }
 0x133   :  { %879 = vsyncpa [#allocation4], 1 }
 0x134   :  { %881 = vsyncpa [#allocation4 + $0x1], 1 }

</bundles_post_ra>
